<compile_context>
chip_gen: v6e
topology: v6e:2x2x1
jax: 0.10.0
libtpu: 0.0.40
codegen_flags: <defaults>
</compile_context>

<pallas_src>
import functools
import math

import jax
import jax.numpy as jnp
import numpy as np
from jax.experimental import pallas as pl
from jax.experimental.pallas import tpu as pltpu

D_K = 32
NUM_HEADS = 4
HEAD_DIM = D_K // NUM_HEADS
FFN_DIM = 4 * D_K
FUTURE_LEN = 8
NEG_INF = -1e30

OUT_LANES = 128
OUT_QC = 0
OUT_TRAJ = D_K                       # 32
OUT_SCORE = D_K + FUTURE_LEN * 5     # 72
OUT_USED = OUT_SCORE + 1             # 73


def _ceil8(x):
    return ((x + 7) // 8) * 8


# ---------------------------- in-kernel helpers (traced inside the Pallas body) -----------

def _gelu(x):
    # TODO(synk): PyTorch nn.GELU defaults to exact erf GELU; tanh approximation used
    # because erf lowering is not guaranteed on Mosaic.
    return 0.5 * x * (1.0 + jnp.tanh(0.7978845608028654 * (x + 0.044715 * x * x * x)))


def _elu(x):
    return jnp.where(x > 0.0, x, jnp.exp(jnp.minimum(x, 0.0)) - 1.0)


def _layernorm(x, g, b):
    mu = jnp.mean(x, axis=-1, keepdims=True)
    d = x - mu
    var = jnp.mean(d * d, axis=-1, keepdims=True)
    return d * jax.lax.rsqrt(var + 1e-5) * g + b


def _ffn(x, w1, b1, w2, b2):
    h = jnp.dot(x, w1, preferred_element_type=jnp.float32) + b1
    h = _gelu(h)
    return jnp.dot(h, w2, preferred_element_type=jnp.float32) + b2


def _mha(q8, segs, wo, bo, head_mask):
    """Multi-head attention over 8 (padded) query rows.

    q8: (8, D_K) projected queries (pad rows are junk; callers ignore them downstream).
    segs: list of (k, v, bias); k, v: (Lk_i, D_K); bias: (1, Lk_i) additive key-padding
          bias.  Segments are combined with a two-part softmax, equivalent to attention
          over the concatenated keys/values.
    head_mask: (NUM_HEADS, D_K) constant lane selector (1.0 where lane // HEAD_DIM == h).

    Heads are stacked along sublanes (q_stack (NUM_HEADS*8, D_K)), so each segment needs
    exactly one QK^T push and one PV push on the MXU; per-head outputs are recovered
    from sublane-aligned slices and accumulated into the concat layout before one output
    projection.
    """
    scale = 1.0 / math.sqrt(HEAD_DIM)
    q_stack = jnp.concatenate(
        [q8 * head_mask[h:h + 1, :] for h in range(NUM_HEADS)], axis=0)      # (32, D_K)
    s_list = []
    for (k, _v, bias) in segs:
        sh = jax.lax.dot_general(q_stack, k, (((1,), (1,)), ((), ())),
                                 preferred_element_type=jnp.float32) * scale + bias
        s_list.append(sh)                                                    # (32, Lk_i)
    m_all = s_list[0].max(axis=-1, keepdims=True)
    for sh in s_list[1:]:
        m_all = jnp.maximum(m_all, sh.max(axis=-1, keepdims=True))
    num = None
    den = None
    for sh, (_k, v, _bias) in zip(s_list, segs):
        e = jnp.exp(sh - m_all)
        pv = jnp.dot(e, v, preferred_element_type=jnp.float32)               # (32, D_K)
        es = jnp.sum(e, axis=-1, keepdims=True)
        num = pv if num is None else num + pv
        den = es if den is None else den + es
    pvn = num / den                                                          # (32, D_K)
    o = None
    for h in range(NUM_HEADS):
        oh = pvn[h * 8:(h + 1) * 8, :] * head_mask[h:h + 1, :]               # (8, D_K)
        o = oh if o is None else o + oh
    return jnp.dot(o, wo, preferred_element_type=jnp.float32) + bo


# ---------------------------- the fused decoder kernel ------------------------------------

def _interaction_decoder_kernel(aid_ref, in_ref, w32_ref, wr_ref, vec_ref, out_ref,
                                *, bb, n, m, s, t, nmp, io, w32_off, wr_off, vec_off):
    f32 = jnp.float32
    aid = aid_ref[0]
    tnmp = t * nmp

    def M32(name):                                  # (32, cols) matrices, lane-packed slab
        c0, nc = w32_off[name]
        return w32_ref[:, c0:c0 + nc]

    def WR(name, rows=None):                        # row-stacked 128-wide slab
        r0, nr, nc = wr_off[name]
        nr = rows if rows is not None else nr
        return wr_ref[r0:r0 + nr, 0:nc]

    def V(name):                                    # bias / LN vectors
        r0, nc = vec_off[name]
        return vec_ref[r0:r0 + 1, 0:nc]

    headm = WR("c_headm")                           # (NUM_HEADS, D_K)

    for bi in range(bb):                            # static per-step batch block (unrolled)
        # ---- future encoder (synthetic point-wise MLP over (x, y) + time max-pool) ----
        xy = in_ref[bi, io["act"]:io["act"] + tnmp, 0:2]                     # (T*NMP, 2)
        r0_w1 = wr_off["fe_w1"][0]
        w1x = wr_ref[r0_w1:r0_w1 + 1, 0:64]
        w1y = wr_ref[r0_w1 + 1:r0_w1 + 2, 0:64]
        # contraction depth 2 -> keep the first layer on the VPU (lane broadcasts)
        h1 = jnp.maximum(xy[:, 0:1] * w1x + xy[:, 1:2] * w1y + V("fe_b1"), 0.0)
        h2 = jnp.dot(h1, WR("fe_w2"), preferred_element_type=f32) + V("fe_b2")  # (T*NMP, D_K)
        hmax = h2[0:nmp, :]
        for tt in range(1, t):                      # sublane-aligned running max == max-pool
            hmax = jnp.maximum(hmax, h2[tt * nmp:(tt + 1) * nmp, :])

        cs_blk = in_ref[bi, io["cs"]:io["cs"] + 8, 0:8]                      # (8, 8)
        c_full = jnp.dot(cs_blk, WR("fe_wc", 8), preferred_element_type=f32) + V("fe_bc")
        # multi_futures[n, j] = hmax[n*M + j] + c_full[n]  (kept implicit)

        # ---- futures = mean over M of softmax(scores)-weighted multi_futures ----
        sc = in_ref[bi, io["sc"]:io["sc"] + 8, 0:m]                          # (8, M)
        sc_max = jnp.max(sc, axis=-1, keepdims=True)
        se = jnp.exp(sc - sc_max)
        w = se / jnp.sum(se, axis=-1, keepdims=True)                         # (8, M)
        pool = jnp.dot(w, WR("c_spread"), preferred_element_type=f32) * WR("c_block") * (1.0 / m)
        futures = jnp.dot(pool, hmax, preferred_element_type=f32) + c_full * (1.0 / m)  # (8, D_K)

        # ---- interaction encoder: SelfTransformer over the N agents ----
        bias_self = in_ref[bi, io["bias"]:io["bias"] + 1, 0:n]               # (1, N)
        qkv = jnp.dot(futures, M32("ie_wqkv"), preferred_element_type=f32) + V("ie_bqkv")
        attn_s = _mha(qkv[:, 0:D_K],
                      [(qkv[0:n, D_K:2 * D_K], qkv[0:n, 2 * D_K:3 * D_K], bias_self)],
                      M32("ie_wo"), V("ie_bo"), headm)
        a1 = _layernorm(attn_s + futures, V("ie_ln1_g"), V("ie_ln1_b"))
        f1 = _ffn(a1, M32("ie_fw1"), V("ie_fb1"), WR("ie_fw2"), V("ie_fb2"))
        inter = _layernorm(f1 + a1, V("ie_ln2_g"), V("ie_ln2_b"))            # (8, D_K); :N valid

        # ---- agent-id selection (aid is a dynamic SMEM scalar; one-hot matmuls) ----
        oh = (jax.lax.broadcasted_iota(jnp.int32, (1, 8), 1) == aid).astype(f32)        # (1, 8)
        rr = jax.lax.broadcasted_iota(jnp.int32, (8, nmp), 0)
        jj = jax.lax.broadcasted_iota(jnp.int32, (8, nmp), 1)
        sel = jnp.logical_and(jj == aid * m + rr, rr < m).astype(f32)                   # (8, NMP)
        hm_aid = jnp.dot(sel, hmax, preferred_element_type=f32)                         # (8, D_K)
        c_aid = jnp.dot(oh, c_full, preferred_element_type=f32)                         # (1, D_K)
        cs_aid = jnp.dot(oh, cs_blk, preferred_element_type=f32)                        # (1, 8)

        # ---- query encoder: CrossTransformer over keys = [interaction ; encoding] ----
        lc = in_ref[bi, io["lc"]:io["lc"] + 8, 0:D_K]                        # (8, D_K)
        enc = in_ref[bi, io["enc"]:io["enc"] + s, 0:D_K]                     # (S, D_K)
        bias_ci = in_ref[bi, io["bias"] + 1:io["bias"] + 2, 0:n]             # (1, N)
        bias_ce = in_ref[bi, io["bias"] + 2:io["bias"] + 3, 0:s]             # (1, S)
        query = lc + hm_aid + c_aid                                          # (8, D_K)
        q_c = jnp.dot(query, M32("qe_wq"), preferred_element_type=f32) + V("qe_bq")
        kv_i = jnp.dot(inter[0:n, :], M32("qe_wkv"), preferred_element_type=f32) + V("qe_bkv")
        kv_e = jnp.dot(enc, M32("qe_wkv"), preferred_element_type=f32) + V("qe_bkv")
        attn_c = _mha(q_c,
                      [(kv_i[:, 0:D_K], kv_i[:, D_K:2 * D_K], bias_ci),
                       (kv_e[:, 0:D_K], kv_e[:, D_K:2 * D_K], bias_ce)],
                      M32("qe_wo"), V("qe_bo"), headm)
        a2 = _layernorm(attn_c, V("qe_ln1_g"), V("qe_ln1_b"))                # norm_1(attn), no residual
        f2 = _ffn(a2, M32("qe_fw1"), V("qe_fb1"), WR("qe_fw2"), V("qe_fb2"))
        qc = _layernorm(f2 + a2, V("qe_ln2_g"), V("qe_ln2_b"))               # (8, D_K)

        # ---- GMM predictor heads (fused gaussian+score first layer) ----
        g = _elu(jnp.dot(qc, M32("gs1w"), preferred_element_type=f32) + V("gs1b"))      # (8, 576)
        res = jnp.dot(g[:, 0:512], WR("de_g2w"), preferred_element_type=f32) + V("de_g2b")
        scr = jnp.dot(g[:, 512:576], WR("de_s2w"), preferred_element_type=f32) + V("de_s2b")
        xym = WR("c_xym")                                                    # (2, FUTURE_LEN*5)
        # trajectories[..., :2] += current_states[:, id, None, None, :2]
        res = res + xym[0:1, :] * cs_aid[:, 0:1] + xym[1:2, :] * cs_aid[:, 1:2]

        # ---- single lane-dense packed store ----
        pad = jnp.zeros((8, OUT_LANES - OUT_USED), f32)
        out_ref[bi] = jnp.concatenate([qc, res, scr, pad], axis=1)


# ---------------------------- wrapper: one pallas_call over the batch ----------------------

def interaction_decoder_fwd(params, agent_id, current_states, actors, scores,
                            last_content, encoding, mask, batch_block=None):
    f32 = jnp.float32
    B, N, M, T, _ = actors.shape
    S = encoding.shape[1]
    state_dim = current_states.shape[-1]
    assert N <= 8 and M <= 8 and state_dim <= 8 and last_content.shape[-1] == D_K
    NM = N * M
    NMP = _ceil8(NM)
    SP = _ceil8(S)
    TNMP = T * NMP

    if batch_block is None:
        # two grid steps -> the two v7x TensorCores split the batch; on single-TC chips
        # (v5e/v6e) pass batch_block=B to fold the whole batch into one grid step.
        batch_block = B // 2 if (B >= 2 and B % 2 == 0) else 1
    assert B % batch_block == 0
    grid = (B // batch_block,)

    aid = jnp.asarray(agent_id, jnp.int32).reshape((1,))

    # ---------------- batched input slab: ONE (ROWS, 128) slab / DMA per batch element ----
    def pad2(x, rows, cols=128):
        return jnp.pad(x, ((0, 0), (0, rows - x.shape[1]), (0, cols - x.shape[2])))

    actors_xy = jnp.transpose(actors[..., :2], (0, 3, 1, 2, 4)).reshape(B, T, NM, 2)
    actors_xy = jnp.pad(actors_xy, ((0, 0), (0, 0), (0, NMP - NM), (0, 0)))
    actors_xy = actors_xy.reshape(B, TNMP, 2).astype(f32)

    m_n = mask[:, :N]
    aid_col = jnp.arange(N)[None, :] == jnp.asarray(agent_id, jnp.int32)
    bias_self = jnp.where(m_n, NEG_INF, 0.0).astype(f32)                             # (B, N)
    bias_ci = jnp.where(jnp.logical_or(m_n, aid_col), NEG_INF, 0.0).astype(f32)      # (B, N)
    bias_ce = jnp.where(mask, NEG_INF, 0.0).astype(f32)                              # (B, S)
    bias_blk = jnp.concatenate([pad2(bias_self[:, None, :], 1),
                                pad2(bias_ci[:, None, :], 1),
                                pad2(bias_ce[:, None, :], 1)], axis=1)               # (B, 3, 128)

    io = {}
    pieces = []
    row = 0

    def add_piece(name, x, rows):
        nonlocal row
        io[name] = row
        pieces.append(pad2(x.astype(f32), rows))
        row += rows

    add_piece("act", actors_xy, TNMP)
    add_piece("cs", current_states, 8)
    add_piece("sc", scores, 8)
    add_piece("lc", last_content, 8)
    add_piece("enc", encoding, SP)
    add_piece("bias", bias_blk, 8)
    in_slab = jnp.concatenate(pieces, axis=1)                                        # (B, ROWS, 128)
    ROWS = row

    # ---------------- compile-time constant masks (ride in the weight slab) ----------------
    jjn = np.arange(NMP)[None, :]
    c_spread = ((jjn % M) == np.arange(M)[:, None]) & (jjn < NM)                     # (M, NMP)
    c_block = np.zeros((8, NMP), np.float32)
    c_block[:N] = ((jjn // M) == np.arange(N)[:, None]) & (jjn < NM)
    c_headm = (np.arange(D_K)[None, :] // HEAD_DIM) == np.arange(NUM_HEADS)[:, None]  # (4, 32)
    r5 = np.arange(FUTURE_LEN * 5)[None, :] % 5
    c_xym = np.concatenate([(r5 == 0), (r5 == 1)], axis=0)                           # (2, 40)
    consts = {"c_spread": jnp.asarray(c_spread, f32),
              "c_block": jnp.asarray(c_block, f32),
              "c_headm": jnp.asarray(c_headm, f32),
              "c_xym": jnp.asarray(c_xym, f32)}

    # ---------------- weight slabs: 3 padded slabs instead of ~35 tiny operands -------------
    def as32(x):
        return jnp.asarray(x, f32)

    gs1w = jnp.concatenate([as32(params["de_g1w"]), as32(params["de_s1w"])], axis=1)  # (32, 576)
    gs1b = jnp.concatenate([as32(params["de_g1b"]), as32(params["de_s1b"])], axis=1)  # (1, 576)

    w32_items = [("ie_wqkv", params["ie_wqkv"]), ("ie_wo", params["ie_wo"]),
                 ("ie_fw1", params["ie_fw1"]), ("qe_wq", params["qe_wq"]),
                 ("qe_wkv", params["qe_wkv"]), ("qe_wo", params["qe_wo"]),
                 ("qe_fw1", params["qe_fw1"]), ("gs1w", gs1w)]
    w32_off, w32_cols, c0 = {}, [], 0
    for name, a in w32_items:
        a = as32(a)
        w32_off[name] = (c0, a.shape[1])
        w32_cols.append(a)
        c0 += a.shape[1]
    w32_slab = jnp.concatenate(w32_cols, axis=1)                                     # (32, C_total)

    wr_items = [("fe_w1", params["fe_w1"]), ("fe_w2", params["fe_w2"]),
                ("fe_wc", params["fe_wc"]), ("ie_fw2", params["ie_fw2"]),
                ("qe_fw2", params["qe_fw2"]), ("de_g2w", params["de_g2w"]),
                ("de_s2w", params["de_s2w"])] + list(consts.items())
    wr_off, wr_rows, r0 = {}, [], 0
    for name, a in wr_items:
        a = as32(a)
        r, c = a.shape
        rp = _ceil8(r)
        wr_off[name] = (r0, r, c)
        wr_rows.append(jnp.pad(a, ((0, rp - r), (0, 128 - c))))
        r0 += rp
    wr_slab = jnp.concatenate(wr_rows, axis=0)                                       # (R_total, 128)

    vec_items = [("fe_b1", params["fe_b1"]), ("fe_b2", params["fe_b2"]),
                 ("fe_bc", params["fe_bc"]), ("ie_bqkv", params["ie_bqkv"]),
                 ("ie_bo", params["ie_bo"]), ("ie_ln1_g", params["ie_ln1_g"]),
                 ("ie_ln1_b", params["ie_ln1_b"]), ("ie_fb1", params["ie_fb1"]),
                 ("ie_fb2", params["ie_fb2"]), ("ie_ln2_g", params["ie_ln2_g"]),
                 ("ie_ln2_b", params["ie_ln2_b"]), ("qe_bq", params["qe_bq"]),
                 ("qe_bkv", params["qe_bkv"]), ("qe_bo", params["qe_bo"]),
                 ("qe_ln1_g", params["qe_ln1_g"]), ("qe_ln1_b", params["qe_ln1_b"]),
                 ("qe_fb1", params["qe_fb1"]), ("qe_fb2", params["qe_fb2"]),
                 ("qe_ln2_g", params["qe_ln2_g"]), ("qe_ln2_b", params["qe_ln2_b"]),
                 ("gs1b", gs1b), ("de_g2b", params["de_g2b"]), ("de_s2b", params["de_s2b"])]
    VW = max(as32(a).shape[1] for _, a in vec_items)
    vec_off, vec_rows = {}, []
    for i, (name, a) in enumerate(vec_items):
        a = as32(a)
        vec_off[name] = (i, a.shape[1])
        vec_rows.append(jnp.pad(a, ((0, 0), (0, VW - a.shape[1]))))
    vec_slab = jnp.concatenate(vec_rows, axis=0)                                     # (n_vec, VW)

    # ---------------- the fused pallas_call ------------------------------------------------
    kernel = functools.partial(
        _interaction_decoder_kernel,
        bb=batch_block, n=N, m=M, s=S, t=T, nmp=NMP,
        io=io, w32_off=w32_off, wr_off=wr_off, vec_off=vec_off)

    out = pl.pallas_call(
        kernel,
        grid_spec=pltpu.PrefetchScalarGridSpec(
            num_scalar_prefetch=1,
            grid=grid,
            in_specs=[
                pl.BlockSpec((batch_block, ROWS, 128), lambda g, a: (g, 0, 0)),
                pl.BlockSpec(w32_slab.shape, lambda g, a: (0, 0)),
                pl.BlockSpec(wr_slab.shape, lambda g, a: (0, 0)),
                pl.BlockSpec(vec_slab.shape, lambda g, a: (0, 0)),
            ],
            out_specs=pl.BlockSpec((batch_block, 8, OUT_LANES), lambda g, a: (g, 0, 0)),
        ),
        out_shape=jax.ShapeDtypeStruct((B, 8, OUT_LANES), f32),
        compiler_params=pltpu.CompilerParams(dimension_semantics=("parallel",)),
    )(aid, in_slab, w32_slab, wr_slab, vec_slab)

    query_content = out[:, :M, OUT_QC:OUT_QC + D_K]
    trajectories = out[:, :M, OUT_TRAJ:OUT_TRAJ + FUTURE_LEN * 5].reshape(B, M, FUTURE_LEN, 5)
    out_scores = out[:, :M, OUT_SCORE]
    return query_content, trajectories, out_scores


# ---------------------------- deterministic parameter init ---------------------------------

class _KeyGen:
    def __init__(self, key):
        self._key = key

    def __call__(self):
        self._key, sub = jax.random.split(self._key)
        return sub


def init_params(key, state_dim):
    kg = _KeyGen(key)

    def w(shape, scale=0.02):
        return scale * jax.random.normal(kg(), shape, dtype=jnp.float32)

    def transformer(prefix, fused_qkv):
        p = {}
        if fused_qkv:
            p[prefix + "_wqkv"] = w((D_K, 3 * D_K))
            p[prefix + "_bqkv"] = w((1, 3 * D_K))
        else:
            p[prefix + "_wq"] = w((D_K, D_K))
            p[prefix + "_bq"] = w((1, D_K))
            p[prefix + "_wkv"] = w((D_K, 2 * D_K))
            p[prefix + "_bkv"] = w((1, 2 * D_K))
        p[prefix + "_wo"] = w((D_K, D_K))
        p[prefix + "_bo"] = w((1, D_K))
        p[prefix + "_ln1_g"] = jnp.ones((1, D_K), jnp.float32)
        p[prefix + "_ln1_b"] = jnp.zeros((1, D_K), jnp.float32)
        p[prefix + "_fw1"] = w((D_K, FFN_DIM))
        p[prefix + "_fb1"] = w((1, FFN_DIM))
        p[prefix + "_fw2"] = w((FFN_DIM, D_K))
        p[prefix + "_fb2"] = w((1, D_K))
        p[prefix + "_ln2_g"] = jnp.ones((1, D_K), jnp.float32)
        p[prefix + "_ln2_b"] = jnp.zeros((1, D_K), jnp.float32)
        return p

    params = dict(
        fe_w1=w((2, 64)), fe_b1=w((1, 64)),
        fe_w2=w((64, D_K)), fe_b2=w((1, D_K)),
        fe_wc=w((state_dim, D_K)), fe_bc=w((1, D_K)),
    )
    params.update(transformer("ie", fused_qkv=True))     # interaction (self) encoder
    params.update(transformer("qe", fused_qkv=False))    # query (cross) encoder
    params.update(dict(
        de_g1w=w((D_K, 512)), de_g1b=w((1, 512)),
        de_g2w=w((512, FUTURE_LEN * 5)), de_g2b=w((1, FUTURE_LEN * 5)),
        de_s1w=w((D_K, 64)), de_s1b=w((1, 64)),
        de_s2w=w((64, 1)), de_s2b=w((1, 1)),
    ))
    return params


if __name__ == "__main__":
    B, N, M, T = 2, 3, 4, 8
    S = 10            # encoding / mask sequence length (>= N)
    STATE_DIM = 5
    agent_id = jnp.int32(1)   # dynamic (scalar-prefetch) -> no recompile per agent id

    key = jax.random.PRNGKey(0)
    k_inp, k_par = jax.random.split(key)
    ks = jax.random.split(k_inp, 5)
    current_states = jax.random.normal(ks[0], (B, N, STATE_DIM), jnp.float32)
    actors = jax.random.normal(ks[1], (B, N, M, T, 3), jnp.float32)
    scores = jax.random.normal(ks[2], (B, N, M), jnp.float32)
    last_content = jax.random.normal(ks[3], (B, M, D_K), jnp.float32)
    encoding = jax.random.normal(ks[4], (B, S, D_K), jnp.float32)
    mask = jnp.zeros((B, S), dtype=bool).at[:, S - 1].set(True)   # last key padded out

    params = init_params(k_par, STATE_DIM)

    fwd = jax.jit(interaction_decoder_fwd)
    query_content, trajectories, out_scores = fwd(
        params, agent_id, current_states, actors, scores, last_content, encoding, mask)
    jax.block_until_ready((query_content, trajectories, out_scores))

    assert query_content.shape == (B, M, D_K)
    assert trajectories.shape == (B, M, FUTURE_LEN, 5)
    assert out_scores.shape == (B, M)
    assert bool(jnp.all(jnp.isfinite(query_content)))
    assert bool(jnp.all(jnp.isfinite(trajectories)))
    assert bool(jnp.all(jnp.isfinite(out_scores)))
    print("KERNEL_OK")
</pallas_src>

<mosaic_0001>
module attributes {stable_mosaic.version = 11 : i64} {
  func.func @_interaction_decoder_kernel(%arg0: i32, %arg1: memref<1xi32, #tpu.memory_space<smem>>, %arg2: memref<1x176x128xf32, #tpu.memory_space<vmem>>, %arg3: memref<32x1088xf32, #tpu.memory_space<vmem>>, %arg4: memref<944x128xf32, #tpu.memory_space<vmem>>, %arg5: memref<23x576xf32, #tpu.memory_space<vmem>>, %arg6: memref<1x8x128xf32, #tpu.memory_space<vmem>>) attributes {dimension_semantics = [#tpu.dimension_semantics<parallel>], iteration_bounds = array<i64: 2>, scalar_prefetch = 1 : i64, scratch_operands = 0 : i64, tpu.core_type = #tpu.core_type<tc>, window_params = [{transform_indices = @transform_0, window_bounds = array<i64: 1, 176, 128>}, {pipeline_mode = #tpu.pipeline_mode<synchronous>, transform_indices = @transform_1, window_bounds = array<i64: 32, 1088>}, {pipeline_mode = #tpu.pipeline_mode<synchronous>, transform_indices = @transform_2, window_bounds = array<i64: 944, 128>}, {pipeline_mode = #tpu.pipeline_mode<synchronous>, transform_indices = @transform_3, window_bounds = array<i64: 23, 576>}, {transform_indices = @transform_4, window_bounds = array<i64: 1, 8, 128>}]} {
    %c0 = arith.constant 0 : index
    %0 = memref.load %arg1[%c0] : memref<1xi32, #tpu.memory_space<smem>>
    %c928 = arith.constant 928 : index
    %c0_0 = arith.constant 0 : index
    %1 = vector.load %arg4[%c928, %c0_0] : memref<944x128xf32, #tpu.memory_space<vmem>>, vector<4x32xf32>
    %c0_1 = arith.constant 0 : index
    %c0_2 = arith.constant 0 : index
    %c0_3 = arith.constant 0 : index
    %2 = vector.load %arg2[%c0_1, %c0_2, %c0_3] : memref<1x176x128xf32, #tpu.memory_space<vmem>>, vector<1x128x2xf32>
    %3 = vector.shape_cast %2 : vector<1x128x2xf32> to vector<128x2xf32>
    %c0_4 = arith.constant 0 : index
    %c0_5 = arith.constant 0 : index
    %4 = vector.load %arg4[%c0_4, %c0_5] : memref<944x128xf32, #tpu.memory_space<vmem>>, vector<1x64xf32>
    %c1 = arith.constant 1 : index
    %c0_6 = arith.constant 0 : index
    %5 = vector.load %arg4[%c1, %c0_6] : memref<944x128xf32, #tpu.memory_space<vmem>>, vector<1x64xf32>
    %6 = vector.extract_strided_slice %3 {offsets = [0, 0], sizes = [128, 1], strides = [1, 1]} : vector<128x2xf32> to vector<128x1xf32>
    %7 = vector.broadcast %6 : vector<128x1xf32> to vector<128x64xf32>
    %8 = vector.broadcast %4 : vector<1x64xf32> to vector<128x64xf32>
    %9 = arith.mulf %7, %8 : vector<128x64xf32>
    %10 = vector.extract_strided_slice %3 {offsets = [0, 1], sizes = [128, 1], strides = [1, 1]} : vector<128x2xf32> to vector<128x1xf32>
    %11 = vector.broadcast %10 : vector<128x1xf32> to vector<128x64xf32>
    %12 = vector.broadcast %5 : vector<1x64xf32> to vector<128x64xf32>
    %13 = arith.mulf %11, %12 : vector<128x64xf32>
    %14 = arith.addf %9, %13 : vector<128x64xf32>
    %c0_7 = arith.constant 0 : index
    %c0_8 = arith.constant 0 : index
    %15 = vector.load %arg5[%c0_7, %c0_8] : memref<23x576xf32, #tpu.memory_space<vmem>>, vector<1x64xf32>
    %16 = vector.broadcast %15 : vector<1x64xf32> to vector<128x64xf32>
    %17 = arith.addf %14, %16 : vector<128x64xf32>
    %cst = arith.constant 0.000000e+00 : f32
    %18 = vector.broadcast %cst : f32 to vector<128x64xf32>
    %19 = arith.maximumf %17, %18 : vector<128x64xf32>
    %c8 = arith.constant 8 : index
    %c0_9 = arith.constant 0 : index
    %20 = vector.load %arg4[%c8, %c0_9] : memref<944x128xf32, #tpu.memory_space<vmem>>, vector<64x32xf32>
    %cst_10 = arith.constant dense<0.000000e+00> : vector<128x32xf32>
    %21 = tpu.matmul %19, %20, %cst_10 {dimension_numbers = #tpu.dot_dimension_numbers<[1], [0], [0], [1], [0, 0, 1, 1], [], []>} : vector<128x64xf32>, vector<64x32xf32>, vector<128x32xf32> -> vector<128x32xf32>
    %c1_11 = arith.constant 1 : index
    %c0_12 = arith.constant 0 : index
    %22 = vector.load %arg5[%c1_11, %c0_12] : memref<23x576xf32, #tpu.memory_space<vmem>>, vector<1x32xf32>
    %23 = vector.broadcast %22 : vector<1x32xf32> to vector<128x32xf32>
    %24 = arith.addf %21, %23 : vector<128x32xf32>
    %25 = vector.extract_strided_slice %24 {offsets = [0, 0], sizes = [16, 32], strides = [1, 1]} : vector<128x32xf32> to vector<16x32xf32>
    %26 = vector.extract_strided_slice %24 {offsets = [16, 0], sizes = [16, 32], strides = [1, 1]} : vector<128x32xf32> to vector<16x32xf32>
    %27 = arith.maximumf %25, %26 : vector<16x32xf32>
    %28 = vector.extract_strided_slice %24 {offsets = [32, 0], sizes = [16, 32], strides = [1, 1]} : vector<128x32xf32> to vector<16x32xf32>
    %29 = arith.maximumf %27, %28 : vector<16x32xf32>
    %30 = vector.extract_strided_slice %24 {offsets = [48, 0], sizes = [16, 32], strides = [1, 1]} : vector<128x32xf32> to vector<16x32xf32>
    %31 = arith.maximumf %29, %30 : vector<16x32xf32>
    %32 = vector.extract_strided_slice %24 {offsets = [64, 0], sizes = [16, 32], strides = [1, 1]} : vector<128x32xf32> to vector<16x32xf32>
    %33 = arith.maximumf %31, %32 : vector<16x32xf32>
    %34 = vector.extract_strided_slice %24 {offsets = [80, 0], sizes = [16, 32], strides = [1, 1]} : vector<128x32xf32> to vector<16x32xf32>
    %35 = arith.maximumf %33, %34 : vector<16x32xf32>
    %36 = vector.extract_strided_slice %24 {offsets = [96, 0], sizes = [16, 32], strides = [1, 1]} : vector<128x32xf32> to vector<16x32xf32>
    %37 = arith.maximumf %35, %36 : vector<16x32xf32>
    %38 = vector.extract_strided_slice %24 {offsets = [112, 0], sizes = [16, 32], strides = [1, 1]} : vector<128x32xf32> to vector<16x32xf32>
    %39 = arith.maximumf %37, %38 : vector<16x32xf32>
    %c0_13 = arith.constant 0 : index
    %c128 = arith.constant 128 : index
    %c0_14 = arith.constant 0 : index
    %40 = vector.load %arg2[%c0_13, %c128, %c0_14] : memref<1x176x128xf32, #tpu.memory_space<vmem>>, vector<1x8x8xf32>
    %41 = vector.shape_cast %40 : vector<1x8x8xf32> to vector<8x8xf32>
    %c72 = arith.constant 72 : index
    %c0_15 = arith.constant 0 : index
    %42 = vector.load %arg4[%c72, %c0_15] : memref<944x128xf32, #tpu.memory_space<vmem>>, vector<8x32xf32>
    %cst_16 = arith.constant dense<0.000000e+00> : vector<8x32xf32>
    %43 = tpu.matmul %41, %42, %cst_16 {dimension_numbers = #tpu.dot_dimension_numbers<[1], [0], [0], [1], [0, 0, 1, 1], [], []>} : vector<8x8xf32>, vector<8x32xf32>, vector<8x32xf32> -> vector<8x32xf32>
    %c2 = arith.constant 2 : index
    %c0_17 = arith.constant 0 : index
    %44 = vector.load %arg5[%c2, %c0_17] : memref<23x576xf32, #tpu.memory_space<vmem>>, vector<1x32xf32>
    %45 = vector.broadcast %44 : vector<1x32xf32> to vector<8x32xf32>
    %46 = arith.addf %43, %45 : vector<8x32xf32>
    %c0_18 = arith.constant 0 : index
    %c136 = arith.constant 136 : index
    %c0_19 = arith.constant 0 : index
    %47 = vector.load %arg2[%c0_18, %c136, %c0_19] : memref<1x176x128xf32, #tpu.memory_space<vmem>>, vector<1x8x4xf32>
    %48 = vector.shape_cast %47 : vector<1x8x4xf32> to vector<8x4xf32>
    %cst_20 = arith.constant dense<0xFF800000> : vector<8xf32>
    %49 = vector.multi_reduction <maximumf>, %48, %cst_20 [1] : vector<8x4xf32> to vector<8xf32>
    %50 = vector.shape_cast %49 : vector<8xf32> to vector<8x1xf32>
    %51 = vector.broadcast %50 : vector<8x1xf32> to vector<8x4xf32>
    %52 = arith.subf %48, %51 : vector<8x4xf32>
    %53 = math.exp %52 : vector<8x4xf32>
    %cst_21 = arith.constant dense<0.000000e+00> : vector<8xf32>
    %54 = vector.multi_reduction <add>, %53, %cst_21 [1] : vector<8x4xf32> to vector<8xf32>
    %55 = vector.shape_cast %54 : vector<8xf32> to vector<8x1xf32>
    %56 = vector.broadcast %55 : vector<8x1xf32> to vector<8x4xf32>
    %57 = arith.divf %53, %56 : vector<8x4xf32>
    %c912 = arith.constant 912 : index
    %c0_22 = arith.constant 0 : index
    %58 = vector.load %arg4[%c912, %c0_22] : memref<944x128xf32, #tpu.memory_space<vmem>>, vector<4x16xf32>
    %cst_23 = arith.constant dense<0.000000e+00> : vector<8x16xf32>
    %59 = tpu.matmul %57, %58, %cst_23 {dimension_numbers = #tpu.dot_dimension_numbers<[1], [0], [0], [1], [0, 0, 1, 1], [], []>} : vector<8x4xf32>, vector<4x16xf32>, vector<8x16xf32> -> vector<8x16xf32>
    %c920 = arith.constant 920 : index
    %c0_24 = arith.constant 0 : index
    %60 = vector.load %arg4[%c920, %c0_24] : memref<944x128xf32, #tpu.memory_space<vmem>>, vector<8x16xf32>
    %61 = arith.mulf %59, %60 : vector<8x16xf32>
    %cst_25 = arith.constant 2.500000e-01 : f32
    %62 = vector.broadcast %cst_25 : f32 to vector<8x16xf32>
    %63 = arith.mulf %61, %62 : vector<8x16xf32>
    %cst_26 = arith.constant dense<0.000000e+00> : vector<8x32xf32>
    %64 = tpu.matmul %63, %39, %cst_26 {dimension_numbers = #tpu.dot_dimension_numbers<[1], [0], [0], [1], [0, 0, 1, 1], [], []>} : vector<8x16xf32>, vector<16x32xf32>, vector<8x32xf32> -> vector<8x32xf32>
    %cst_27 = arith.constant 2.500000e-01 : f32
    %65 = vector.broadcast %cst_27 : f32 to vector<8x32xf32>
    %66 = arith.mulf %46, %65 : vector<8x32xf32>
    %67 = arith.addf %64, %66 : vector<8x32xf32>
    %c0_28 = arith.constant 0 : index
    %c168 = arith.constant 168 : index
    %c0_29 = arith.constant 0 : index
    %68 = vector.load %arg2[%c0_28, %c168, %c0_29] : memref<1x176x128xf32, #tpu.memory_space<vmem>>, vector<1x1x3xf32>
    %69 = vector.shape_cast %68 : vector<1x1x3xf32> to vector<1x3xf32>
    %c0_30 = arith.constant 0 : index
    %c0_31 = arith.constant 0 : index
    %70 = vector.load %arg3[%c0_30, %c0_31] : memref<32x1088xf32, #tpu.memory_space<vmem>>, vector<32x96xf32>
    %cst_32 = arith.constant dense<0.000000e+00> : vector<8x96xf32>
    %71 = tpu.matmul %67, %70, %cst_32 {dimension_numbers = #tpu.dot_dimension_numbers<[1], [0], [0], [1], [0, 0, 1, 1], [], []>} : vector<8x32xf32>, vector<32x96xf32>, vector<8x96xf32> -> vector<8x96xf32>
    %c3 = arith.constant 3 : index
    %c0_33 = arith.constant 0 : index
    %72 = vector.load %arg5[%c3, %c0_33] : memref<23x576xf32, #tpu.memory_space<vmem>>, vector<1x96xf32>
    %73 = vector.broadcast %72 : vector<1x96xf32> to vector<8x96xf32>
    %74 = arith.addf %71, %73 : vector<8x96xf32>
    %75 = vector.extract_strided_slice %74 {offsets = [0, 0], sizes = [8, 32], strides = [1, 1]} : vector<8x96xf32> to vector<8x32xf32>
    %76 = vector.extract_strided_slice %74 {offsets = [0, 32], sizes = [3, 32], strides = [1, 1]} : vector<8x96xf32> to vector<3x32xf32>
    %77 = vector.extract_strided_slice %74 {offsets = [0, 64], sizes = [3, 32], strides = [1, 1]} : vector<8x96xf32> to vector<3x32xf32>
    %c0_34 = arith.constant 0 : index
    %c96 = arith.constant 96 : index
    %78 = vector.load %arg3[%c0_34, %c96] : memref<32x1088xf32, #tpu.memory_space<vmem>>, vector<32x32xf32>
    %c4 = arith.constant 4 : index
    %c0_35 = arith.constant 0 : index
    %79 = vector.load %arg5[%c4, %c0_35] : memref<23x576xf32, #tpu.memory_space<vmem>>, vector<1x32xf32>
    %80 = vector.extract_strided_slice %1 {offsets = [0, 0], sizes = [1, 32], strides = [1, 1]} : vector<4x32xf32> to vector<1x32xf32>
    %81 = vector.broadcast %80 : vector<1x32xf32> to vector<8x32xf32>
    %82 = arith.mulf %75, %81 : vector<8x32xf32>
    %83 = vector.extract_strided_slice %1 {offsets = [1, 0], sizes = [1, 32], strides = [1, 1]} : vector<4x32xf32> to vector<1x32xf32>
    %84 = vector.broadcast %83 : vector<1x32xf32> to vector<8x32xf32>
    %85 = arith.mulf %75, %84 : vector<8x32xf32>
    %86 = vector.extract_strided_slice %1 {offsets = [2, 0], sizes = [1, 32], strides = [1, 1]} : vector<4x32xf32> to vector<1x32xf32>
    %87 = vector.broadcast %86 : vector<1x32xf32> to vector<8x32xf32>
    %88 = arith.mulf %75, %87 : vector<8x32xf32>
    %89 = vector.extract_strided_slice %1 {offsets = [3, 0], sizes = [1, 32], strides = [1, 1]} : vector<4x32xf32> to vector<1x32xf32>
    %90 = vector.broadcast %89 : vector<1x32xf32> to vector<8x32xf32>
    %91 = arith.mulf %75, %90 : vector<8x32xf32>
    %92 = tpu.concatenate %82, %85, %88, %91 in 0 : vector<8x32xf32>, vector<8x32xf32>, vector<8x32xf32>, vector<8x32xf32> -> vector<32x32xf32>
    %cst_36 = arith.constant dense<0.000000e+00> : vector<32x3xf32>
    %93 = tpu.matmul %92, %76, %cst_36 {dimension_numbers = #tpu.dot_dimension_numbers<[1], [1], [0], [0], [0, 0, 1, 0], [], []>} : vector<32x32xf32>, vector<3x32xf32>, vector<32x3xf32> -> vector<32x3xf32>
    %cst_37 = arith.constant 0.353553385 : f32
    %94 = vector.broadcast %cst_37 : f32 to vector<32x3xf32>
    %95 = arith.mulf %93, %94 : vector<32x3xf32>
    %96 = vector.broadcast %69 : vector<1x3xf32> to vector<32x3xf32>
    %97 = arith.addf %95, %96 : vector<32x3xf32>
    %cst_38 = arith.constant dense<0xFF800000> : vector<32xf32>
    %98 = vector.multi_reduction <maximumf>, %97, %cst_38 [1] : vector<32x3xf32> to vector<32xf32>
    %99 = vector.shape_cast %98 : vector<32xf32> to vector<32x1xf32>
    %100 = vector.broadcast %99 : vector<32x1xf32> to vector<32x3xf32>
    %101 = arith.subf %97, %100 : vector<32x3xf32>
    %102 = math.exp %101 : vector<32x3xf32>
    %cst_39 = arith.constant dense<0.000000e+00> : vector<32x32xf32>
    %103 = tpu.matmul %102, %77, %cst_39 {dimension_numbers = #tpu.dot_dimension_numbers<[1], [0], [0], [1], [0, 0, 1, 1], [], []>} : vector<32x3xf32>, vector<3x32xf32>, vector<32x32xf32> -> vector<32x32xf32>
    %cst_40 = arith.constant dense<0.000000e+00> : vector<32xf32>
    %104 = vector.multi_reduction <add>, %102, %cst_40 [1] : vector<32x3xf32> to vector<32xf32>
    %105 = vector.shape_cast %104 : vector<32xf32> to vector<32x1xf32>
    %106 = vector.broadcast %105 : vector<32x1xf32> to vector<32x32xf32>
    %107 = arith.divf %103, %106 : vector<32x32xf32>
    %108 = vector.extract_strided_slice %107 {offsets = [0, 0], sizes = [8, 32], strides = [1, 1]} : vector<32x32xf32> to vector<8x32xf32>
    %109 = vector.extract_strided_slice %1 {offsets = [0, 0], sizes = [1, 32], strides = [1, 1]} : vector<4x32xf32> to vector<1x32xf32>
    %110 = vector.broadcast %109 : vector<1x32xf32> to vector<8x32xf32>
    %111 = arith.mulf %108, %110 : vector<8x32xf32>
    %112 = vector.extract_strided_slice %107 {offsets = [8, 0], sizes = [8, 32], strides = [1, 1]} : vector<32x32xf32> to vector<8x32xf32>
    %113 = vector.extract_strided_slice %1 {offsets = [1, 0], sizes = [1, 32], strides = [1, 1]} : vector<4x32xf32> to vector<1x32xf32>
    %114 = vector.broadcast %113 : vector<1x32xf32> to vector<8x32xf32>
    %115 = arith.mulf %112, %114 : vector<8x32xf32>
    %116 = arith.addf %111, %115 : vector<8x32xf32>
    %117 = vector.extract_strided_slice %107 {offsets = [16, 0], sizes = [8, 32], strides = [1, 1]} : vector<32x32xf32> to vector<8x32xf32>
    %118 = vector.extract_strided_slice %1 {offsets = [2, 0], sizes = [1, 32], strides = [1, 1]} : vector<4x32xf32> to vector<1x32xf32>
    %119 = vector.broadcast %118 : vector<1x32xf32> to vector<8x32xf32>
    %120 = arith.mulf %117, %119 : vector<8x32xf32>
    %121 = arith.addf %116, %120 : vector<8x32xf32>
    %122 = vector.extract_strided_slice %107 {offsets = [24, 0], sizes = [8, 32], strides = [1, 1]} : vector<32x32xf32> to vector<8x32xf32>
    %123 = vector.extract_strided_slice %1 {offsets = [3, 0], sizes = [1, 32], strides = [1, 1]} : vector<4x32xf32> to vector<1x32xf32>
    %124 = vector.broadcast %123 : vector<1x32xf32> to vector<8x32xf32>
    %125 = arith.mulf %122, %124 : vector<8x32xf32>
    %126 = arith.addf %121, %125 : vector<8x32xf32>
    %cst_41 = arith.constant dense<0.000000e+00> : vector<8x32xf32>
    %127 = tpu.matmul %126, %78, %cst_41 {dimension_numbers = #tpu.dot_dimension_numbers<[1], [0], [0], [1], [0, 0, 1, 1], [], []>} : vector<8x32xf32>, vector<32x32xf32>, vector<8x32xf32> -> vector<8x32xf32>
    %128 = vector.broadcast %79 : vector<1x32xf32> to vector<8x32xf32>
    %129 = arith.addf %127, %128 : vector<8x32xf32>
    %130 = arith.addf %129, %67 : vector<8x32xf32>
    %c5 = arith.constant 5 : index
    %c0_42 = arith.constant 0 : index
    %131 = vector.load %arg5[%c5, %c0_42] : memref<23x576xf32, #tpu.memory_space<vmem>>, vector<1x32xf32>
    %c6 = arith.constant 6 : index
    %c0_43 = arith.constant 0 : index
    %132 = vector.load %arg5[%c6, %c0_43] : memref<23x576xf32, #tpu.memory_space<vmem>>, vector<1x32xf32>
    %cst_44 = arith.constant dense<0.000000e+00> : vector<8xf32>
    %133 = vector.multi_reduction <add>, %130, %cst_44 [1] : vector<8x32xf32> to vector<8xf32>
    %134 = vector.shape_cast %133 : vector<8xf32> to vector<8x1xf32>
    %cst_45 = arith.constant 3.200000e+01 : f32
    %135 = vector.broadcast %cst_45 : f32 to vector<8x1xf32>
    %136 = arith.divf %134, %135 : vector<8x1xf32>
    %137 = vector.broadcast %136 : vector<8x1xf32> to vector<8x32xf32>
    %138 = arith.subf %130, %137 : vector<8x32xf32>
    %139 = arith.mulf %138, %138 : vector<8x32xf32>
    %cst_46 = arith.constant dense<0.000000e+00> : vector<8xf32>
    %140 = vector.multi_reduction <add>, %139, %cst_46 [1] : vector<8x32xf32> to vector<8xf32>
    %141 = vector.shape_cast %140 : vector<8xf32> to vector<8x1xf32>
    %cst_47 = arith.constant 3.200000e+01 : f32
    %142 = vector.broadcast %cst_47 : f32 to vector<8x1xf32>
    %143 = arith.divf %141, %142 : vector<8x1xf32>
    %cst_48 = arith.constant 9.99999974E-6 : f32
    %144 = vector.broadcast %cst_48 : f32 to vector<8x1xf32>
    %145 = arith.addf %143, %144 : vector<8x1xf32>
    %146 = math.rsqrt %145 : vector<8x1xf32>
    %147 = vector.broadcast %146 : vector<8x1xf32> to vector<8x32xf32>
    %148 = arith.mulf %138, %147 : vector<8x32xf32>
    %149 = vector.broadcast %131 : vector<1x32xf32> to vector<8x32xf32>
    %150 = arith.mulf %148, %149 : vector<8x32xf32>
    %151 = vector.broadcast %132 : vector<1x32xf32> to vector<8x32xf32>
    %152 = arith.addf %150, %151 : vector<8x32xf32>
    %c0_49 = arith.constant 0 : index
    %c128_50 = arith.constant 128 : index
    %153 = vector.load %arg3[%c0_49, %c128_50] : memref<32x1088xf32, #tpu.memory_space<vmem>>, vector<32x128xf32>
    %c7 = arith.constant 7 : index
    %c0_51 = arith.constant 0 : index
    %154 = vector.load %arg5[%c7, %c0_51] : memref<23x576xf32, #tpu.memory_space<vmem>>, vector<1x128xf32>
    %c80 = arith.constant 80 : index
    %c0_52 = arith.constant 0 : index
    %155 = vector.load %arg4[%c80, %c0_52] : memref<944x128xf32, #tpu.memory_space<vmem>>, vector<128x32xf32>
    %c8_53 = arith.constant 8 : index
    %c0_54 = arith.constant 0 : index
    %156 = vector.load %arg5[%c8_53, %c0_54] : memref<23x576xf32, #tpu.memory_space<vmem>>, vector<1x32xf32>
    %cst_55 = arith.constant dense<0.000000e+00> : vector<8x128xf32>
    %157 = tpu.matmul %152, %153, %cst_55 {dimension_numbers = #tpu.dot_dimension_numbers<[1], [0], [0], [1], [0, 0, 1, 1], [], []>} : vector<8x32xf32>, vector<32x128xf32>, vector<8x128xf32> -> vector<8x128xf32>
    %158 = vector.broadcast %154 : vector<1x128xf32> to vector<8x128xf32>
    %159 = arith.addf %157, %158 : vector<8x128xf32>
    %cst_56 = arith.constant 5.000000e-01 : f32
    %160 = vector.broadcast %cst_56 : f32 to vector<8x128xf32>
    %161 = arith.mulf %160, %159 : vector<8x128xf32>
    %cst_57 = arith.constant 4.471500e-02 : f32
    %162 = vector.broadcast %cst_57 : f32 to vector<8x128xf32>
    %163 = arith.mulf %162, %159 : vector<8x128xf32>
    %164 = arith.mulf %163, %159 : vector<8x128xf32>
    %165 = arith.mulf %164, %159 : vector<8x128xf32>
    %166 = arith.addf %159, %165 : vector<8x128xf32>
    %cst_58 = arith.constant 0.797884583 : f32
    %167 = vector.broadcast %cst_58 : f32 to vector<8x128xf32>
    %168 = arith.mulf %167, %166 : vector<8x128xf32>
    %169 = math.tanh %168 : vector<8x128xf32>
    %cst_59 = arith.constant 1.000000e+00 : f32
    %170 = vector.broadcast %cst_59 : f32 to vector<8x128xf32>
    %171 = arith.addf %170, %169 : vector<8x128xf32>
    %172 = arith.mulf %161, %171 : vector<8x128xf32>
    %cst_60 = arith.constant dense<0.000000e+00> : vector<8x32xf32>
    %173 = tpu.matmul %172, %155, %cst_60 {dimension_numbers = #tpu.dot_dimension_numbers<[1], [0], [0], [1], [0, 0, 1, 1], [], []>} : vector<8x128xf32>, vector<128x32xf32>, vector<8x32xf32> -> vector<8x32xf32>
    %174 = vector.broadcast %156 : vector<1x32xf32> to vector<8x32xf32>
    %175 = arith.addf %173, %174 : vector<8x32xf32>
    %176 = arith.addf %175, %152 : vector<8x32xf32>
    %c9 = arith.constant 9 : index
    %c0_61 = arith.constant 0 : index
    %177 = vector.load %arg5[%c9, %c0_61] : memref<23x576xf32, #tpu.memory_space<vmem>>, vector<1x32xf32>
    %c10 = arith.constant 10 : index
    %c0_62 = arith.constant 0 : index
    %178 = vector.load %arg5[%c10, %c0_62] : memref<23x576xf32, #tpu.memory_space<vmem>>, vector<1x32xf32>
    %cst_63 = arith.constant dense<0.000000e+00> : vector<8xf32>
    %179 = vector.multi_reduction <add>, %176, %cst_63 [1] : vector<8x32xf32> to vector<8xf32>
    %180 = vector.shape_cast %179 : vector<8xf32> to vector<8x1xf32>
    %cst_64 = arith.constant 3.200000e+01 : f32
    %181 = vector.broadcast %cst_64 : f32 to vector<8x1xf32>
    %182 = arith.divf %180, %181 : vector<8x1xf32>
    %183 = vector.broadcast %182 : vector<8x1xf32> to vector<8x32xf32>
    %184 = arith.subf %176, %183 : vector<8x32xf32>
    %185 = arith.mulf %184, %184 : vector<8x32xf32>
    %cst_65 = arith.constant dense<0.000000e+00> : vector<8xf32>
    %186 = vector.multi_reduction <add>, %185, %cst_65 [1] : vector<8x32xf32> to vector<8xf32>
    %187 = vector.shape_cast %186 : vector<8xf32> to vector<8x1xf32>
    %cst_66 = arith.constant 3.200000e+01 : f32
    %188 = vector.broadcast %cst_66 : f32 to vector<8x1xf32>
    %189 = arith.divf %187, %188 : vector<8x1xf32>
    %cst_67 = arith.constant 9.99999974E-6 : f32
    %190 = vector.broadcast %cst_67 : f32 to vector<8x1xf32>
    %191 = arith.addf %189, %190 : vector<8x1xf32>
    %192 = math.rsqrt %191 : vector<8x1xf32>
    %193 = vector.broadcast %192 : vector<8x1xf32> to vector<8x32xf32>
    %194 = arith.mulf %184, %193 : vector<8x32xf32>
    %195 = vector.broadcast %177 : vector<1x32xf32> to vector<8x32xf32>
    %196 = arith.mulf %194, %195 : vector<8x32xf32>
    %197 = vector.broadcast %178 : vector<1x32xf32> to vector<8x32xf32>
    %198 = arith.addf %196, %197 : vector<8x32xf32>
    %199 = tpu.iota {dimensions = array<i32: 1>} : vector<1x8xi32>
    %200 = vector.broadcast %0 : i32 to vector<1x8xi32>
    %201 = arith.cmpi eq, %199, %200 : vector<1x8xi32>
    %202 = arith.extui %201 : vector<1x8xi1> to vector<1x8xi32>
    %203 = arith.sitofp %202 : vector<1x8xi32> to vector<1x8xf32>
    %204 = tpu.iota {dimensions = array<i32: 0>} : vector<8x16xi32>
    %205 = tpu.iota {dimensions = array<i32: 1>} : vector<8x16xi32>
    %c4_i32 = arith.constant 4 : i32
    %206 = arith.muli %0, %c4_i32 : i32
    %207 = vector.broadcast %206 : i32 to vector<8x16xi32>
    %208 = arith.addi %207, %204 : vector<8x16xi32>
    %209 = arith.cmpi eq, %205, %208 : vector<8x16xi32>
    %c4_i32_68 = arith.constant 4 : i32
    %210 = vector.broadcast %c4_i32_68 : i32 to vector<8x16xi32>
    %211 = arith.cmpi slt, %204, %210 : vector<8x16xi32>
    %212 = arith.andi %209, %211 : vector<8x16xi1>
    %213 = arith.extui %212 : vector<8x16xi1> to vector<8x16xi32>
    %214 = arith.sitofp %213 : vector<8x16xi32> to vector<8x16xf32>
    %cst_69 = arith.constant dense<0.000000e+00> : vector<8x32xf32>
    %215 = tpu.matmul %214, %39, %cst_69 {dimension_numbers = #tpu.dot_dimension_numbers<[1], [0], [0], [1], [0, 0, 1, 1], [], []>} : vector<8x16xf32>, vector<16x32xf32>, vector<8x32xf32> -> vector<8x32xf32>
    %cst_70 = arith.constant dense<0.000000e+00> : vector<1x32xf32>
    %216 = tpu.matmul %203, %46, %cst_70 {dimension_numbers = #tpu.dot_dimension_numbers<[1], [0], [0], [1], [0, 0, 1, 1], [], []>} : vector<1x8xf32>, vector<8x32xf32>, vector<1x32xf32> -> vector<1x32xf32>
    %cst_71 = arith.constant dense<0.000000e+00> : vector<1x8xf32>
    %217 = tpu.matmul %203, %41, %cst_71 {dimension_numbers = #tpu.dot_dimension_numbers<[1], [0], [0], [1], [0, 0, 1, 1], [], []>} : vector<1x8xf32>, vector<8x8xf32>, vector<1x8xf32> -> vector<1x8xf32>
    %c0_72 = arith.constant 0 : index
    %c144 = arith.constant 144 : index
    %c0_73 = arith.constant 0 : index
    %218 = vector.load %arg2[%c0_72, %c144, %c0_73] : memref<1x176x128xf32, #tpu.memory_space<vmem>>, vector<1x8x32xf32>
    %219 = vector.shape_cast %218 : vector<1x8x32xf32> to vector<8x32xf32>
    %c0_74 = arith.constant 0 : index
    %c152 = arith.constant 152 : index
    %c0_75 = arith.constant 0 : index
    %220 = vector.load %arg2[%c0_74, %c152, %c0_75] : memref<1x176x128xf32, #tpu.memory_space<vmem>>, vector<1x10x32xf32>
    %221 = vector.shape_cast %220 : vector<1x10x32xf32> to vector<10x32xf32>
    %c0_76 = arith.constant 0 : index
    %c169 = arith.constant 169 : index
    %c0_77 = arith.constant 0 : index
    %222 = vector.load %arg2[%c0_76, %c169, %c0_77] : memref<1x176x128xf32, #tpu.memory_space<vmem>>, vector<1x1x3xf32>
    %223 = vector.shape_cast %222 : vector<1x1x3xf32> to vector<1x3xf32>
    %c0_78 = arith.constant 0 : index
    %c170 = arith.constant 170 : index
    %c0_79 = arith.constant 0 : index
    %224 = vector.load %arg2[%c0_78, %c170, %c0_79] : memref<1x176x128xf32, #tpu.memory_space<vmem>>, vector<1x1x10xf32>
    %225 = vector.shape_cast %224 : vector<1x1x10xf32> to vector<1x10xf32>
    %226 = arith.addf %219, %215 : vector<8x32xf32>
    %227 = vector.broadcast %216 : vector<1x32xf32> to vector<8x32xf32>
    %228 = arith.addf %226, %227 : vector<8x32xf32>
    %c0_80 = arith.constant 0 : index
    %c256 = arith.constant 256 : index
    %229 = vector.load %arg3[%c0_80, %c256] : memref<32x1088xf32, #tpu.memory_space<vmem>>, vector<32x32xf32>
    %cst_81 = arith.constant dense<0.000000e+00> : vector<8x32xf32>
    %230 = tpu.matmul %228, %229, %cst_81 {dimension_numbers = #tpu.dot_dimension_numbers<[1], [0], [0], [1], [0, 0, 1, 1], [], []>} : vector<8x32xf32>, vector<32x32xf32>, vector<8x32xf32> -> vector<8x32xf32>
    %c11 = arith.constant 11 : index
    %c0_82 = arith.constant 0 : index
    %231 = vector.load %arg5[%c11, %c0_82] : memref<23x576xf32, #tpu.memory_space<vmem>>, vector<1x32xf32>
    %232 = vector.broadcast %231 : vector<1x32xf32> to vector<8x32xf32>
    %233 = arith.addf %230, %232 : vector<8x32xf32>
    %234 = vector.extract_strided_slice %198 {offsets = [0, 0], sizes = [3, 32], strides = [1, 1]} : vector<8x32xf32> to vector<3x32xf32>
    %c0_83 = arith.constant 0 : index
    %c288 = arith.constant 288 : index
    %235 = vector.load %arg3[%c0_83, %c288] : memref<32x1088xf32, #tpu.memory_space<vmem>>, vector<32x64xf32>
    %cst_84 = arith.constant dense<0.000000e+00> : vector<3x64xf32>
    %236 = tpu.matmul %234, %235, %cst_84 {dimension_numbers = #tpu.dot_dimension_numbers<[1], [0], [0], [1], [0, 0, 1, 1], [], []>} : vector<3x32xf32>, vector<32x64xf32>, vector<3x64xf32> -> vector<3x64xf32>
    %c12 = arith.constant 12 : index
    %c0_85 = arith.constant 0 : index
    %237 = vector.load %arg5[%c12, %c0_85] : memref<23x576xf32, #tpu.memory_space<vmem>>, vector<1x64xf32>
    %238 = vector.broadcast %237 : vector<1x64xf32> to vector<3x64xf32>
    %239 = arith.addf %236, %238 : vector<3x64xf32>
    %c0_86 = arith.constant 0 : index
    %c288_87 = arith.constant 288 : index
    %240 = vector.load %arg3[%c0_86, %c288_87] : memref<32x1088xf32, #tpu.memory_space<vmem>>, vector<32x64xf32>
    %cst_88 = arith.constant dense<0.000000e+00> : vector<10x64xf32>
    %241 = tpu.matmul %221, %240, %cst_88 {dimension_numbers = #tpu.dot_dimension_numbers<[1], [0], [0], [1], [0, 0, 1, 1], [], []>} : vector<10x32xf32>, vector<32x64xf32>, vector<10x64xf32> -> vector<10x64xf32>
    %c12_89 = arith.constant 12 : index
    %c0_90 = arith.constant 0 : index
    %242 = vector.load %arg5[%c12_89, %c0_90] : memref<23x576xf32, #tpu.memory_space<vmem>>, vector<1x64xf32>
    %243 = vector.broadcast %242 : vector<1x64xf32> to vector<10x64xf32>
    %244 = arith.addf %241, %243 : vector<10x64xf32>
    %245 = vector.extract_strided_slice %239 {offsets = [0, 0], sizes = [3, 32], strides = [1, 1]} : vector<3x64xf32> to vector<3x32xf32>
    %246 = vector.extract_strided_slice %239 {offsets = [0, 32], sizes = [3, 32], strides = [1, 1]} : vector<3x64xf32> to vector<3x32xf32>
    %247 = vector.extract_strided_slice %244 {offsets = [0, 0], sizes = [10, 32], strides = [1, 1]} : vector<10x64xf32> to vector<10x32xf32>
    %248 = vector.extract_strided_slice %244 {offsets = [0, 32], sizes = [10, 32], strides = [1, 1]} : vector<10x64xf32> to vector<10x32xf32>
    %c0_91 = arith.constant 0 : index
    %c352 = arith.constant 352 : index
    %249 = vector.load %arg3[%c0_91, %c352] : memref<32x1088xf32, #tpu.memory_space<vmem>>, vector<32x32xf32>
    %c13 = arith.constant 13 : index
    %c0_92 = arith.constant 0 : index
    %250 = vector.load %arg5[%c13, %c0_92] : memref<23x576xf32, #tpu.memory_space<vmem>>, vector<1x32xf32>
    %251 = vector.extract_strided_slice %1 {offsets = [0, 0], sizes = [1, 32], strides = [1, 1]} : vector<4x32xf32> to vector<1x32xf32>
    %252 = vector.broadcast %251 : vector<1x32xf32> to vector<8x32xf32>
    %253 = arith.mulf %233, %252 : vector<8x32xf32>
    %254 = vector.extract_strided_slice %1 {offsets = [1, 0], sizes = [1, 32], strides = [1, 1]} : vector<4x32xf32> to vector<1x32xf32>
    %255 = vector.broadcast %254 : vector<1x32xf32> to vector<8x32xf32>
    %256 = arith.mulf %233, %255 : vector<8x32xf32>
    %257 = vector.extract_strided_slice %1 {offsets = [2, 0], sizes = [1, 32], strides = [1, 1]} : vector<4x32xf32> to vector<1x32xf32>
    %258 = vector.broadcast %257 : vector<1x32xf32> to vector<8x32xf32>
    %259 = arith.mulf %233, %258 : vector<8x32xf32>
    %260 = vector.extract_strided_slice %1 {offsets = [3, 0], sizes = [1, 32], strides = [1, 1]} : vector<4x32xf32> to vector<1x32xf32>
    %261 = vector.broadcast %260 : vector<1x32xf32> to vector<8x32xf32>
    %262 = arith.mulf %233, %261 : vector<8x32xf32>
    %263 = tpu.concatenate %253, %256, %259, %262 in 0 : vector<8x32xf32>, vector<8x32xf32>, vector<8x32xf32>, vector<8x32xf32> -> vector<32x32xf32>
    %cst_93 = arith.constant dense<0.000000e+00> : vector<32x3xf32>
    %264 = tpu.matmul %263, %245, %cst_93 {dimension_numbers = #tpu.dot_dimension_numbers<[1], [1], [0], [0], [0, 0, 1, 0], [], []>} : vector<32x32xf32>, vector<3x32xf32>, vector<32x3xf32> -> vector<32x3xf32>
    %cst_94 = arith.constant 0.353553385 : f32
    %265 = vector.broadcast %cst_94 : f32 to vector<32x3xf32>
    %266 = arith.mulf %264, %265 : vector<32x3xf32>
    %267 = vector.broadcast %223 : vector<1x3xf32> to vector<32x3xf32>
    %268 = arith.addf %266, %267 : vector<32x3xf32>
    %cst_95 = arith.constant dense<0.000000e+00> : vector<32x10xf32>
    %269 = tpu.matmul %263, %247, %cst_95 {dimension_numbers = #tpu.dot_dimension_numbers<[1], [1], [0], [0], [0, 0, 1, 0], [], []>} : vector<32x32xf32>, vector<10x32xf32>, vector<32x10xf32> -> vector<32x10xf32>
    %cst_96 = arith.constant 0.353553385 : f32
    %270 = vector.broadcast %cst_96 : f32 to vector<32x10xf32>
    %271 = arith.mulf %269, %270 : vector<32x10xf32>
    %272 = vector.broadcast %225 : vector<1x10xf32> to vector<32x10xf32>
    %273 = arith.addf %271, %272 : vector<32x10xf32>
    %cst_97 = arith.constant dense<0xFF800000> : vector<32xf32>
    %274 = vector.multi_reduction <maximumf>, %268, %cst_97 [1] : vector<32x3xf32> to vector<32xf32>
    %275 = vector.shape_cast %274 : vector<32xf32> to vector<32x1xf32>
    %cst_98 = arith.constant dense<0xFF800000> : vector<32xf32>
    %276 = vector.multi_reduction <maximumf>, %273, %cst_98 [1] : vector<32x10xf32> to vector<32xf32>
    %277 = vector.shape_cast %276 : vector<32xf32> to vector<32x1xf32>
    %278 = arith.maximumf %275, %277 : vector<32x1xf32>
    %279 = vector.broadcast %278 : vector<32x1xf32> to vector<32x3xf32>
    %280 = arith.subf %268, %279 : vector<32x3xf32>
    %281 = math.exp %280 : vector<32x3xf32>
    %cst_99 = arith.constant dense<0.000000e+00> : vector<32x32xf32>
    %282 = tpu.matmul %281, %246, %cst_99 {dimension_numbers = #tpu.dot_dimension_numbers<[1], [0], [0], [1], [0, 0, 1, 1], [], []>} : vector<32x3xf32>, vector<3x32xf32>, vector<32x32xf32> -> vector<32x32xf32>
    %cst_100 = arith.constant dense<0.000000e+00> : vector<32xf32>
    %283 = vector.multi_reduction <add>, %281, %cst_100 [1] : vector<32x3xf32> to vector<32xf32>
    %284 = vector.shape_cast %283 : vector<32xf32> to vector<32x1xf32>
    %285 = vector.broadcast %278 : vector<32x1xf32> to vector<32x10xf32>
    %286 = arith.subf %273, %285 : vector<32x10xf32>
    %287 = math.exp %286 : vector<32x10xf32>
    %cst_101 = arith.constant dense<0.000000e+00> : vector<32x32xf32>
    %288 = tpu.matmul %287, %248, %cst_101 {dimension_numbers = #tpu.dot_dimension_numbers<[1], [0], [0], [1], [0, 0, 1, 1], [], []>} : vector<32x10xf32>, vector<10x32xf32>, vector<32x32xf32> -> vector<32x32xf32>
    %cst_102 = arith.constant dense<0.000000e+00> : vector<32xf32>
    %289 = vector.multi_reduction <add>, %287, %cst_102 [1] : vector<32x10xf32> to vector<32xf32>
    %290 = vector.shape_cast %289 : vector<32xf32> to vector<32x1xf32>
    %291 = arith.addf %282, %288 : vector<32x32xf32>
    %292 = arith.addf %284, %290 : vector<32x1xf32>
    %293 = vector.broadcast %292 : vector<32x1xf32> to vector<32x32xf32>
    %294 = arith.divf %291, %293 : vector<32x32xf32>
    %295 = vector.extract_strided_slice %294 {offsets = [0, 0], sizes = [8, 32], strides = [1, 1]} : vector<32x32xf32> to vector<8x32xf32>
    %296 = vector.extract_strided_slice %1 {offsets = [0, 0], sizes = [1, 32], strides = [1, 1]} : vector<4x32xf32> to vector<1x32xf32>
    %297 = vector.broadcast %296 : vector<1x32xf32> to vector<8x32xf32>
    %298 = arith.mulf %295, %297 : vector<8x32xf32>
    %299 = vector.extract_strided_slice %294 {offsets = [8, 0], sizes = [8, 32], strides = [1, 1]} : vector<32x32xf32> to vector<8x32xf32>
    %300 = vector.extract_strided_slice %1 {offsets = [1, 0], sizes = [1, 32], strides = [1, 1]} : vector<4x32xf32> to vector<1x32xf32>
    %301 = vector.broadcast %300 : vector<1x32xf32> to vector<8x32xf32>
    %302 = arith.mulf %299, %301 : vector<8x32xf32>
    %303 = arith.addf %298, %302 : vector<8x32xf32>
    %304 = vector.extract_strided_slice %294 {offsets = [16, 0], sizes = [8, 32], strides = [1, 1]} : vector<32x32xf32> to vector<8x32xf32>
    %305 = vector.extract_strided_slice %1 {offsets = [2, 0], sizes = [1, 32], strides = [1, 1]} : vector<4x32xf32> to vector<1x32xf32>
    %306 = vector.broadcast %305 : vector<1x32xf32> to vector<8x32xf32>
    %307 = arith.mulf %304, %306 : vector<8x32xf32>
    %308 = arith.addf %303, %307 : vector<8x32xf32>
    %309 = vector.extract_strided_slice %294 {offsets = [24, 0], sizes = [8, 32], strides = [1, 1]} : vector<32x32xf32> to vector<8x32xf32>
    %310 = vector.extract_strided_slice %1 {offsets = [3, 0], sizes = [1, 32], strides = [1, 1]} : vector<4x32xf32> to vector<1x32xf32>
    %311 = vector.broadcast %310 : vector<1x32xf32> to vector<8x32xf32>
    %312 = arith.mulf %309, %311 : vector<8x32xf32>
    %313 = arith.addf %308, %312 : vector<8x32xf32>
    %cst_103 = arith.constant dense<0.000000e+00> : vector<8x32xf32>
    %314 = tpu.matmul %313, %249, %cst_103 {dimension_numbers = #tpu.dot_dimension_numbers<[1], [0], [0], [1], [0, 0, 1, 1], [], []>} : vector<8x32xf32>, vector<32x32xf32>, vector<8x32xf32> -> vector<8x32xf32>
    %315 = vector.broadcast %250 : vector<1x32xf32> to vector<8x32xf32>
    %316 = arith.addf %314, %315 : vector<8x32xf32>
    %c14 = arith.constant 14 : index
    %c0_104 = arith.constant 0 : index
    %317 = vector.load %arg5[%c14, %c0_104] : memref<23x576xf32, #tpu.memory_space<vmem>>, vector<1x32xf32>
    %c15 = arith.constant 15 : index
    %c0_105 = arith.constant 0 : index
    %318 = vector.load %arg5[%c15, %c0_105] : memref<23x576xf32, #tpu.memory_space<vmem>>, vector<1x32xf32>
    %cst_106 = arith.constant dense<0.000000e+00> : vector<8xf32>
    %319 = vector.multi_reduction <add>, %316, %cst_106 [1] : vector<8x32xf32> to vector<8xf32>
    %320 = vector.shape_cast %319 : vector<8xf32> to vector<8x1xf32>
    %cst_107 = arith.constant 3.200000e+01 : f32
    %321 = vector.broadcast %cst_107 : f32 to vector<8x1xf32>
    %322 = arith.divf %320, %321 : vector<8x1xf32>
    %323 = vector.broadcast %322 : vector<8x1xf32> to vector<8x32xf32>
    %324 = arith.subf %316, %323 : vector<8x32xf32>
    %325 = arith.mulf %324, %324 : vector<8x32xf32>
    %cst_108 = arith.constant dense<0.000000e+00> : vector<8xf32>
    %326 = vector.multi_reduction <add>, %325, %cst_108 [1] : vector<8x32xf32> to vector<8xf32>
    %327 = vector.shape_cast %326 : vector<8xf32> to vector<8x1xf32>
    %cst_109 = arith.constant 3.200000e+01 : f32
    %328 = vector.broadcast %cst_109 : f32 to vector<8x1xf32>
    %329 = arith.divf %327, %328 : vector<8x1xf32>
    %cst_110 = arith.constant 9.99999974E-6 : f32
    %330 = vector.broadcast %cst_110 : f32 to vector<8x1xf32>
    %331 = arith.addf %329, %330 : vector<8x1xf32>
    %332 = math.rsqrt %331 : vector<8x1xf32>
    %333 = vector.broadcast %332 : vector<8x1xf32> to vector<8x32xf32>
    %334 = arith.mulf %324, %333 : vector<8x32xf32>
    %335 = vector.broadcast %317 : vector<1x32xf32> to vector<8x32xf32>
    %336 = arith.mulf %334, %335 : vector<8x32xf32>
    %337 = vector.broadcast %318 : vector<1x32xf32> to vector<8x32xf32>
    %338 = arith.addf %336, %337 : vector<8x32xf32>
    %c0_111 = arith.constant 0 : index
    %c384 = arith.constant 384 : index
    %339 = vector.load %arg3[%c0_111, %c384] : memref<32x1088xf32, #tpu.memory_space<vmem>>, vector<32x128xf32>
    %c16 = arith.constant 16 : index
    %c0_112 = arith.constant 0 : index
    %340 = vector.load %arg5[%c16, %c0_112] : memref<23x576xf32, #tpu.memory_space<vmem>>, vector<1x128xf32>
    %c208 = arith.constant 208 : index
    %c0_113 = arith.constant 0 : index
    %341 = vector.load %arg4[%c208, %c0_113] : memref<944x128xf32, #tpu.memory_space<vmem>>, vector<128x32xf32>
    %c17 = arith.constant 17 : index
    %c0_114 = arith.constant 0 : index
    %342 = vector.load %arg5[%c17, %c0_114] : memref<23x576xf32, #tpu.memory_space<vmem>>, vector<1x32xf32>
    %cst_115 = arith.constant dense<0.000000e+00> : vector<8x128xf32>
    %343 = tpu.matmul %338, %339, %cst_115 {dimension_numbers = #tpu.dot_dimension_numbers<[1], [0], [0], [1], [0, 0, 1, 1], [], []>} : vector<8x32xf32>, vector<32x128xf32>, vector<8x128xf32> -> vector<8x128xf32>
    %344 = vector.broadcast %340 : vector<1x128xf32> to vector<8x128xf32>
    %345 = arith.addf %343, %344 : vector<8x128xf32>
    %cst_116 = arith.constant 5.000000e-01 : f32
    %346 = vector.broadcast %cst_116 : f32 to vector<8x128xf32>
    %347 = arith.mulf %346, %345 : vector<8x128xf32>
    %cst_117 = arith.constant 4.471500e-02 : f32
    %348 = vector.broadcast %cst_117 : f32 to vector<8x128xf32>
    %349 = arith.mulf %348, %345 : vector<8x128xf32>
    %350 = arith.mulf %349, %345 : vector<8x128xf32>
    %351 = arith.mulf %350, %345 : vector<8x128xf32>
    %352 = arith.addf %345, %351 : vector<8x128xf32>
    %cst_118 = arith.constant 0.797884583 : f32
    %353 = vector.broadcast %cst_118 : f32 to vector<8x128xf32>
    %354 = arith.mulf %353, %352 : vector<8x128xf32>
    %355 = math.tanh %354 : vector<8x128xf32>
    %cst_119 = arith.constant 1.000000e+00 : f32
    %356 = vector.broadcast %cst_119 : f32 to vector<8x128xf32>
    %357 = arith.addf %356, %355 : vector<8x128xf32>
    %358 = arith.mulf %347, %357 : vector<8x128xf32>
    %cst_120 = arith.constant dense<0.000000e+00> : vector<8x32xf32>
    %359 = tpu.matmul %358, %341, %cst_120 {dimension_numbers = #tpu.dot_dimension_numbers<[1], [0], [0], [1], [0, 0, 1, 1], [], []>} : vector<8x128xf32>, vector<128x32xf32>, vector<8x32xf32> -> vector<8x32xf32>
    %360 = vector.broadcast %342 : vector<1x32xf32> to vector<8x32xf32>
    %361 = arith.addf %359, %360 : vector<8x32xf32>
    %362 = arith.addf %361, %338 : vector<8x32xf32>
    %c18 = arith.constant 18 : index
    %c0_121 = arith.constant 0 : index
    %363 = vector.load %arg5[%c18, %c0_121] : memref<23x576xf32, #tpu.memory_space<vmem>>, vector<1x32xf32>
    %c19 = arith.constant 19 : index
    %c0_122 = arith.constant 0 : index
    %364 = vector.load %arg5[%c19, %c0_122] : memref<23x576xf32, #tpu.memory_space<vmem>>, vector<1x32xf32>
    %cst_123 = arith.constant dense<0.000000e+00> : vector<8xf32>
    %365 = vector.multi_reduction <add>, %362, %cst_123 [1] : vector<8x32xf32> to vector<8xf32>
    %366 = vector.shape_cast %365 : vector<8xf32> to vector<8x1xf32>
    %cst_124 = arith.constant 3.200000e+01 : f32
    %367 = vector.broadcast %cst_124 : f32 to vector<8x1xf32>
    %368 = arith.divf %366, %367 : vector<8x1xf32>
    %369 = vector.broadcast %368 : vector<8x1xf32> to vector<8x32xf32>
    %370 = arith.subf %362, %369 : vector<8x32xf32>
    %371 = arith.mulf %370, %370 : vector<8x32xf32>
    %cst_125 = arith.constant dense<0.000000e+00> : vector<8xf32>
    %372 = vector.multi_reduction <add>, %371, %cst_125 [1] : vector<8x32xf32> to vector<8xf32>
    %373 = vector.shape_cast %372 : vector<8xf32> to vector<8x1xf32>
    %cst_126 = arith.constant 3.200000e+01 : f32
    %374 = vector.broadcast %cst_126 : f32 to vector<8x1xf32>
    %375 = arith.divf %373, %374 : vector<8x1xf32>
    %cst_127 = arith.constant 9.99999974E-6 : f32
    %376 = vector.broadcast %cst_127 : f32 to vector<8x1xf32>
    %377 = arith.addf %375, %376 : vector<8x1xf32>
    %378 = math.rsqrt %377 : vector<8x1xf32>
    %379 = vector.broadcast %378 : vector<8x1xf32> to vector<8x32xf32>
    %380 = arith.mulf %370, %379 : vector<8x32xf32>
    %381 = vector.broadcast %363 : vector<1x32xf32> to vector<8x32xf32>
    %382 = arith.mulf %380, %381 : vector<8x32xf32>
    %383 = vector.broadcast %364 : vector<1x32xf32> to vector<8x32xf32>
    %384 = arith.addf %382, %383 : vector<8x32xf32>
    %c0_128 = arith.constant 0 : index
    %c512 = arith.constant 512 : index
    %385 = vector.load %arg3[%c0_128, %c512] : memref<32x1088xf32, #tpu.memory_space<vmem>>, vector<32x576xf32>
    %cst_129 = arith.constant dense<0.000000e+00> : vector<8x576xf32>
    %386 = tpu.matmul %384, %385, %cst_129 {dimension_numbers = #tpu.dot_dimension_numbers<[1], [0], [0], [1], [0, 0, 1, 1], [], []>} : vector<8x32xf32>, vector<32x576xf32>, vector<8x576xf32> -> vector<8x576xf32>
    %c20 = arith.constant 20 : index
    %c0_130 = arith.constant 0 : index
    %387 = vector.load %arg5[%c20, %c0_130] : memref<23x576xf32, #tpu.memory_space<vmem>>, vector<1x576xf32>
    %388 = vector.broadcast %387 : vector<1x576xf32> to vector<8x576xf32>
    %389 = arith.addf %386, %388 : vector<8x576xf32>
    %cst_131 = arith.constant 0.000000e+00 : f32
    %390 = vector.broadcast %cst_131 : f32 to vector<8x576xf32>
    %391 = arith.cmpf ogt, %389, %390 : vector<8x576xf32>
    %cst_132 = arith.constant 0.000000e+00 : f32
    %392 = vector.broadcast %cst_132 : f32 to vector<8x576xf32>
    %393 = arith.minimumf %389, %392 : vector<8x576xf32>
    %394 = math.exp %393 : vector<8x576xf32>
    %cst_133 = arith.constant 1.000000e+00 : f32
    %395 = vector.broadcast %cst_133 : f32 to vector<8x576xf32>
    %396 = arith.subf %394, %395 : vector<8x576xf32>
    %397 = arith.select %391, %389, %396 : vector<8x576xi1>, vector<8x576xf32>
    %398 = vector.extract_strided_slice %397 {offsets = [0, 0], sizes = [8, 512], strides = [1, 1]} : vector<8x576xf32> to vector<8x512xf32>
    %c336 = arith.constant 336 : index
    %c0_134 = arith.constant 0 : index
    %399 = vector.load %arg4[%c336, %c0_134] : memref<944x128xf32, #tpu.memory_space<vmem>>, vector<512x40xf32>
    %cst_135 = arith.constant dense<0.000000e+00> : vector<8x40xf32>
    %400 = tpu.matmul %398, %399, %cst_135 {dimension_numbers = #tpu.dot_dimension_numbers<[1], [0], [0], [1], [0, 0, 1, 1], [], []>} : vector<8x512xf32>, vector<512x40xf32>, vector<8x40xf32> -> vector<8x40xf32>
    %c21 = arith.constant 21 : index
    %c0_136 = arith.constant 0 : index
    %401 = vector.load %arg5[%c21, %c0_136] : memref<23x576xf32, #tpu.memory_space<vmem>>, vector<1x40xf32>
    %402 = vector.broadcast %401 : vector<1x40xf32> to vector<8x40xf32>
    %403 = arith.addf %400, %402 : vector<8x40xf32>
    %404 = vector.extract_strided_slice %397 {offsets = [0, 512], sizes = [8, 64], strides = [1, 1]} : vector<8x576xf32> to vector<8x64xf32>
    %c848 = arith.constant 848 : index
    %c0_137 = arith.constant 0 : index
    %405 = vector.load %arg4[%c848, %c0_137] : memref<944x128xf32, #tpu.memory_space<vmem>>, vector<64x1xf32>
    %cst_138 = arith.constant dense<0.000000e+00> : vector<8x1xf32>
    %406 = tpu.matmul %404, %405, %cst_138 {dimension_numbers = #tpu.dot_dimension_numbers<[1], [0], [0], [1], [0, 0, 1, 1], [], []>} : vector<8x64xf32>, vector<64x1xf32>, vector<8x1xf32> -> vector<8x1xf32>
    %c22 = arith.constant 22 : index
    %c0_139 = arith.constant 0 : index
    %407 = vector.load %arg5[%c22, %c0_139] : memref<23x576xf32, #tpu.memory_space<vmem>>, vector<1x1xf32>
    %408 = vector.broadcast %407 : vector<1x1xf32> to vector<8x1xf32>
    %409 = arith.addf %406, %408 : vector<8x1xf32>
    %c936 = arith.constant 936 : index
    %c0_140 = arith.constant 0 : index
    %410 = vector.load %arg4[%c936, %c0_140] : memref<944x128xf32, #tpu.memory_space<vmem>>, vector<2x40xf32>
    %411 = vector.extract_strided_slice %410 {offsets = [0, 0], sizes = [1, 40], strides = [1, 1]} : vector<2x40xf32> to vector<1x40xf32>
    %412 = vector.extract_strided_slice %217 {offsets = [0, 0], sizes = [1, 1], strides = [1, 1]} : vector<1x8xf32> to vector<1x1xf32>
    %413 = vector.broadcast %412 : vector<1x1xf32> to vector<1x40xf32>
    %414 = arith.mulf %411, %413 : vector<1x40xf32>
    %415 = vector.broadcast %414 : vector<1x40xf32> to vector<8x40xf32>
    %416 = arith.addf %403, %415 : vector<8x40xf32>
    %417 = vector.extract_strided_slice %410 {offsets = [1, 0], sizes = [1, 40], strides = [1, 1]} : vector<2x40xf32> to vector<1x40xf32>
    %418 = vector.extract_strided_slice %217 {offsets = [0, 1], sizes = [1, 1], strides = [1, 1]} : vector<1x8xf32> to vector<1x1xf32>
    %419 = vector.broadcast %418 : vector<1x1xf32> to vector<1x40xf32>
    %420 = arith.mulf %417, %419 : vector<1x40xf32>
    %421 = vector.broadcast %420 : vector<1x40xf32> to vector<8x40xf32>
    %422 = arith.addf %416, %421 : vector<8x40xf32>
    %cst_141 = arith.constant 0.000000e+00 : f32
    %423 = vector.broadcast %cst_141 : f32 to vector<8x55xf32>
    %424 = tpu.concatenate %384, %422, %409, %423 in 1 : vector<8x32xf32>, vector<8x40xf32>, vector<8x1xf32>, vector<8x55xf32> -> vector<8x128xf32>
    %c0_142 = arith.constant 0 : index
    %c0_143 = arith.constant 0 : index
    %c0_144 = arith.constant 0 : index
    %425 = vector.load %arg6[%c0_142, %c0_143, %c0_144] : memref<1x8x128xf32, #tpu.memory_space<vmem>>, vector<1x8x128xf32>
    %426 = vector.shape_cast %425 : vector<1x8x128xf32> to vector<8x128xf32>
    %427 = vector.shape_cast %424 : vector<8x128xf32> to vector<1x8x128xf32>
    tpu.vector_store %arg6[%c0_142, %c0_143, %c0_144], %427 {strides = array<i32>} : memref<1x8x128xf32, #tpu.memory_space<vmem>>, vector<1x8x128xf32>,
    return
  }
  func.func @transform_0(%arg0: i32, %arg1: memref<1xi32, #tpu.memory_space<smem>>) -> (i32, i32, i32) {
    %c0_i32 = arith.constant 0 : i32
    %c0_i32_0 = arith.constant 0 : i32
    %c0_i32_1 = arith.constant 0 : i32
    return %arg0, %c0_i32, %c0_i32_0 : i32, i32, i32
  }
  func.func @transform_1(%arg0: i32, %arg1: memref<1xi32, #tpu.memory_space<smem>>) -> (i32, i32) {
    %c0_i32 = arith.constant 0 : i32
    %c0_i32_0 = arith.constant 0 : i32
    %c0_i32_1 = arith.constant 0 : i32
    return %c0_i32, %c0_i32_0 : i32, i32
  }
  func.func @transform_2(%arg0: i32, %arg1: memref<1xi32, #tpu.memory_space<smem>>) -> (i32, i32) {
    %c0_i32 = arith.constant 0 : i32
    %c0_i32_0 = arith.constant 0 : i32
    %c0_i32_1 = arith.constant 0 : i32
    return %c0_i32, %c0_i32_0 : i32, i32
  }
  func.func @transform_3(%arg0: i32, %arg1: memref<1xi32, #tpu.memory_space<smem>>) -> (i32, i32) {
    %c0_i32 = arith.constant 0 : i32
    %c0_i32_0 = arith.constant 0 : i32
    %c0_i32_1 = arith.constant 0 : i32
    return %c0_i32, %c0_i32_0 : i32, i32
  }
  func.func @transform_4(%arg0: i32, %arg1: memref<1xi32, #tpu.memory_space<smem>>) -> (i32, i32, i32) {
    %c0_i32 = arith.constant 0 : i32
    %c0_i32_0 = arith.constant 0 : i32
    %c0_i32_1 = arith.constant 0 : i32
    return %arg0, %c0_i32, %c0_i32_0 : i32, i32, i32
  }
}

</mosaic_0001>

<bundles_post_ra>
// kernel: interaction_decoder_fwd.1
= control target key start
LH: loop header
LB: loop body
LE: loop exit
PB: predicated region body
PF: predicated region fallthrough
CT: control target
= control target key end

     0   :  { %s4349_s20 = smov 0   ;;  %s5410_s0 = inlined_call_operand.<no memory space> [shape: s32[1], index: 0, kind: input, shape index: {}]   ;;  %s5411_s1 = inlined_call_operand.vmem [shape: f32[2,176,128], index: 1, kind: input, shape index: {}]   ;;  %s5412_s2 = inlined_call_operand.vmem [shape: f32[32,1088], index: 2, kind: input, shape index: {}]   ;;  %s5413_s3 = inlined_call_operand.vmem [shape: f32[944,128], index: 3, kind: input, shape index: {}]   ;;  %s5414_s4 = inlined_call_operand.vmem [shape: f32[23,576], index: 4, kind: input, shape index: {}]   ;;  %s5415_s5 = inlined_call_operand.vmem [shape: f32[2,8,128], index: 5, kind: output, shape index: {}]  }
   0x1   :  { %10 = sst [smem:[#allocation3]] %s5410_s0 }
   0x2 LB: > { %s3563_s21 = sadd.s32 4294967295, %s4306_s20   ;;  %p3567_p0 = scmp.ge.s32.totalorder %s4306_s20, 1  ;;  %s4306_s20 = sphi %s4349_s20, %s16_s20  }
   0x3   : > { %p164_p1 = scmp.lt.s32.totalorder %s4306_s20, 3 }
   0x5   : > { %p165_p2 = pnand %p3567_p0, %p164_p1 }
   0x6   : > { %p189_p3 = scmp.lt.s32.totalorder (!%p165_p2), %s3563_s21, 1  ;;  %s4312_s22 = smov (!%p165_p2), 96  }
   0x7   : > { %168 = sbr.rel (%p165_p2) target bundleno = 5453 (0x154d), region = 36  ;;  %s4313_s23 = smov (!%p165_p2), 64  }
   0x8   : > { %s4314_s25 = smov (!%p165_p2), 32   ;;  %s198_s7 = sld [smem:[#allocation3]] (!%p165_p2) }
   0x9   : > { %s4315_s26 = smov (!%p165_p2), 72  }
   0xc   : > { %v4308_v0 = vmov 1   ;;  %v4309_v1 = vmov 0   ;;  %s5417_s21 = smov (!%p189_p3, %s3563_s21), 1  ;;  %vm746_vm0 = vcmask 31744   ;;  %v458_v8 = vld [vmem:[%s5413_s3 + $0x40] sm:$0xff]  ;;  %v457_v9 = vld [vmem:[%s5413_s3 + $0x38] sm:$0xff] }
   0xd   : > { %4215 = vset.pattern.permute.xlu1 %v4308_v0  ;;  %4214 = vset.pattern.permute.xlu0 %v4309_v1  ;;  %s4197_s0 = smul.u32 176, %s5417_s21  ;;  %v456_v10 = vld [vmem:[%s5413_s3 + $0x30] sm:$0xff]  ;;  %v455_v12 = vld [vmem:[%s5413_s3 + $0x28] sm:$0xff]  ;;  %v454_v14 = vld [vmem:[%s5413_s3 + $0x20] sm:$0xff]  ;;  %vm460_vm1 = vcmask 523264   ;;  %vm4311_vm2 = vmmov 0  }
   0xe   : > { %3883 = vmatprep.subr.mxu0 %v458_v8  ;;  %v453_v16 = vld [vmem:[%s5413_s3 + $0x18] sm:$0xff]  ;;  %v452_v17 = vld [vmem:[%s5413_s3 + $0x10] sm:$0xff]  ;;  %v451_v19 = vld [vmem:[%s5413_s3 + $0x8] sm:$0xff]  ;;  %vm671_vm3 = vcmask 64512   ;;  %vm762_vm4 = vcmask 1043456   ;;  %vm840_vm5 = vcmask 130048  }
   0xf   : > { %s4365_s24 = scalar_lea.vmem %s5411_s1, %s4197_s0  ;;  %3884 = vmatpush3.msra.mxu0 %v458_v8  ;;  %v4435_v31 = vld [vmem:[%s5413_s3 + $0x1] ss:$0 sm:$0xff]  ;;  %v4440_v32 = vld [vmem:[%s5413_s3] ss:$0 sm:$0xff]  ;;  %vm920_vm6 = vcmask 261120   ;;  %vm1129_vm7 = vcmask 23552  }
  0x10   : > { %v200_v2 = vld [vmem:[%s4365_s24] sm:$0xff]  ;;  %v4369_v3 = vld [vmem:[%s4365_s24 + $0x88] sm:$0xff]  ;;  %v202_v6 = vld [vmem:[%s4365_s24 + $0x10] sm:$0xff]  ;;  %3885 = vmatprep.subr.mxu0 %v457_v9  ;;  %vm1168_vm8 = vcmask 1042432   ;;  %s3607_s10 = sshll.u32 %s198_s7, 2  ;;  %vm2307_vm13 = vcmask 80896  }
  0x11   : > { %319 = vperm.xlu1 %4215, %v200_v2   ;;  %v747_v4 = vsel %vm746_vm0, %v4369_v3, -inf  ;;  %v201_v5 = vld [vmem:[%s4365_s24 + $0x8] sm:$0xff]  ;;  %v203_v7 = vld [vmem:[%s4365_s24 + $0x18] sm:$0xff]  ;;  %v206_v11 = vld [vmem:[%s4365_s24 + $0x30] sm:$0xff]  ;;  %3886 = vmatpush3.msra.mxu0 %v457_v9  ;;  %vm2377_vm14 = vcmask 1041408   ;;  %s3569_s27 = sshll.u32 %s5417_s21, 3 }
  0x12   : > { %748 = vmax.xlane.f32.xlu0 %v747_v4  ;;  %3887 = vmatprep.subr.mxu0 %v456_v10  ;;  %v209_v13 = vld [vmem:[%s4365_s24 + $0x48] sm:$0xff]  ;;  %v204_v15 = vld [vmem:[%s4365_s24 + $0x20] sm:$0xff]  ;;  %v210_v18 = vld [vmem:[%s4365_s24 + $0x50] sm:$0xff]  ;;  %s197_s30 = scalar_lea.vmem %s5415_s5, %s3569_s27 }
  0x13   : > { %3888 = vmatpush3.msra.mxu0 %v456_v10  ;;  %v211_v20 = vld [vmem:[%s4365_s24 + $0x58] sm:$0xff]  ;;  %v212_v21 = vld [vmem:[%s4365_s24 + $0x60] sm:$0xff]  ;;  %v205_v22 = vld [vmem:[%s4365_s24 + $0x28] sm:$0xff] }
  0x14   : > { %3889 = vmatprep.subr.mxu0 %v455_v12  ;;  %v213_v23 = vld [vmem:[%s4365_s24 + $0x68] sm:$0xff]  ;;  %v208_v24 = vld [vmem:[%s4365_s24 + $0x40] sm:$0xff]  ;;  %v207_v25 = vld [vmem:[%s4365_s24 + $0x38] sm:$0xff] }
  0x15   : > { %4216 = vset.pattern.permute.xlu1 %v4309_v1  ;;  %3890 = vmatpush3.msra.mxu0 %v455_v12  ;;  %v4425_v26 = vld [vmem:[%s4365_s24 + $0x78] sm:$0xff]  ;;  %v214_v27 = vld [vmem:[%s4365_s24 + $0x70] sm:$0xff]  ;;  %v4451_v44 = vld [vmem:[%s5414_s4] ss:$0 sm:$0xff] }
  0x16   : > { %225 = vperm.xlu1 %4216, %v201_v5   ;;  %3891 = vmatprep.subr.mxu0 %v454_v14 }
  0x17   : > { %3892 = vmatpush3.msra.mxu0 %v454_v14 }
  0x18   : > { %3893 = vmatprep.subr.mxu0 %v453_v16 }
  0x19   : > { %3894 = vmatpush3.msra.mxu0 %v453_v16 }
  0x1a   : > { %4217 = vset.pattern.permute.xlu1 %v4308_v0  ;;  %3895 = vmatprep.subr.mxu0 %v452_v17 }
  0x1b   : > { %323 = vperm.xlu1 %4217, %v201_v5   ;;  %3896 = vmatpush3.msra.mxu0 %v452_v17 }
  0x1c   : > { %3897 = vmatprep.subr.mxu0 %v451_v19 }
  0x1d   : > { %3898 = vmatpush3.msra.mxu0 %v451_v19 }
  0x1f   : > { %4218 = vset.pattern.permute.xlu1 %v4309_v1 }
  0x20   : > { %230 = vperm.xlu1 %4218, %v202_v6  }
  0x24   : > { %4219 = vset.pattern.permute.xlu1 %v4308_v0 }
  0x25   : > { %327 = vperm.xlu1 %4219, %v202_v6  }
  0x28   : > { %220 = vperm.xlu0 %4214, %v200_v2  }
  0x29   : > { %4220 = vset.pattern.permute.xlu1 %v4309_v1 }
  0x2a   : > { %235 = vperm.xlu1 %4220, %v203_v7  }
  0x2c   : > { %4227 = vset.pattern.permute.xlu0 %v4308_v0 }
  0x2d   : > { %343 = vperm.xlu0 %4227, %v206_v11  }
  0x2e   : > { %4221 = vset.pattern.permute.xlu1 %v4308_v0 }
  0x2f   : > { %331 = vperm.xlu1 %4221, %v203_v7  }
  0x31   : > { %355 = vperm.xlu0 %4227, %v209_v13  }
  0x33   : > { %4222 = vset.pattern.permute.xlu1 %v4309_v1 }
  0x34   : > { %240 = vperm.xlu1 %4222, %v204_v15  }
  0x35   : > { %359 = vperm.xlu0 %4227, %v210_v18  }
  0x38   : > { %4223 = vset.pattern.permute.xlu1 %v4308_v0 }
  0x39   : > { %335 = vperm.xlu1 %4223, %v204_v15   ;;  %363 = vperm.xlu0 %4227, %v211_v20  }
  0x3d   : > { %4224 = vset.pattern.permute.xlu1 %v4309_v1  ;;  %367 = vperm.xlu0 %4227, %v212_v21  }
  0x3e   : > { %245 = vperm.xlu1 %4224, %v205_v22  }
  0x41   : > { %371 = vperm.xlu0 %4227, %v213_v23  }
  0x42   : > { %4225 = vset.pattern.permute.xlu1 %v4308_v0 }
  0x43   : > { %339 = vperm.xlu1 %4225, %v205_v22  }
  0x45   : > { %4230 = vset.pattern.permute.xlu0 %v4309_v1 }
  0x46   : > { %260 = vperm.xlu0 %4230, %v208_v24  }
  0x47   : > { %4226 = vset.pattern.permute.xlu1 %v4309_v1 }
  0x48   : > { %250 = vperm.xlu1 %4226, %v206_v11  }
  0x4a   : > { %270 = vperm.xlu0 %4230, %v210_v18  }
  0x4c   : > { %255 = vperm.xlu1 %4226, %v207_v25  }
  0x4e   : > { %275 = vperm.xlu0 %4230, %v211_v20   ;;  %v4310_v20 = vmov 0.0  }
  0x4f   : > { %3923 = vmatprep.subr.mxu1 %v4310_v20  ;;  %3989 = vmatprep.subr.mxu0 %v4310_v20 }
  0x50   : > { %4228 = vset.pattern.permute.xlu1 %v4308_v0  ;;  %3925 = vmatprep.mubr.msk.f32.mxu1 %vm4311_vm2, %v4310_v20 }
  0x51   : > { %347 = vperm.xlu1 %4228, %v207_v25  }
  0x52   : > { %285 = vperm.xlu0 %4230, %v213_v23   ;;  %v4488_v23 = vld [vmem:[%s4365_s24 + $0x80] sm:$0xff] }
  0x55   : > { %351 = vperm.xlu1 %4228, %v208_v24  }
  0x56   : > { %295 = vperm.xlu0 %4230, %v4425_v26  }
  0x59   : > { %4229 = vset.pattern.permute.xlu1 %v4309_v1 }
  0x5a   : > { %265 = vperm.xlu1 %4229, %v209_v13   ;;  %4233 = vset.pattern.permute.xlu0 %v4308_v0 }
  0x5e   : > { %280 = vperm.xlu1 %4229, %v212_v21   ;;  %v669_v21 = vld [vmem:[%s5413_s3 + $0x48] sm:$0xff] }
  0x5f   : > { %3924 = vmatpush3.msra.mxu1 %v669_v21 }
  0x60   : > { %3926 = vmatmul.mubr.msk.f32.vlgmr.msra.gmra.mxu1 %vm671_vm3, %v4488_v23  ;;  %3928 = vmatprep.subr.mxu1 %v4310_v20 }
  0x61   : > { %3930 = vmatprep.mubr.msk.f32.mxu1 %vm4311_vm2, %v4310_v20 }
  0x62   : > { %290 = vperm.xlu1 %4229, %v214_v27  }
  0x66   : > { %4231 = vset.pattern.permute.xlu1 %v4308_v0 }
  0x67   : > { %375 = vperm.xlu1 %4231, %v214_v27  }
  0x8c   : > { %v320_v28 = vpop.permute.xlu1 %319 }
  0x8d   : > { %v386_v43 = vmul.f32 %v4435_v31, %v320_v28  ;;  %v758_v28 = vld [vmem:[%s5413_s3 + $0x390] sm:$0xf] }
  0x8e   : > { %3929 = vmatpush3.msk.msra.mxu1 %vm762_vm4, %v758_v28 }
  0x8f   : > { %3933 = vmatprep.subr.mxu1 %v4310_v20 }
  0x91   : > { %v226_v29 = vpop.permute.xlu1 %225 }
  0x92   : > { %v303_v36 = vmul.f32 %v4440_v32, %v226_v29 }
  0x96   : > { %v324_v30 = vpop.permute.xlu1 %323 }
  0x97   : > { %v387_v37 = vmul.f32 %v4435_v31, %v324_v30 }
  0x99   : > { %v403_v41 = vadd.f32 %v387_v37, %v303_v36 }
  0x9b   : > { %v749_v33 = vpop.xlane.xlu0 %748  ;;  %v231_v34 = vpop.permute.xlu1 %230  ;;  %v420_v48 = vadd.f32 %v4451_v44, %v403_v41 }
  0x9c   : > { %v750_v35 = vsub.f32 %v4369_v3, %v749_v33  ;;  %v304_v39 = vmul.f32 %v4440_v32, %v231_v34 }
  0x9d   : > { %v436_v54 = vmax.f32 %v420_v48, 0.0 }
  0x9e   : > { %v751_v38 = vmul.f32 1.442695, %v750_v35 }
  0xa0   : > { %4234 = vpow2.f32 %v751_v38  ;;  %v328_v40 = vpop.permute.xlu1 %327 }
  0xa1   : > { %v388_v42 = vmul.f32 %v4435_v31, %v328_v40 }
  0xa3   : > { %v404_v45 = vadd.f32 %v388_v42, %v304_v39  ;;  %v221_v46 = vpop.permute.xlu0 %220 }
  0xa4   : > { %v302_v47 = vmul.f32 %v4440_v32, %v221_v46 }
  0xa5   : > { %v236_v49 = vpop.permute.xlu1 %235  ;;  %v421_v50 = vadd.f32 %v4451_v44, %v404_v45 }
  0xa6   : > { %v402_v51 = vadd.f32 %v386_v43, %v302_v47  ;;  %v305_v55 = vmul.f32 %v4440_v32, %v236_v49 }
  0xa7   : > { %v437_v56 = vmax.f32 %v421_v50, 0.0 }
  0xa8   : > { %v419_v52 = vadd.f32 %v4451_v44, %v402_v51  ;;  %v344_v53 = vpop.permute.xlu0 %343 }
  0xa9   : > { %v392_v22 = vmul.f32 %v4435_v31, %v344_v53 }
  0xaa   : > { %v332_v57 = vpop.permute.xlu1 %331  ;;  %v435_v58 = vmax.f32 %v419_v52, 0.0 }
  0xab   : > { %v389_v59 = vmul.f32 %v4435_v31, %v332_v57 }
  0xac   : > { %3899 = vmatprep.mubr.msk.f32.mxu0 %vm460_vm1, %v435_v58  ;;  %v4460_v60 = vpop.permute.xlu0 %355 }
  0xad   : > { %v4462_v61 = vpop.eup %4234  ;;  %v405_v62 = vadd.f32 %v389_v59, %v305_v55  ;;  %3900 = vmatmul.mubr.msk.f32.vlgmr.msra.gmra.mxu0 %vm460_vm1, %v436_v54  ;;  %v395_v53 = vmul.f32 %v4435_v31, %v4460_v60 }
  0xae   : > { %v753_v63 = vsel %vm746_vm0, %v4462_v61, 0.0  ;;  %3902 = vmatprep.mubr.msk.f32.mxu0 %vm460_vm1, %v437_v56 }
  0xaf   : > { %v422_v0 = vadd.f32 %v4451_v44, %v405_v62  ;;  %754 = vadd.xlane.f32.xlu1 %v753_v63  ;;  %v241_v2 = vpop.permute.xlu1 %240 }
  0xb0   : > { %v360_v3 = vpop.permute.xlu0 %359  ;;  %v306_v5 = vmul.f32 %v4440_v32, %v241_v2 }
  0xb1   : > { %v438_v4 = vmax.f32 %v422_v0, 0.0  ;;  %v396_v39 = vmul.f32 %v4435_v31, %v360_v3 }
  0xb3   : > { %3903 = vmatmul.mubr.msk.f32.gmra.mxu0 %vm460_vm1, %v438_v4 }
  0xb4   : > { %v336_v6 = vpop.permute.xlu1 %335  ;;  %v364_v7 = vpop.permute.xlu0 %363 }
  0xb5   : > { %v390_v8 = vmul.f32 %v4435_v31, %v336_v6  ;;  %v397_v47 = vmul.f32 %v4435_v31, %v364_v7 }
  0xb7   : > { %v406_v9 = vadd.f32 %v390_v8, %v306_v5 }
  0xb8   : > { %v4472_v10 = vpop.permute.xlu0 %367 }
  0xb9   : > { %v423_v11 = vadd.f32 %v4451_v44, %v406_v9  ;;  %v246_v12 = vpop.permute.xlu1 %245  ;;  %v398_v0 = vmul.f32 %v4435_v31, %v4472_v10 }
  0xba   : > { %v307_v15 = vmul.f32 %v4440_v32, %v246_v12 }
  0xbb   : > { %v439_v13 = vmax.f32 %v423_v11, 0.0 }
  0xbc   : > { %v372_v14 = vpop.permute.xlu0 %371 }
  0xbd   : > { %3905 = vmatprep.mubr.msk.f32.mxu0 %vm460_vm1, %v439_v13  ;;  %v399_v56 = vmul.f32 %v4435_v31, %v372_v14 }
  0xbe   : > { %v340_v16 = vpop.permute.xlu1 %339 }
  0xbf   : > { %v391_v17 = vmul.f32 %v4435_v31, %v340_v16 }
  0xc0   : > { %379 = vperm.xlu1 %4231, %v4425_v26  }
  0xc1   : > { %v407_v18 = vadd.f32 %v391_v17, %v307_v15  ;;  %v261_v19 = vpop.permute.xlu0 %260 }
  0xc2   : > { %v310_v41 = vmul.f32 %v4440_v32, %v261_v19 }
  0xc3   : > { %v424_v24 = vadd.f32 %v4451_v44, %v407_v18  ;;  %v251_v25 = vpop.permute.xlu1 %250 }
  0xc4   : > { %v308_v26 = vmul.f32 %v4440_v32, %v251_v25  ;;  %4232 = vset.pattern.permute.xlu1 %v4309_v1 }
  0xc5   : > { %v440_v27 = vmax.f32 %v424_v24, 0.0  ;;  %v271_v33 = vpop.permute.xlu0 %270 }
  0xc6   : > { %v408_v29 = vadd.f32 %v392_v22, %v308_v26  ;;  %v312_v42 = vmul.f32 %v4440_v32, %v271_v33 }
  0xc7   : > { %3906 = vmatmul.mubr.msk.f32.gmra.mxu0 %vm460_vm1, %v440_v27  ;;  %v256_v30 = vpop.permute.xlu1 %255 }
  0xc8   : > { %v425_v34 = vadd.f32 %v4451_v44, %v408_v29  ;;  %v309_v36 = vmul.f32 %v4440_v32, %v256_v30  ;;  %v412_v51 = vadd.f32 %v396_v39, %v312_v42 }
  0xc9   : > { %v276_v38 = vpop.permute.xlu0 %275 }
  0xca   : > { %v441_v35 = vmax.f32 %v425_v34, 0.0  ;;  %v313_v48 = vmul.f32 %v4440_v32, %v276_v38  ;;  %v429_v63 = vadd.f32 %v4451_v44, %v412_v51 }
  0xcc   : > { %v348_v1 = vpop.permute.xlu1 %347  ;;  %3908 = vmatprep.mubr.msk.f32.mxu0 %vm460_vm1, %v441_v35  ;;  %v413_v58 = vadd.f32 %v397_v47, %v313_v48  ;;  %v445_v7 = vmax.f32 %v429_v63, 0.0 }
  0xcd   : > { %v393_v37 = vmul.f32 %v4435_v31, %v348_v1  ;;  %v286_v52 = vpop.permute.xlu0 %285 }
  0xce   : > { %v315_v59 = vmul.f32 %v4440_v32, %v286_v52  ;;  %v430_v4 = vadd.f32 %v4451_v44, %v413_v58 }
  0xcf   : > { %v409_v40 = vadd.f32 %v393_v37, %v309_v36 }
  0xd0   : > { %v352_v43 = vpop.permute.xlu1 %351  ;;  %v415_v6 = vadd.f32 %v399_v56, %v315_v59  ;;  %v446_v12 = vmax.f32 %v430_v4, 0.0 }
  0xd1   : > { %v426_v45 = vadd.f32 %v4451_v44, %v409_v40  ;;  %v394_v46 = vmul.f32 %v4435_v31, %v352_v43  ;;  %v296_v25 = vpop.permute.xlu0 %295 }
  0xd2   : > { %v432_v10 = vadd.f32 %v4451_v44, %v415_v6  ;;  %v317_v27 = vmul.f32 %v4440_v32, %v296_v25 }
  0xd3   : > { %v442_v49 = vmax.f32 %v426_v45, 0.0  ;;  %v410_v50 = vadd.f32 %v394_v46, %v310_v41 }
  0xd4   : > { %v448_v16 = vmax.f32 %v432_v10, 0.0 }
  0xd5   : > { %v427_v54 = vadd.f32 %v4451_v44, %v410_v50  ;;  %v266_v55 = vpop.permute.xlu1 %265  ;;  %3909 = vmatmul.mubr.msk.f32.gmra.mxu0 %vm460_vm1, %v442_v49 }
  0xd6   : > { %v311_v57 = vmul.f32 %v4440_v32, %v266_v55 }
  0xd7   : > { %v443_v62 = vmax.f32 %v427_v54, 0.0 }
  0xd8   : > { %v411_v2 = vadd.f32 %v395_v53, %v311_v57 }
  0xd9   : > { %v281_v60 = vpop.permute.xlu1 %280  ;;  %3911 = vmatprep.mubr.msk.f32.mxu0 %vm460_vm1, %v443_v62 }
  0xda   : > { %v428_v3 = vadd.f32 %v4451_v44, %v411_v2  ;;  %v314_v5 = vmul.f32 %v4440_v32, %v281_v60 }
  0xdc   : > { %v444_v8 = vmax.f32 %v428_v3, 0.0  ;;  %v414_v9 = vadd.f32 %v398_v0, %v314_v5 }
  0xdd   : > { %v291_v11 = vpop.permute.xlu1 %290 }
  0xde   : > { %v431_v13 = vadd.f32 %v4451_v44, %v414_v9  ;;  %3912 = vmatmul.mubr.msk.f32.gmra.mxu0 %vm460_vm1, %v444_v8  ;;  %v316_v15 = vmul.f32 %v4440_v32, %v291_v11 }
  0xdf   : > { %3914 = vmatprep.mubr.msk.f32.mxu0 %vm460_vm1, %v445_v7 }
  0xe0   : > { %v447_v14 = vmax.f32 %v431_v13, 0.0 }
  0xe2   : > { %3915 = vmatmul.mubr.msk.f32.gmra.mxu0 %vm460_vm1, %v446_v12  ;;  %v376_v17 = vpop.permute.xlu1 %375 }
  0xe3   : > { %3917 = vmatprep.mubr.msk.f32.mxu0 %vm460_vm1, %v447_v14  ;;  %v400_v18 = vmul.f32 %v4435_v31, %v376_v17 }
  0xe5   : > { %v416_v19 = vadd.f32 %v400_v18, %v316_v15  ;;  %v836_v15 = vld [vmem:[%s5413_s3 + $0x398] sm:$0xff] }
  0xe6   : > { %3918 = vmatmul.mubr.msk.f32.gmra.mxu0 %vm460_vm1, %v448_v16 }
  0xe7   : > { %v433_v21 = vadd.f32 %v4451_v44, %v416_v19 }
  0xe9   : > { %v449_v22 = vmax.f32 %v433_v21, 0.0 }
  0xeb   : > { %3920 = vmatprep.mubr.msk.f32.mxu0 %vm460_vm1, %v449_v22 }
 0x120   : > { %v4549_v32 = vpop.f32.mrf.mxu1 }
 0x138   : > { %v755_v24 = vpop.xlane.xlu1 %754 }
 0x139   : > { %4236 = vrcp.f32 %v755_v24 }
 0x13c   : > { %v380_v26 = vpop.permute.xlu1 %379 }
 0x13d   : > { %v401_v28 = vmul.f32 %v4435_v31, %v380_v26  ;;  %v3927_v31 = vpop.f32.mrf.mxu1  ;;  %v4567_v26 = vld [vmem:[%s5412_s2 + $0xd8] sm:$0xff] }
 0x13f   : > { %v417_v29 = vadd.f32 %v401_v28, %v317_v27  ;;  %v4574_v27 = vld [vmem:[%s5412_s2 + $0x90] sm:$0xff]  ;;  %v4585_v28 = vld [vmem:[%s5412_s2 + $0x48] sm:$0xff] }
 0x141   : > { %v434_v30 = vadd.f32 %v4451_v44, %v417_v29  ;;  %v4592_v29 = vld [vmem:[%s5412_s2] sm:$0xff] }
 0x143   : > { %v450_v33 = vmax.f32 %v434_v30, 0.0  ;;  %v670_v30 = vld [vmem:[%s5414_s4 + $0x2] ss:$0 sm:$0xff] }
 0x145   : > { %3921 = vmatmul.mubr.msk.f32.gmra.mxu0 %vm460_vm1, %v450_v33  ;;  %v4599_v33 = vadd.f32 %v4549_v32, %v670_v30  ;;  %v199_v32 = vld [vmem:[%s5413_s3 + $0x3a0] sm:$0xf] }
 0x146   : > { %v4237_v34 = vpop.eup %4236  ;;  %4021 = vmatprep.mubr.msk.f32.mxu0 %vm4311_vm2, %v4310_v20 }
 0x147   : > { %v757_v35 = vmul.f32 %v4237_v34, %v4462_v61  ;;  %v459_v61 = vld [vmem:[%s5414_s4 + $0x1] ss:$0 sm:$0xff]  ;;  %v839_v34 = vmul.f32 0.25, %v4599_v33 }
 0x149   : > { %3931 = vmatmul.mubr.msk.f32.vlgmr.msra.gmra.mxu1 %vm746_vm0, %v757_v35 }
 0x14a   : > { %3937 = vmatprep.mubr.msk.f32.mxu1 %vm4311_vm2, %v4310_v20 }
 0x16d   : > { %v3901_v36 = vpop.f32.mrf.mxu0 }
 0x16e   : > { %v581_v46 = vadd.f32 %v3901_v36, %v459_v61 }
 0x16f   : > { %v575_v1 = vpop.f32.mrf.mxu0 }
 0x170   : > { %v576_v49 = vadd.f32 %v575_v1, %v459_v61  ;;  %v995_v1 = vlaneseq }
 0x173   : > { %v3904_v44 = vpop.f32.mrf.mxu0 }
 0x174   : > { %v591_v47 = vadd.f32 %v3904_v44, %v459_v61  ;;  %v4607_v44 = vshrl.u32 %v995_v1, 7 }
 0x175   : > { %v585_v37 = vpop.f32.mrf.mxu0 }
 0x176   : > { %v586_v50 = vadd.f32 %v585_v37, %v459_v61  ;;  %v655_v52 = vmax.f32 %v581_v46, %v591_v47  ;;  %v4610_v37 = vsub.s32 0, %v4607_v44  ;;  %v1012_v47 = vsub.s32 3, %v4607_v44 }
 0x177   : > { %vm1595_vm10 = vcmp.lt.s32.totalorder %v4607_v44, 4 }
 0x178   : > { %v654_v56 = vmax.f32 %v576_v49, %v586_v50 }
 0x187   : > { %v3907_v38 = vpop.f32.mrf.mxu0 }
 0x188   : > { %v601_v51 = vadd.f32 %v3907_v38, %v459_v61  ;;  %v919_v38 = vld [vmem:[%s5414_s4 + $0x3] ss:$0 sm:$0xff] }
 0x189   : > { %v595_v39 = vpop.f32.mrf.mxu0 }
 0x18a   : > { %v596_v53 = vadd.f32 %v595_v39, %v459_v61  ;;  %v657_v57 = vmax.f32 %v655_v52, %v601_v51  ;;  %v4619_v39 = vrot.slane %v199_v32, %v4610_v37  ;;  %v4641_v51 = vrot.slane %v199_v32, %v1012_v47 }
 0x18c   : > { %v656_v62 = vmax.f32 %v654_v56, %v596_v53 }
 0x195   : > { %v3910_v40 = vpop.f32.mrf.mxu0 }
 0x196   : > { %v611_v54 = vadd.f32 %v3910_v40, %v459_v61 }
 0x197   : > { %v605_v41 = vpop.f32.mrf.mxu0 }
 0x198   : > { %v606_v58 = vadd.f32 %v605_v41, %v459_v61  ;;  %v659_v63 = vmax.f32 %v657_v57, %v611_v54 }
 0x19a   : > { %v658_v3 = vmax.f32 %v656_v62, %v606_v58 }
 0x19e   : > { %v3913_v42 = vpop.f32.mrf.mxu0 }
 0x19f   : > { %v621_v59 = vadd.f32 %v3913_v42, %v459_v61 }
 0x1a0   : > { %v615_v43 = vpop.f32.mrf.mxu0 }
 0x1a1   : > { %v616_v0 = vadd.f32 %v615_v43, %v459_v61  ;;  %v661_v4 = vmax.f32 %v659_v63, %v621_v59 }
 0x1a2   : > { %v3916_v45 = vpop.f32.mrf.mxu0 }
 0x1a3   : > { %v631_v2 = vadd.f32 %v3916_v45, %v459_v61  ;;  %v660_v7 = vmax.f32 %v658_v3, %v616_v0  ;;  %v1007_v45 = vsub.s32 2, %v4607_v44 }
 0x1a4   : > { %v625_v48 = vpop.f32.mrf.mxu0 }
 0x1a5   : > { %v626_v5 = vadd.f32 %v625_v48, %v459_v61  ;;  %v663_v8 = vmax.f32 %v661_v4, %v631_v2  ;;  %v4634_v49 = vrot.slane %v199_v32, %v1007_v45 }
 0x1a6   : > { %v3919_v55 = vpop.f32.mrf.mxu0 }
 0x1a7   : > { %v641_v6 = vadd.f32 %v3919_v55, %v459_v61  ;;  %v662_v12 = vmax.f32 %v660_v7, %v626_v5  ;;  %v3598_v55 = vld [vmem:[%s4365_s24 + $0xa8] ss:$0 sm:$0xff] }
 0x1a8   : > { %v635_v60 = vpop.f32.mrf.mxu0 }
 0x1a9   : > { %v636_v9 = vadd.f32 %v635_v60, %v459_v61  ;;  %v665_v13 = vmax.f32 %v663_v8, %v641_v6 }
 0x1ab   : > { %v664_v16 = vmax.f32 %v662_v12, %v636_v9 }
 0x205   : > { %v3922_v11 = vpop.f32.mrf.mxu0 }
 0x206   : > { %v651_v10 = vadd.f32 %v3922_v11, %v459_v61 }
 0x207   : > { %v645_v14 = vpop.f32.mrf.mxu0 }
 0x208   : > { %v4557_v17 = vmax.f32 %v665_v13, %v651_v10  ;;  %v646_v18 = vadd.f32 %v645_v14, %v459_v61  ;;  %v4625_v61 = vsub.s32 1, %v4607_v44 }
 0x209   : > { %v832_v19 = vpop.f32.mrf.mxu1 }
 0x20a   : > { %v4559_v21 = vmax.f32 %v664_v16, %v646_v18  ;;  %v837_v22 = vmul.f32 %v836_v15, %v832_v19  ;;  %3934 = vmatpush3.msra.mxu1 %v4557_v17  ;;  %v4629_v46 = vrot.slane %v199_v32, %v4625_v61 }
 0x20b   : > { %v3932_v24 = vpop.f32.mrf.mxu1  ;;  %3935 = vmatprep.subr.mxu1 %v4310_v20 }
 0x20c   : > { %v838_v25 = vmul.f32 0.25, %v837_v22  ;;  %3936 = vmatpush3.msra.mxu1 %v4559_v21 }
 0x20d   : > { %3940 = vmatprep.subr.mxu1 %v4310_v20 }
 0x20e   : > { %3938 = vmatmul.mubr.msk.f32.vlgmr.msra.gmra.mxu1 %vm840_vm5, %v838_v25 }
 0x20f   : > { %3941 = vmatpush3.msra.mxu1 %v4567_v26  ;;  %3948 = vmatprep.mubr.msk.f32.mxu1 %vm4311_vm2, %v4310_v20 }
 0x210   : > { %3942 = vmatprep.subr.mxu1 %v4310_v20 }
 0x211   : > { %3943 = vmatpush3.msra.mxu1 %v4574_v27 }
 0x212   : > { %3944 = vmatprep.subr.mxu1 %v4310_v20 }
 0x213   : > { %3945 = vmatpush3.msra.mxu1 %v4585_v28 }
 0x214   : > { %3946 = vmatprep.subr.mxu1 %v4310_v20 }
 0x215   : > { %3947 = vmatpush3.msra.mxu1 %v4592_v29 }
 0x2ce   : > { %v910_v35 = vpop.f32.mrf.mxu1 }
 0x2cf   : > { %v4602_v31 = vadd.f32 %v910_v35, %v839_v34 }
 0x2d0   : > { %v3939_v36 = vpop.f32.mrf.mxu1 }
 0x2d1   : > { %3949 = vmatmul.mubr.msk.f32.vlgmr.msra.gmra.mxu1 %vm920_vm6, %v4602_v31 }
 0x391   : > { %v990_v40 = vpop.f32.mrf.mxu1 }
 0x392   : > { %v991_v41 = vadd.f32 %v990_v40, %v919_v38 }
 0x393   : > { %v3950_v42 = vpop.f32.mrf.mxu1 }
 0x394   : > { %1016 = vrot.lane.b32.xlu1 %v991_v41, %s4312_s22  ;;  %v999_v43 = vmul.f32 %v4619_v39, %v991_v41  ;;  %v1004_v50 = vmul.f32 %v4629_v46, %v991_v41  ;;  %v1009_v52 = vmul.f32 %v4634_v49, %v991_v41  ;;  %v1014_v53 = vmul.f32 %v4641_v51, %v991_v41 }
 0x396   : > { %3953 = vmatprep.mubr.msk.f32.mxu1 %vm920_vm6, %v999_v43 }
 0x406   : > { %v1017_v48 = vpop.permute.xlu1 %1016 }
 0x407   : > { %3951 = vmatprep.subr.msk.mxu1 %vm920_vm6, %v1017_v48 }
 0x408   : > { %3952 = vmatpush3.xpose.msk.msra.mxu1 %vm920_vm6, %v1017_v48 }
 0x40b   : > { %3954 = vmatmul.mubr.msk.f32.vlgmr.msra.gmra.mxu1 %vm920_vm6, %v1004_v50 }
 0x40c   : > { %3956 = vmatprep.mubr.msk.f32.mxu1 %vm920_vm6, %v1009_v52 }
 0x40f   : > { %3957 = vmatmul.mubr.msk.f32.gmra.mxu1 %vm920_vm6, %v1014_v53 }
 0x4cb   : > { %v3955_v54 = vpop.f32.mrf.mxu1 }
 0x4cc   : > { %v1118_v56 = vmul.f32 0.35355338, %v3955_v54 }
 0x4cd   : > { %v1098_v57 = vpop.f32.mrf.mxu1 }
 0x4ce   : > { %v1117_v58 = vmul.f32 0.35355338, %v1098_v57  ;;  %v1126_v59 = vadd.f32 %v3598_v55, %v1118_v56 }
 0x4cf   : > { %v3958_v62 = vpop.f32.mrf.mxu1 }
 0x4d0   : > { %v1133_v63 = vsel %vm1129_vm7, %v1126_v59, -inf  ;;  %v1125_v0 = vadd.f32 %v3598_v55, %v1117_v58  ;;  %v1120_v60 = vmul.f32 0.35355338, %v3958_v62 }
 0x4d1   : > { %1134 = vmax.xlane.f32.xlu1 %v1133_v63  ;;  %v1108_v2 = vpop.f32.mrf.mxu1 }
 0x4d2   : > { %v1119_v3 = vmul.f32 0.35355338, %v1108_v2  ;;  %v1130_v4 = vsel %vm1129_vm7, %v1125_v0, -inf  ;;  %v1128_v7 = vadd.f32 %v3598_v55, %v1120_v60 }
 0x4d3   : > { %1131 = vmax.xlane.f32.xlu0 %v1130_v4 }
 0x4d4   : > { %v1127_v5 = vadd.f32 %v3598_v55, %v1119_v3  ;;  %v1139_v8 = vsel %vm1129_vm7, %v1128_v7, -inf }
 0x4d6   : > { %v1136_v6 = vsel %vm1129_vm7, %v1127_v5, -inf }
 0x4d7   : > { %1137 = vmax.xlane.f32.xlu0 %v1136_v6 }
 0x4db   : > { %1140 = vmax.xlane.f32.xlu0 %v1139_v8 }
 0x4e2   : > { %1154 = vrot.lane.b32.xlu1 %v991_v41, %s4313_s23 }
 0x4e6   : > { %1293 = vrot.lane.b32.xlu1 %v4567_v26, %s4314_s25 }
 0x4ea   : > { %1289 = vrot.lane.b32.xlu1 %v4585_v28, %s4314_s25 }
 0x4ee   : > { %1287 = vrot.lane.b32.xlu1 %v4592_v29, %s4314_s25 }
 0x55a   : > { %v1135_v9 = vpop.xlane.xlu1 %1134 }
 0x55b   : > { %v1143_v11 = vsub.f32 %v1126_v59, %v1135_v9  ;;  %v994_v9 = vld [vmem:[%s5414_s4 + $0x4] ss:$0 sm:$0xff] }
 0x55c   : > { %v1132_v12 = vpop.xlane.xlu0 %1131 }
 0x55d   : > { %v1148_v13 = vmul.f32 1.442695, %v1143_v11  ;;  %v1142_v10 = vsub.f32 %v1125_v0, %v1132_v12 }
 0x55e   : > { %v1155_v14 = vpop.permute.xlu1 %1154 }
 0x55f   : > { %4238 = vpow2.f32 %v1148_v13  ;;  %v1146_v15 = vmul.f32 1.442695, %v1142_v10  ;;  %3959 = vmatprep.subr.msk.mxu1 %vm1168_vm8, %v1155_v14 }
 0x560   : > { %3960 = vmatpush3.msk.msra.mxu1 %vm1168_vm8, %v1155_v14  ;;  %v1138_v16 = vpop.xlane.xlu0 %1137 }
 0x561   : > { %4240 = vpow2.f32 %v1146_v15  ;;  %v1144_v18 = vsub.f32 %v1127_v5, %v1138_v16  ;;  %3967 = vmatprep.subr.mxu1 %v4310_v20 }
 0x562   : > { %v1294_v38 = vpop.permute.xlu1 %1293 }
 0x563   : > { %v1150_v19 = vmul.f32 1.442695, %v1144_v18 }
 0x564   : > { %v1141_v22 = vpop.xlane.xlu0 %1140 }
 0x565   : > { %4242 = vpow2.f32 %v1150_v19  ;;  %v1145_v24 = vsub.f32 %v1128_v7, %v1141_v22 }
 0x566   : > { %v1290_v48 = vpop.permute.xlu1 %1289 }
 0x567   : > { %v1152_v25 = vmul.f32 1.442695, %v1145_v24  ;;  %v1394_v24 = vld [vmem:[%s5412_s2 + $0xe0] sm:$0xff] }
 0x569   : > { %4244 = vpow2.f32 %v1152_v25  ;;  %v1392_v25 = vld [vmem:[%s5412_s2 + $0x50] sm:$0xff] }
 0x56a   : > { %v1288_v52 = vpop.permute.xlu1 %1287 }
 0x56c   : > { %v4239_v26 = vpop.eup %4238 }
 0x56d   : > { %v1259_v28 = vsel %vm1129_vm7, %v4239_v26, 0.0 }
 0x56e   : > { %v4241_v29 = vpop.eup %4240  ;;  %1260 = vadd.xlane.f32.xlu0 %v1259_v28  ;;  %v1411_v28 = vld [vmem:[%s5413_s3 + $0xc8] sm:$0xff] }
 0x56f   : > { %3961 = vmatprep.mubr.msk.f32.mxu1 %vm1129_vm7, %v4241_v29  ;;  %v1256_v30 = vsel %vm1129_vm7, %v4241_v29, 0.0  ;;  %3990 = vmatpush3.msra.mxu0 %v1411_v28 }
 0x570   : > { %3962 = vmatmul.mubr.msk.f32.vlgmr.msra.gmra.mxu1 %vm1129_vm7, %v4239_v26  ;;  %v1391_v26 = vld [vmem:[%s5412_s2 + $0x8] sm:$0xff]  ;;  %3991 = vmatprep.subr.mxu0 %v4310_v20 }
 0x571   : > { %3968 = vmatpush3.msra.mxu1 %v1294_v38  ;;  %v1374_v38 = vld [vmem:[%s5414_s4 + $0x6] ss:$0 sm:$0xff] }
 0x572   : > { %v4243_v34 = vpop.eup %4242  ;;  %1257 = vadd.xlane.f32.xlu0 %v1256_v30  ;;  %3969 = vmatprep.subr.mxu1 %v4310_v20 }
 0x573   : > { %3964 = vmatprep.mubr.msk.f32.mxu1 %vm1129_vm7, %v4243_v34  ;;  %v1262_v32 = vsel %vm1129_vm7, %v4243_v34, 0.0 }
 0x576   : > { %v4245_v35 = vpop.eup %4244 }
 0x577   : > { %3965 = vmatmul.mubr.msk.f32.gmra.mxu1 %vm1129_vm7, %v4245_v35  ;;  %v1265_v36 = vsel %vm1129_vm7, %v4245_v35, 0.0 }
 0x578   : > { %1266 = vadd.xlane.f32.xlu0 %v1265_v36  ;;  %3975 = vmatprep.mubr.msk.f32.mxu1 %vm4311_vm2, %v4310_v20  ;;  %v1373_v36 = vld [vmem:[%s5414_s4 + $0x5] ss:$0 sm:$0xff] }
 0x57c   : > { %1263 = vadd.xlane.f32.xlu0 %v1262_v32 }
 0x592   : > { %1291 = vrot.lane.b32.xlu0 %v4574_v27, %s4314_s25 }
 0x5f7   : > { %v1261_v40 = vpop.xlane.xlu0 %1260 }
 0x5fb   : > { %v1258_v41 = vpop.xlane.xlu0 %1257 }
 0x5fc   : > { %4246 = vrcp.f32 %v1258_v41 }
 0x5fd   : > { %4248 = vrcp.f32 %v1261_v40 }
 0x601   : > { %v1267_v42 = vpop.xlane.xlu0 %1266 }
 0x602   : > { %4250 = vrcp.f32 %v1267_v42  ;;  %v1410_v42 = vld [vmem:[%s5413_s3 + $0xc0] sm:$0xff] }
 0x603   : > { %3992 = vmatpush3.msra.mxu0 %v1410_v42 }
 0x604   : > { %3993 = vmatprep.subr.mxu0 %v4310_v20 }
 0x605   : > { %v1264_v43 = vpop.xlane.xlu0 %1263 }
 0x606   : > { %4252 = vrcp.f32 %v1264_v43  ;;  %v1407_v43 = vld [vmem:[%s5413_s3 + $0xa8] sm:$0xff] }
 0x609   : > { %v1292_v50 = vpop.permute.xlu0 %1291  ;;  %v4247_v54 = vpop.eup %4246 }
 0x60a   : > { %3970 = vmatpush3.msra.mxu1 %v1292_v50  ;;  %v4249_v56 = vpop.eup %4248  ;;  %v1405_v50 = vld [vmem:[%s5413_s3 + $0x98] sm:$0xff] }
 0x60b   : > { %3971 = vmatprep.subr.mxu1 %v4310_v20 }
 0x60c   : > { %3972 = vmatpush3.msra.mxu1 %v1290_v48  ;;  %v1406_v48 = vld [vmem:[%s5413_s3 + $0xa0] sm:$0xff] }
 0x60d   : > { %3973 = vmatprep.subr.mxu1 %v4310_v20 }
 0x60e   : > { %3974 = vmatpush3.msra.mxu1 %v1288_v52  ;;  %v1404_v52 = vld [vmem:[%s5413_s3 + $0x90] sm:$0xff] }
 0x60f   : > { %3978 = vmatprep.subr.mxu1 %v4310_v20  ;;  %v4251_v59 = vpop.eup %4250 }
 0x613   : > { %v4253_v63 = vpop.eup %4252 }
 0x630   : > { %v3963_v27 = vpop.f32.mrf.mxu1 }
 0x631   : > { %v1271_v57 = vmul.f32 %v4249_v56, %v3963_v27  ;;  %v1403_v27 = vld [vmem:[%s5413_s3 + $0x88] sm:$0xff] }
 0x632   : > { %v1237_v53 = vpop.f32.mrf.mxu1  ;;  %v1399_v56 = vld [vmem:[%s5413_s3 + $0x68] sm:$0xff] }
 0x633   : > { %v1269_v55 = vmul.f32 %v4247_v54, %v1237_v53  ;;  %v1277_v2 = vmul.f32 %v1271_v57, %v4629_v46  ;;  %v1402_v53 = vld [vmem:[%s5413_s3 + $0x80] sm:$0xff]  ;;  %v1401_v54 = vld [vmem:[%s5413_s3 + $0x78] sm:$0xff] }
 0x634   : > { %v1398_v57 = vld [vmem:[%s5413_s3 + $0x60] sm:$0xff] }
 0x635   : > { %v1276_v62 = vmul.f32 %v1269_v55, %v4619_v39  ;;  %v1400_v55 = vld [vmem:[%s5413_s3 + $0x70] sm:$0xff] }
 0x637   : > { %v3966_v58 = vpop.f32.mrf.mxu1  ;;  %v1278_v4 = vadd.f32 %v1277_v2, %v1276_v62  ;;  %v1395_v62 = vld [vmem:[%s5414_s4 + $0x7] ss:$0 sm:$0xff] }
 0x638   : > { %v1275_v60 = vmul.f32 %v4251_v59, %v3966_v58  ;;  %v1397_v58 = vld [vmem:[%s5413_s3 + $0x58] sm:$0xff]  ;;  %v1396_v59 = vld [vmem:[%s5413_s3 + $0x50] sm:$0xff] }
 0x639   : > { %v1247_v0 = vpop.f32.mrf.mxu1 }
 0x63a   : > { %v1273_v3 = vmul.f32 %v4253_v63, %v1247_v0  ;;  %v1281_v6 = vmul.f32 %v1275_v60, %v4641_v51 }
 0x63c   : > { %v1279_v5 = vmul.f32 %v1273_v3, %v4634_v49 }
 0x63e   : > { %v1280_v7 = vadd.f32 %v1279_v5, %v1278_v4 }
 0x640   : > { %v1282_v8 = vadd.f32 %v1281_v6, %v1280_v7 }
 0x642   : > { %3976 = vmatmul.mubr.msk.f32.vlgmr.msra.gmra.mxu1 %vm920_vm6, %v1282_v8 }
 0x643   : > { %3986 = vmatprep.mubr.msk.f32.mxu1 %vm4311_vm2, %v4310_v20  ;;  %3979 = vmatpush3.msra.mxu1 %v1394_v24 }
 0x644   : > { %3980 = vmatprep.subr.mxu1 %v4310_v20 }
 0x702   : > { %v1368_v11 = vpop.f32.mrf.mxu1 }
 0x703   : > { %v1369_v12 = vadd.f32 %v1368_v11, %v994_v9 }
 0x704   : > { %v3977_v13 = vpop.f32.mrf.mxu1 }
 0x705   : > { %v1372_v10 = vadd.f32 %v1369_v12, %v4602_v31  ;;  %v1393_v31 = vld [vmem:[%s5412_s2 + $0x98] sm:$0xff]  ;;  %v4796_v12 = vld [vmem:[%s5412_s2 + $0xe8] sm:$0xff]  ;;  %v1584_v13 = vand.u32 127, %v995_v1  ;;  %v4818_v1 = vld [vmem:[%s5412_s2 + $0xa0] sm:$0xff] }
 0x706   : > { %3981 = vmatpush3.msra.mxu1 %v1393_v31 }
 0x707   : > { %v1375_v14 = vsel %vm920_vm6, %v1372_v10, 0.0  ;;  %3982 = vmatprep.subr.mxu1 %v4310_v20 }
 0x708   : > { %1376 = vadd.xlane.f32.xlu1 %v1375_v14  ;;  %3983 = vmatpush3.msra.mxu1 %v1392_v25  ;;  %v1592_v14 = vstv %s3607_s10  ;;  %v4833_v25 = vld [vmem:[%s5412_s2 + $0x58] sm:$0xff] }
 0x709   : > { %3984 = vmatprep.subr.mxu1 %v4310_v20 }
 0x70a   : > { %3985 = vmatpush3.msra.mxu1 %v1391_v26  ;;  %v4840_v26 = vld [vmem:[%s5412_s2 + $0x10] sm:$0xff] }
 0x70b   : > { %4024 = vmatprep.subr.mxu1 %v4310_v20 }
 0x791   : > { %v1377_v15 = vpop.xlane.xlu1 %1376 }
 0x792   : > { %v1379_v16 = vmul.f32 0.03125, %v1377_v15 }
 0x794   : > { %v1380_v18 = vsub.f32 %v1372_v10, %v1379_v16  ;;  %v1585_v10 = vstv %s198_s7 }
 0x795   : > { %vm1586_vm9 = vcmp.eq.s32.totalorder %v1584_v13, %v1585_v10 }
 0x796   : > { %v1381_v19 = vmul.f32 %v1380_v18, %v1380_v18  ;;  %v3606_v15 = vsel %vm1586_vm9, 1.0, %v4310_v20 }
 0x798   : > { %v1382_v22 = vsel %vm920_vm6, %v1381_v19, 0.0 }
 0x799   : > { %1383 = vadd.xlane.f32.xlu0 %v1382_v22 }
 0x7af   : > { %1915 = vrot.lane.b32.xlu0 %v4796_v12, %s4312_s22 }
 0x7b3   : > { %1909 = vrot.lane.b32.xlu0 %v4840_v26, %s4312_s22 }
 0x822   : > { %v1384_v29 = vpop.xlane.xlu0 %1383 }
 0x823   : > { %v1385_v30 = vmul.f32 0.03125, %v1384_v29 }
 0x825   : > { %v1386_v34 = vadd.f32 1e-05, %v1385_v30  ;;  %v1815_v30 = vld [vmem:[%s4365_s24 + $0x90] sm:$0xff] }
 0x826   : > { %v1916_v28 = vpop.permute.xlu0 %1915 }
 0x827   : > { %4254 = vrsqrt.f32 %v1386_v34 }
 0x834   : > { %v4255_v35 = vpop.eup %4254 }
 0x835   : > { %v1388_v32 = vmul.f32 %v4255_v35, %v1380_v18 }
 0x837   : > { %v1389_v40 = vmul.f32 %v1388_v32, %v1373_v36 }
 0x839   : > { %v4717_v41 = vadd.f32 %v1389_v40, %v1374_v38 }
 0x83b   : > { %3987 = vmatmul.mubr.msk.f32.vlgmr.msra.gmra.mxu1 %vm920_vm6, %v4717_v41 }
 0x83c   : > { %4025 = vmatpush3.msra.mxu1 %v4557_v17  ;;  %4028 = vmatprep.mubr.msk.f32.mxu1 %vm4311_vm2, %v4310_v20  ;;  %v1409_v17 = vld [vmem:[%s5413_s3 + $0xb8] sm:$0xff] }
 0x83d   : > { %4026 = vmatprep.subr.mxu1 %v4310_v20  ;;  %3994 = vmatpush3.msra.mxu0 %v1409_v17 }
 0x83e   : > { %4027 = vmatpush3.msra.mxu1 %v4559_v21  ;;  %3995 = vmatprep.subr.mxu0 %v4310_v20  ;;  %v1408_v21 = vld [vmem:[%s5413_s3 + $0xb0] sm:$0xff] }
 0x83f   : > { %4036 = vmatprep.subr.mxu1 %v4310_v20  ;;  %3996 = vmatpush3.msra.mxu0 %v1408_v21 }
 0x840   : > { %3997 = vmatprep.subr.mxu0 %v4310_v20 }
 0x841   : > { %3998 = vmatpush3.msra.mxu0 %v1407_v43 }
 0x842   : > { %3999 = vmatprep.subr.mxu0 %v4310_v20 }
 0x843   : > { %4000 = vmatpush3.msra.mxu0 %v1406_v48 }
 0x844   : > { %4001 = vmatprep.subr.mxu0 %v4310_v20 }
 0x845   : > { %4002 = vmatpush3.msra.mxu0 %v1405_v50  ;;  %v1816_v50 = vld [vmem:[%s4365_s24 + $0x98] sm:$0xff] }
 0x846   : > { %4003 = vmatprep.subr.mxu0 %v4310_v20 }
 0x847   : > { %4004 = vmatpush3.msra.mxu0 %v1404_v52 }
 0x848   : > { %4005 = vmatprep.subr.mxu0 %v4310_v20 }
 0x849   : > { %4006 = vmatpush3.msra.mxu0 %v1403_v27 }
 0x84a   : > { %4007 = vmatprep.subr.mxu0 %v4310_v20 }
 0x84b   : > { %4008 = vmatpush3.msra.mxu0 %v1402_v53 }
 0x84c   : > { %4009 = vmatprep.subr.mxu0 %v4310_v20 }
 0x84d   : > { %4010 = vmatpush3.msra.mxu0 %v1401_v54 }
 0x84e   : > { %4011 = vmatprep.subr.mxu0 %v4310_v20 }
 0x84f   : > { %4012 = vmatpush3.msra.mxu0 %v1400_v55 }
 0x850   : > { %4013 = vmatprep.subr.mxu0 %v4310_v20 }
 0x851   : > { %4014 = vmatpush3.msra.mxu0 %v1399_v56 }
 0x852   : > { %4015 = vmatprep.subr.mxu0 %v4310_v20 }
 0x853   : > { %4016 = vmatpush3.msra.mxu0 %v1398_v57 }
 0x854   : > { %4017 = vmatprep.subr.mxu0 %v4310_v20 }
 0x855   : > { %4018 = vmatpush3.msra.mxu0 %v1397_v58 }
 0x856   : > { %4019 = vmatprep.subr.mxu0 %v4310_v20 }
 0x857   : > { %4020 = vmatpush3.msra.mxu0 %v1396_v59  ;;  %v1910_v59 = vpop.permute.xlu0 %1909 }
 0x858   : > { %4031 = vmatprep.subr.mxu0 %v4310_v20 }
 0x8fb   : > { %v1482_v63 = vpop.f32.mrf.mxu1 }
 0x8fc   : > { %v1483_v0 = vadd.f32 %v1482_v63, %v1395_v62  ;;  %v1817_v62 = vld [vmem:[%s4365_s24 + $0xa0] sm:$0x3]  ;;  %v1830_v63 = vld [vmem:[%s5414_s4 + $0x2b] ss:$0 sm:$0xff] }
 0x8fd   : > { %v3988_v2 = vpop.f32.mrf.mxu1 }
 0x8fe   : > { %v1487_v60 = vmul.f32 0.044715, %v1483_v0  ;;  %v1486_v8 = vmul.f32 0.5, %v1483_v0  ;;  %v1566_v2 = vld [vmem:[%s5414_s4 + $0x29] ss:$0 sm:$0xff] }
 0x900   : > { %v1488_v3 = vmul.f32 %v1487_v60, %v1483_v0 }
 0x902   : > { %v1489_v4 = vmul.f32 %v1488_v3, %v1483_v0 }
 0x904   : > { %v1490_v5 = vadd.f32 %v1489_v4, %v1483_v0  ;;  %v1567_v4 = vld [vmem:[%s5414_s4 + $0x2a] ss:$0 sm:$0xff] }
 0x906   : > { %v1491_v6 = vmul.f32 0.7978846, %v1490_v5 }
 0x908   : > { %4256 = vtanh.f32 %v1491_v6 }
 0x915   : > { %v4257_v7 = vpop.eup %4256 }
 0x916   : > { %v1493_v9 = vadd.f32 1.0, %v4257_v7 }
 0x918   : > { %v1494_v11 = vmul.f32 %v1493_v9, %v1486_v8  ;;  %v1904_v8 = vld [vmem:[%s5414_s4 + $0x2c] ss:$0 sm:$0xff] }
 0x91a   : > { %4022 = vmatmul.mubr.f32.vlgmr.msra.gmra.mxu0 %v1494_v11 }
 0x91b   : > { %4032 = vmatpush3.msra.mxu0 %v4599_v33  ;;  %4033 = vmatprep.mubr.msk.f32.mxu0 %vm4311_vm2, %v4310_v20  ;;  %v1593_v33 = vadd.s32 %v1592_v14, %v4607_v44 }
 0x91c   : > { %4063 = vmatprep.subr.mxu0 %v1916_v28 }
 0x91d   : > { %vm1594_vm11 = vcmp.eq.s32.totalorder %v1584_v13, %v1593_v33 }
 0x91e   : > { %4034 = vmatmul.mubr.msk.f32.vlgmr.msra.gmra.mxu0 %vm671_vm3, %v3606_v15  ;;  %vm1596_vm12 = vmand %vm1594_vm11, %vm1595_vm10 }
 0x91f   : > { %v3608_v16 = vsel %vm1596_vm12, 1.0, %v4310_v20  ;;  %4064 = vmatpush3.msra.mxu0 %v1916_v28  ;;  %4071 = vmatprep.mubr.msk.f32.mxu0 %vm920_vm6, %v1816_v50 }
 0x920   : > { %4029 = vmatmul.mubr.msk.f32.vlgmr.msra.gmra.mxu1 %vm840_vm5, %v3608_v16  ;;  %vm3507_vm5 = vcmask 596992  }
 0x921   : > { %4037 = vmatpush3.msra.mxu1 %v4488_v23  ;;  %4038 = vmatprep.mubr.msk.f32.mxu1 %vm4311_vm2, %v4310_v20  ;;  %v1412_v23 = vld [vmem:[%s5414_s4 + $0x28] ss:$0 sm:$0xff] }
 0x922   : > { %4041 = vmatprep.subr.mxu1 %v4310_v20 }
 0x924   : > { %4039 = vmatmul.mubr.msk.f32.vlgmr.msra.gmra.mxu1 %vm671_vm3, %v3606_v15 }
 0x925   : > { %4042 = vmatpush3.msra.mxu1 %v4796_v12  ;;  %4049 = vmatprep.mubr.msk.f32.mxu1 %vm4311_vm2, %v4310_v20 }
 0x926   : > { %4043 = vmatprep.subr.mxu1 %v4310_v20 }
 0x927   : > { %4044 = vmatpush3.msra.mxu1 %v4818_v1 }
 0x928   : > { %4045 = vmatprep.subr.mxu1 %v4310_v20 }
 0x929   : > { %4046 = vmatpush3.msra.mxu1 %v4833_v25 }
 0x92a   : > { %4047 = vmatprep.subr.mxu1 %v4310_v20 }
 0x92b   : > { %4048 = vmatpush3.msra.mxu1 %v4840_v26 }
 0x92c   : > { %4052 = vmatprep.subr.mxu1 %v4310_v20 }
 0x9da   : > { %v1561_v18 = vpop.f32.mrf.mxu0 }
 0x9db   : > { %v1562_v19 = vadd.f32 %v1561_v18, %v1412_v23 }
 0x9dc   : > { %v4023_v22 = vpop.f32.mrf.mxu0 }
 0x9dd   : > { %v1565_v24 = vadd.f32 %v1562_v19, %v4717_v41  ;;  %v3621_v22 = vld [vmem:[%s4365_s24 + $0xa9] ss:$0 sm:$0xff] }
 0x9de   : > { %v1741_v29 = vpop.f32.mrf.mxu0 }
 0x9df   : > { %v1568_v31 = vsel %vm920_vm6, %v1565_v24, 0.0  ;;  %v1824_v35 = vrot.slane %v1741_v29, %v4610_v37 }
 0x9e0   : > { %1569 = vadd.xlane.f32.xlu1 %v1568_v31  ;;  %v4035_v34 = vpop.f32.mrf.mxu0  ;;  %v1668_v36 = vpop.f32.mrf.mxu1 }
 0x9e1   : > { %v1820_v32 = vadd.f32 %v1815_v30, %v1668_v36 }
 0x9e2   : > { %v4030_v38 = vpop.f32.mrf.mxu1 }
 0x9e3   : > { %v1825_v40 = vadd.f32 %v1824_v35, %v1820_v32 }
 0x9e4   : > { %v4857_v52 = vpop.f32.mrf.mxu1 }
 0x9e5   : > { %4050 = vmatmul.mubr.msk.f32.vlgmr.msra.gmra.mxu1 %vm920_vm6, %v1825_v40 }
 0x9e6   : > { %4053 = vmatpush3.msra.mxu1 %v1916_v28  ;;  %4060 = vmatprep.mubr.msk.f32.mxu1 %vm4311_vm2, %v4310_v20  ;;  %v4040_v27 = vpop.f32.mrf.mxu1 }
 0x9e7   : > { %4054 = vmatprep.subr.mxu1 %v4310_v20 }
 0x9f1   : > { %1913 = vrot.lane.b32.xlu1 %v4818_v1, %s4312_s22 }
 0xa69   : > { %v1570_v41 = vpop.xlane.xlu1 %1569 }
 0xa6a   : > { %v1571_v42 = vmul.f32 0.03125, %v1570_v41 }
 0xa6c   : > { %v1572_v17 = vsub.f32 %v1565_v24, %v1571_v42 }
 0xa6d   : > { %v1914_v21 = vpop.permute.xlu1 %1913 }
 0xa6e   : > { %v1573_v43 = vmul.f32 %v1572_v17, %v1572_v17  ;;  %4065 = vmatprep.subr.mxu0 %v1914_v21  ;;  %4055 = vmatpush3.msra.mxu1 %v1914_v21 }
 0xa6f   : > { %4066 = vmatpush3.msra.mxu0 %v1914_v21  ;;  %4056 = vmatprep.subr.mxu1 %v4310_v20 }
 0xa70   : > { %v1574_v48 = vsel %vm920_vm6, %v1573_v43, 0.0 }
 0xa71   : > { %1575 = vadd.xlane.f32.xlu1 %v1574_v48 }
 0xa82   : > { %1911 = vrot.lane.b32.xlu1 %v4833_v25, %s4312_s22 }
 0xaa5   : > { %v1900_v53 = vpop.f32.mrf.mxu1 }
 0xaa6   : > { %v1901_v60 = vadd.f32 %v1900_v53, %v1830_v63 }
 0xaa7   : > { %v4051_v54 = vpop.f32.mrf.mxu1 }
 0xaa8   : > { %v2076_v6 = vmul.f32 %v1901_v60, %v4619_v39  ;;  %v2077_v15 = vmul.f32 %v1901_v60, %v4629_v46  ;;  %v2078_v16 = vmul.f32 %v1901_v60, %v4634_v49  ;;  %v2079_v18 = vmul.f32 %v1901_v60, %v4641_v51 }
 0xafa   : > { %v1576_v55 = vpop.xlane.xlu1 %1575 }
 0xafb   : > { %v1577_v56 = vmul.f32 0.03125, %v1576_v55 }
 0xafd   : > { %v1578_v57 = vadd.f32 1e-05, %v1577_v56 }
 0xafe   : > { %v1912_v58 = vpop.permute.xlu1 %1911 }
 0xaff   : > { %4258 = vrsqrt.f32 %v1578_v57  ;;  %4067 = vmatprep.subr.mxu0 %v1912_v58  ;;  %4057 = vmatpush3.msra.mxu1 %v1912_v58 }
 0xb00   : > { %4068 = vmatpush3.msra.mxu0 %v1912_v58  ;;  %4058 = vmatprep.subr.mxu1 %v4310_v20 }
 0xb01   : > { %4069 = vmatprep.subr.mxu0 %v1910_v59  ;;  %4059 = vmatpush3.msra.mxu1 %v1910_v59 }
 0xb02   : > { %4070 = vmatpush3.msra.mxu0 %v1910_v59 }
 0xb03   : > { %4072 = vmatmul.mubr.msk.f32.vlgmr.msra.gmra.mxu0 %vm920_vm6, %v1817_v62 }
 0xb0c   : > { %v4259_v0 = vpop.eup %4258 }
 0xb0d   : > { %v1580_v3 = vmul.f32 %v4259_v0, %v1572_v17  ;;  %v3628_v17 = vld [vmem:[%s4365_s24 + $0xaa] ss:$0 sm:$0xff] }
 0xb0f   : > { %v1581_v5 = vmul.f32 %v1580_v3, %v1566_v2 }
 0xb11   : > { %v1582_v7 = vadd.f32 %v1581_v5, %v1567_v4 }
 0xb13   : > { %4061 = vmatmul.mubr.msk.f32.vlgmr.msra.gmra.mxu1 %vm920_vm6, %v1582_v7 }
 0xb14   : > { %4076 = vmatprep.mubr.msk.f32.mxu1 %vm920_vm6, %v2076_v6 }
 0xbc3   : > { %v4073_v11 = vpop.f32.mrf.mxu0 }
 0xbc4   : > { %v2072_v10 = vadd.f32 %v4073_v11, %v1904_v8 }
 0xbc5   : > { %v2066_v33 = vpop.f32.mrf.mxu0 }
 0xbc6   : > { %v2067_v23 = vadd.f32 %v2066_v33, %v1904_v8 }
 0xbd3   : > { %v1990_v9 = vpop.f32.mrf.mxu1 }
 0xbd4   : > { %v4878_v13 = vadd.f32 %v1990_v9, %v1904_v8 }
 0xbd5   : > { %v4062_v14 = vpop.f32.mrf.mxu1 }
 0xbd6   : > { %4074 = vmatprep.subr.msk.mxu1 %vm920_vm6, %v4878_v13 }
 0xbd7   : > { %4075 = vmatpush3.xpose.msk.msra.mxu1 %vm920_vm6, %v4878_v13 }
 0xbd8   : > { %4082 = vmatprep.subr.msk.mxu1 %vm920_vm6, %v2072_v10 }
 0xbda   : > { %4077 = vmatmul.mubr.msk.f32.vlgmr.msra.gmra.mxu1 %vm920_vm6, %v2077_v15 }
 0xbdb   : > { %4079 = vmatprep.mubr.msk.f32.mxu1 %vm920_vm6, %v2078_v16  ;;  %4083 = vmatpush3.xpose.msk.msra.mxu1 %vm920_vm6, %v2072_v10 }
 0xbdc   : > { %4084 = vmatprep.subr.msk.mxu1 %vm920_vm6, %v2067_v23 }
 0xbde   : > { %4080 = vmatmul.mubr.msk.f32.gmra.mxu1 %vm920_vm6, %v2079_v18 }
 0xbdf   : > { %4085 = vmatpush3.xpose.msk.msra.mxu1 %vm920_vm6, %v2067_v23  ;;  %4086 = vmatprep.mubr.msk.f32.mxu1 %vm920_vm6, %v2076_v6 }
 0xbe0   : > { %4110 = vmatprep.subr.mxu1 %v4310_v20 }
 0xbe2   : > { %4087 = vmatmul.mubr.msk.f32.vlgmr.msra.gmra.mxu1 %vm920_vm6, %v2077_v15 }
 0xbe3   : > { %4089 = vmatprep.mubr.msk.f32.mxu1 %vm920_vm6, %v2078_v16 }
 0xbe6   : > { %4090 = vmatmul.mubr.msk.f32.gmra.mxu1 %vm920_vm6, %v2079_v18 }
 0xbe7   : > { %4118 = vmatprep.mubr.msk.f32.mxu1 %vm4311_vm2, %v4310_v20 }
 0xc9a   : > { %v4078_v19 = vpop.f32.mrf.mxu1 }
 0xc9b   : > { %v2181_v24 = vmul.f32 0.35355338, %v4078_v19 }
 0xc9c   : > { %v2161_v31 = vpop.f32.mrf.mxu1 }
 0xc9d   : > { %v2180_v28 = vmul.f32 0.35355338, %v2161_v31  ;;  %v2189_v29 = vadd.f32 %v3621_v22, %v2181_v24 }
 0xc9e   : > { %v4081_v30 = vpop.f32.mrf.mxu1 }
 0xc9f   : > { %v2183_v34 = vmul.f32 0.35355338, %v4081_v30  ;;  %v2298_v35 = vsel %vm1129_vm7, %v2189_v29, -inf  ;;  %v2188_v36 = vadd.f32 %v3621_v22, %v2180_v28 }
 0xca0   : > { %2299 = vmax.xlane.f32.xlu0 %v2298_v35  ;;  %v2171_v32 = vpop.f32.mrf.mxu1 }
 0xca1   : > { %v2182_v38 = vmul.f32 0.35355338, %v2171_v32  ;;  %v2295_v40 = vsel %vm1129_vm7, %v2188_v36, -inf  ;;  %v4904_v41 = vadd.f32 %v3621_v22, %v2183_v34 }
 0xca2   : > { %2296 = vmax.xlane.f32.xlu1 %v2295_v40  ;;  %v4088_v42 = vpop.f32.mrf.mxu1 }
 0xca3   : > { %v2284_v21 = vmul.f32 0.35355338, %v4088_v42  ;;  %v2304_v43 = vsel %vm1129_vm7, %v4904_v41, -inf  ;;  %v4909_v48 = vadd.f32 %v3621_v22, %v2182_v38 }
 0xca4   : > { %2305 = vmax.xlane.f32.xlu0 %v2304_v43  ;;  %v2264_v50 = vpop.f32.mrf.mxu1 }
 0xca5   : > { %v2283_v27 = vmul.f32 0.35355338, %v2264_v50  ;;  %v2292_v53 = vadd.f32 %v3628_v17, %v2284_v21  ;;  %v2301_v55 = vsel %vm1129_vm7, %v4909_v48, -inf }
 0xca6   : > { %v4091_v58 = vpop.f32.mrf.mxu1 }
 0xca7   : > { %v2311_v54 = vsel %vm2307_vm13, %v2292_v53, -inf  ;;  %v2291_v56 = vadd.f32 %v3628_v17, %v2283_v27  ;;  %v2286_v59 = vmul.f32 0.35355338, %v4091_v58 }
 0xca8   : > { %2312 = vmax.xlane.f32.xlu1 %v2311_v54  ;;  %2302 = vmax.xlane.f32.xlu0 %v2301_v55  ;;  %v2274_v62 = vpop.f32.mrf.mxu1 }
 0xca9   : > { %v2308_v57 = vsel %vm2307_vm13, %v2291_v56, -inf  ;;  %v2285_v63 = vmul.f32 0.35355338, %v2274_v62  ;;  %v2294_v0 = vadd.f32 %v3628_v17, %v2286_v59 }
 0xcab   : > { %v2317_v2 = vsel %vm2307_vm13, %v2294_v0, -inf  ;;  %v2293_v60 = vadd.f32 %v3628_v17, %v2285_v63 }
 0xcac   : > { %2309 = vmax.xlane.f32.xlu0 %v2308_v57 }
 0xcad   : > { %v2314_v3 = vsel %vm2307_vm13, %v2293_v60, -inf }
 0xcb9   : > { %2360 = vrot.lane.b32.xlu1 %v2067_v23, %s4312_s22 }
 0xcc2   : > { %2362 = vrot.lane.b32.xlu0 %v2072_v10, %s4312_s22 }
 0xcdd   : > { %2318 = vmax.xlane.f32.xlu1 %v2317_v2 }
 0xce1   : > { %2315 = vmax.xlane.f32.xlu1 %v2314_v3 }
 0xcf2   : > { %2477 = vrot.lane.b32.xlu1 %v4878_v13, %s4312_s22 }
 0xcf6   : > { %2603 = vrot.lane.b32.xlu1 %v4796_v12, %s4314_s25 }
 0xd29   : > { %v2300_v4 = vpop.xlane.xlu0 %2299 }
 0xd2b   : > { %v2297_v5 = vpop.xlane.xlu1 %2296 }
 0xd2d   : > { %v2306_v6 = vpop.xlane.xlu0 %2305 }
 0xd31   : > { %v2313_v7 = vpop.xlane.xlu1 %2312  ;;  %v2303_v8 = vpop.xlane.xlu0 %2302 }
 0xd32   : > { %v2321_v9 = vmax.f32 %v2300_v4, %v2313_v7 }
 0xd34   : > { %v2325_v11 = vsub.f32 %v2189_v29, %v2321_v9  ;;  %v2349_v10 = vsub.f32 %v2292_v53, %v2321_v9 }
 0xd35   : > { %v2310_v14 = vpop.xlane.xlu0 %2309  ;;  %v2361_v22 = vpop.permute.xlu1 %2360 }
 0xd36   : > { %v2330_v33 = vmul.f32 1.442695, %v2325_v11  ;;  %v2354_v15 = vmul.f32 1.442695, %v2349_v10  ;;  %v2320_v16 = vmax.f32 %v2297_v5, %v2310_v14 }
 0xd38   : > { %4260 = vpow2.f32 %v2330_v33  ;;  %v2324_v23 = vsub.f32 %v2188_v36, %v2320_v16  ;;  %v2348_v18 = vsub.f32 %v2291_v56, %v2320_v16 }
 0xd39   : > { %4262 = vpow2.f32 %v2354_v15  ;;  %v2363_v13 = vpop.permute.xlu0 %2362 }
 0xd3a   : > { %v2328_v19 = vmul.f32 1.442695, %v2324_v23  ;;  %v2352_v12 = vmul.f32 1.442695, %v2348_v18  ;;  %4092 = vmatprep.subr.msk.mxu0 %vm2377_vm14, %v2363_v13 }
 0xd3b   : > { %4093 = vmatpush3.msk.msra.mxu0 %vm2377_vm14, %v2363_v13 }
 0xd3c   : > { %4264 = vpow2.f32 %v2328_v19  ;;  %4094 = vmatprep.subr.mxu0 %v2361_v22 }
 0xd3d   : > { %4266 = vpow2.f32 %v2352_v12  ;;  %4095 = vmatpush3.msra.mxu0 %v2361_v22 }
 0xd45   : > { %v4261_v24 = vpop.eup %4260 }
 0xd46   : > { %v4263_v31 = vpop.eup %4262  ;;  %v2339_v28 = vsel %vm1129_vm7, %v4261_v24, 0.0 }
 0xd47   : > { %2340 = vadd.xlane.f32.xlu1 %v2339_v28  ;;  %v2468_v29 = vsel %vm2307_vm13, %v4263_v31, 0.0 }
 0xd48   : > { %2469 = vadd.xlane.f32.xlu0 %v2468_v29 }
 0xd49   : > { %v4265_v30 = vpop.eup %4264 }
 0xd4a   : > { %v4267_v34 = vpop.eup %4266  ;;  %v2336_v35 = vsel %vm1129_vm7, %v4265_v30, 0.0 }
 0xd4b   : > { %4096 = vmatprep.mubr.msk.f32.mxu0 %vm2307_vm13, %v4267_v34  ;;  %v2465_v36 = vsel %vm2307_vm13, %v4267_v34, 0.0 }
 0xd4c   : > { %2337 = vadd.xlane.f32.xlu0 %v2336_v35  ;;  %4097 = vmatmul.mubr.msk.f32.vlgmr.msra.gmra.mxu0 %vm2307_vm13, %v4263_v31 }
 0xd50   : > { %2466 = vadd.xlane.f32.xlu0 %v2465_v36 }
 0xd66   : > { %v2319_v32 = vpop.xlane.xlu1 %2318 }
 0xd67   : > { %v2323_v38 = vmax.f32 %v2306_v6, %v2319_v32 }
 0xd69   : > { %v2327_v40 = vsub.f32 %v4904_v41, %v2323_v38  ;;  %v2351_v42 = vsub.f32 %v2294_v0, %v2323_v38 }
 0xd6a   : > { %v2316_v17 = vpop.xlane.xlu1 %2315 }
 0xd6b   : > { %v2334_v21 = vmul.f32 1.442695, %v2327_v40  ;;  %v2358_v43 = vmul.f32 1.442695, %v2351_v42  ;;  %v2322_v50 = vmax.f32 %v2303_v8, %v2316_v17 }
 0xd6d   : > { %4268 = vpow2.f32 %v2334_v21  ;;  %v2326_v27 = vsub.f32 %v4909_v48, %v2322_v50  ;;  %v2350_v53 = vsub.f32 %v2293_v60, %v2322_v50 }
 0xd6e   : > { %4270 = vpow2.f32 %v2358_v43  ;;  %v2478_v54 = vpop.permute.xlu1 %2477 }
 0xd6f   : > { %v2332_v55 = vmul.f32 1.442695, %v2326_v27  ;;  %v2356_v56 = vmul.f32 1.442695, %v2350_v53  ;;  %4102 = vmatprep.subr.msk.mxu0 %vm1168_vm8, %v2478_v54 }
 0xd70   : > { %4103 = vmatpush3.msk.msra.mxu0 %vm1168_vm8, %v2478_v54 }
 0xd71   : > { %4272 = vpow2.f32 %v2332_v55  ;;  %4121 = vmatprep.subr.mxu0 %v4310_v20 }
 0xd72   : > { %4274 = vpow2.f32 %v2356_v56  ;;  %v2604_v41 = vpop.permute.xlu1 %2603 }
 0xd73   : > { %4111 = vmatpush3.msra.mxu1 %v2604_v41 }
 0xd74   : > { %4112 = vmatprep.subr.mxu1 %v4310_v20 }
 0xd7a   : > { %v4269_v57 = vpop.eup %4268 }
 0xd7b   : > { %v4271_v58 = vpop.eup %4270  ;;  %v2345_v48 = vsel %vm1129_vm7, %v4269_v57, 0.0 }
 0xd7c   : > { %2346 = vadd.xlane.f32.xlu1 %v2345_v48  ;;  %v2474_v59 = vsel %vm2307_vm13, %v4271_v58, 0.0 }
 0xd7d   : > { %2475 = vadd.xlane.f32.xlu0 %v2474_v59  ;;  %v2702_v59 = vld [vmem:[%s5412_s2 + $0xf0] sm:$0xff] }
 0xd7e   : > { %v4273_v62 = vpop.eup %4272 }
 0xd7f   : > { %v4275_v63 = vpop.eup %4274  ;;  %v2342_v0 = vsel %vm1129_vm7, %v4273_v62, 0.0 }
 0xd80   : > { %4099 = vmatprep.mubr.msk.f32.mxu0 %vm2307_vm13, %v4275_v63  ;;  %2343 = vadd.xlane.f32.xlu1 %v2342_v0  ;;  %v2471_v2 = vsel %vm2307_vm13, %v4275_v63, 0.0  ;;  %v2700_v63 = vld [vmem:[%s5412_s2 + $0x60] sm:$0xff]  ;;  %v2699_v0 = vld [vmem:[%s5412_s2 + $0x18] sm:$0xff] }
 0xd81   : > { %2472 = vadd.xlane.f32.xlu0 %v2471_v2  ;;  %4100 = vmatmul.mubr.msk.f32.gmra.mxu0 %vm2307_vm13, %v4271_v58 }
 0xd82   : > { %4104 = vmatprep.mubr.msk.f32.mxu0 %vm1129_vm7, %v4265_v30 }
 0xd85   : > { %4105 = vmatmul.mubr.msk.f32.vlgmr.msra.gmra.mxu0 %vm1129_vm7, %v4261_v24 }
 0xd86   : > { %4107 = vmatprep.mubr.msk.f32.mxu0 %vm1129_vm7, %v4273_v62  ;;  %4122 = vmatpush3.msra.mxu0 %v2702_v59  ;;  %v2701_v62 = vld [vmem:[%s5412_s2 + $0xa8] sm:$0xff] }
 0xd87   : > { %4123 = vmatprep.subr.mxu0 %v4310_v20  ;;  %v2896_v59 = vld [vmem:[%s5412_s2 + $0x68] sm:$0xff] }
 0xd88   : > { %4124 = vmatpush3.msra.mxu0 %v2701_v62  ;;  %v2892_v62 = vld [vmem:[%s5412_s2 + $0x28] sm:$0xff] }
 0xd89   : > { %4108 = vmatmul.mubr.msk.f32.gmra.mxu0 %vm1129_vm7, %v4269_v57  ;;  %4125 = vmatprep.subr.mxu0 %v4310_v20 }
 0xd8a   : > { %4129 = vmatprep.mubr.msk.f32.mxu0 %vm4311_vm2, %v4310_v20  ;;  %4126 = vmatpush3.msra.mxu0 %v2700_v63  ;;  %v2891_v63 = vld [vmem:[%s5412_s2 + $0x20] sm:$0xff] }
 0xd8b   : > { %4127 = vmatprep.subr.mxu0 %v4310_v20 }
 0xd8c   : > { %4128 = vmatpush3.msra.mxu0 %v2699_v0  ;;  %v2909_v0 = vld [vmem:[%s5412_s2 + $0x110] sm:$0xff] }
 0xd91   : > { %2599 = vrot.lane.b32.xlu1 %v4833_v25, %s4314_s25 }
 0xd95   : > { %2597 = vrot.lane.b32.xlu1 %v4840_v26, %s4314_s25 }
 0xd97   : > { %2601 = vrot.lane.b32.xlu0 %v4818_v1, %s4314_s25 }
 0xdd0   : > { %v2341_v4 = vpop.xlane.xlu1 %2340 }
 0xdd1   : > { %v2470_v60 = vpop.xlane.xlu0 %2469 }
 0xdd2   : > { %v2579_v1 = vadd.f32 %v2470_v60, %v2341_v4 }
 0xdd4   : > { %4276 = vrcp.f32 %v2579_v1  ;;  %v2716_v1 = vld [vmem:[%s5413_s3 + $0x130] sm:$0xff] }
 0xdd5   : > { %v2338_v3 = vpop.xlane.xlu0 %2337 }
 0xdd9   : > { %v2467_v5 = vpop.xlane.xlu0 %2466 }
 0xdda   : > { %v2578_v26 = vadd.f32 %v2467_v5, %v2338_v3  ;;  %v2682_v5 = vld [vmem:[%s5414_s4 + $0x2e] ss:$0 sm:$0xff] }
 0xddc   : > { %4278 = vrcp.f32 %v2578_v26  ;;  %v2715_v26 = vld [vmem:[%s5413_s3 + $0x128] sm:$0xff] }
 0xde1   : > { %v4277_v22 = vpop.eup %4276 }
 0xde9   : > { %v4279_v31 = vpop.eup %4278 }
 0xe05   : > { %v2347_v6 = vpop.xlane.xlu1 %2346 }
 0xe06   : > { %v2476_v7 = vpop.xlane.xlu0 %2475 }
 0xe07   : > { %v2581_v14 = vadd.f32 %v2476_v7, %v2347_v6  ;;  %v2683_v7 = vld [vmem:[%s5414_s4 + $0x2f] ss:$0 sm:$0xff] }
 0xe09   : > { %v2344_v8 = vpop.xlane.xlu1 %2343  ;;  %4280 = vrcp.f32 %v2581_v14  ;;  %v2714_v14 = vld [vmem:[%s5413_s3 + $0x120] sm:$0xff] }
 0xe0a   : > { %v2473_v9 = vpop.xlane.xlu0 %2472 }
 0xe0b   : > { %v2580_v15 = vadd.f32 %v2473_v9, %v2344_v8 }
 0xe0c   : > { %v4098_v33 = vpop.f32.mrf.mxu0 }
 0xe0d   : > { %v2600_v11 = vpop.permute.xlu1 %2599  ;;  %4282 = vrcp.f32 %v2580_v15  ;;  %v2712_v15 = vld [vmem:[%s5413_s3 + $0x110] sm:$0xff] }
 0xe0e   : > { %v2602_v10 = vpop.permute.xlu0 %2601  ;;  %v2446_v16 = vpop.f32.mrf.mxu0 }
 0xe0f   : > { %4113 = vmatpush3.msra.mxu1 %v2602_v10  ;;  %v2718_v10 = vld [vmem:[%s5413_s3 + $0x140] sm:$0xff] }
 0xe10   : > { %4114 = vmatprep.subr.mxu1 %v4310_v20 }
 0xe11   : > { %4115 = vmatpush3.msra.mxu1 %v2600_v11  ;;  %v2598_v25 = vpop.permute.xlu1 %2597  ;;  %v2719_v11 = vld [vmem:[%s5413_s3 + $0x148] sm:$0xff] }
 0xe12   : > { %4116 = vmatprep.subr.mxu1 %v4310_v20 }
 0xe13   : > { %4117 = vmatpush3.msra.mxu1 %v2598_v25  ;;  %v2717_v25 = vld [vmem:[%s5413_s3 + $0x138] sm:$0xff] }
 0xe14   : > { %4132 = vmatprep.subr.mxu1 %v4310_v20 }
 0xe16   : > { %v4281_v36 = vpop.eup %4280 }
 0xe1a   : > { %v4283_v40 = vpop.eup %4282 }
 0xe41   : > { %v4101_v23 = vpop.f32.mrf.mxu0 }
 0xe43   : > { %v2456_v18 = vpop.f32.mrf.mxu0 }
 0xe45   : > { %v4106_v13 = vpop.f32.mrf.mxu0 }
 0xe46   : > { %v2565_v19 = vadd.f32 %v4106_v13, %v4098_v33  ;;  %v2713_v33 = vld [vmem:[%s5413_s3 + $0x118] sm:$0xff]  ;;  %v2708_v13 = vld [vmem:[%s5413_s3 + $0xf0] sm:$0xff] }
 0xe47   : > { %v2559_v12 = vpop.f32.mrf.mxu0 }
 0xe48   : > { %v2560_v24 = vadd.f32 %v2559_v12, %v2446_v16  ;;  %v2585_v29 = vmul.f32 %v4277_v22, %v2565_v19  ;;  %v2711_v16 = vld [vmem:[%s5413_s3 + $0x108] sm:$0xff]  ;;  %v2706_v12 = vld [vmem:[%s5413_s3 + $0xe0] sm:$0xff]  ;;  %v2705_v22 = vld [vmem:[%s5413_s3 + $0xd8] sm:$0xff] }
 0xe49   : > { %v4109_v28 = vpop.f32.mrf.mxu0  ;;  %v2707_v19 = vld [vmem:[%s5413_s3 + $0xe8] sm:$0xff] }
 0xe4a   : > { %v2583_v30 = vmul.f32 %v4279_v31, %v2560_v24  ;;  %v2575_v34 = vadd.f32 %v4109_v28, %v4101_v23  ;;  %v2591_v42 = vmul.f32 %v2585_v29, %v4629_v46  ;;  %v2710_v23 = vld [vmem:[%s5413_s3 + $0x100] sm:$0xff]  ;;  %v2704_v24 = vld [vmem:[%s5413_s3 + $0xd0] sm:$0xff] }
 0xe4b   : > { %v2569_v35 = vpop.f32.mrf.mxu0  ;;  %v2703_v31 = vld [vmem:[%s5414_s4 + $0x50] ss:$0 sm:$0xff] }
 0xe4c   : > { %v2590_v32 = vmul.f32 %v2583_v30, %v4619_v39  ;;  %v2570_v38 = vadd.f32 %v2569_v35, %v2456_v18  ;;  %v2589_v17 = vmul.f32 %v4281_v36, %v2575_v34  ;;  %v2075_v39 = vld [vmem:[%s5414_s4 + $0x2d] ss:$0 sm:$0xff]  ;;  %v2709_v18 = vld [vmem:[%s5413_s3 + $0xf8] sm:$0xff] }
 0xe4e   : > { %v2587_v21 = vmul.f32 %v4283_v40, %v2570_v38  ;;  %v2592_v43 = vadd.f32 %v2591_v42, %v2590_v32  ;;  %v2595_v27 = vmul.f32 %v2589_v17, %v4641_v51 }
 0xe50   : > { %v2593_v50 = vmul.f32 %v2587_v21, %v4634_v49 }
 0xe52   : > { %v2594_v53 = vadd.f32 %v2593_v50, %v2592_v43  ;;  %v2720_v43 = vld [vmem:[%s5414_s4 + $0x51] ss:$0 sm:$0xff] }
 0xe54   : > { %v2596_v54 = vadd.f32 %v2595_v27, %v2594_v53 }
 0xe56   : > { %4119 = vmatmul.mubr.msk.f32.vlgmr.msra.gmra.mxu1 %vm920_vm6, %v2596_v54 }
 0xe57   : > { %4164 = vmatprep.mubr.msk.f32.mxu1 %vm4311_vm2, %v4310_v20  ;;  %4133 = vmatpush3.msra.mxu1 %v2719_v11  ;;  %v2908_v11 = vld [vmem:[%s5412_s2 + $0x108] sm:$0xff] }
 0xe58   : > { %4134 = vmatprep.subr.mxu1 %v4310_v20 }
 0xe59   : > { %4135 = vmatpush3.msra.mxu1 %v2718_v10  ;;  %v2904_v10 = vld [vmem:[%s5412_s2 + $0xc8] sm:$0xff] }
 0xe5a   : > { %4136 = vmatprep.subr.mxu1 %v4310_v20 }
 0xe5b   : > { %4137 = vmatpush3.msra.mxu1 %v2717_v25  ;;  %v2903_v25 = vld [vmem:[%s5412_s2 + $0xc0] sm:$0xff] }
 0xe5c   : > { %4138 = vmatprep.subr.mxu1 %v4310_v20 }
 0xe5d   : > { %4139 = vmatpush3.msra.mxu1 %v2716_v1  ;;  %v2899_v1 = vld [vmem:[%s5412_s2 + $0x80] sm:$0xff] }
 0xe5e   : > { %4140 = vmatprep.subr.mxu1 %v4310_v20 }
 0xe5f   : > { %4141 = vmatpush3.msra.mxu1 %v2715_v26  ;;  %v2898_v26 = vld [vmem:[%s5412_s2 + $0x78] sm:$0xff] }
 0xe60   : > { %4142 = vmatprep.subr.mxu1 %v4310_v20 }
 0xe61   : > { %4143 = vmatpush3.msra.mxu1 %v2714_v14  ;;  %v2894_v14 = vld [vmem:[%s5412_s2 + $0x38] sm:$0xff] }
 0xe62   : > { %4144 = vmatprep.subr.mxu1 %v4310_v20 }
 0xe63   : > { %4145 = vmatpush3.msra.mxu1 %v2713_v33  ;;  %v2893_v33 = vld [vmem:[%s5412_s2 + $0x30] sm:$0xff] }
 0xe64   : > { %4146 = vmatprep.subr.mxu1 %v4310_v20 }
 0xe65   : > { %4147 = vmatpush3.msra.mxu1 %v2712_v15  ;;  %v2910_v15 = vld [vmem:[%s5412_s2 + $0x118] sm:$0xff] }
 0xe66   : > { %4148 = vmatprep.subr.mxu1 %v4310_v20 }
 0xe67   : > { %4149 = vmatpush3.msra.mxu1 %v2711_v16  ;;  %v2905_v16 = vld [vmem:[%s5412_s2 + $0xd0] sm:$0xff] }
 0xe68   : > { %4150 = vmatprep.subr.mxu1 %v4310_v20 }
 0xe69   : > { %4151 = vmatpush3.msra.mxu1 %v2710_v23  ;;  %v2900_v23 = vld [vmem:[%s5412_s2 + $0x88] sm:$0xff] }
 0xe6a   : > { %4152 = vmatprep.subr.mxu1 %v4310_v20 }
 0xe6b   : > { %4153 = vmatpush3.msra.mxu1 %v2709_v18  ;;  %v2895_v18 = vld [vmem:[%s5412_s2 + $0x40] sm:$0xff] }
 0xe6c   : > { %4154 = vmatprep.subr.mxu1 %v4310_v20 }
 0xe6d   : > { %4155 = vmatpush3.msra.mxu1 %v2708_v13  ;;  %v3217_v13 = vld [vmem:[%s5413_s3 + $0x248] sm:$0xff] }
 0xe6e   : > { %4156 = vmatprep.subr.mxu1 %v4310_v20 }
 0xe6f   : > { %4157 = vmatpush3.msra.mxu1 %v2707_v19  ;;  %v3201_v19 = vld [vmem:[%s5413_s3 + $0x1c8] sm:$0xff] }
 0xe70   : > { %4158 = vmatprep.subr.mxu1 %v4310_v20 }
 0xe71   : > { %4159 = vmatpush3.msra.mxu1 %v2706_v12  ;;  %v3216_v12 = vld [vmem:[%s5413_s3 + $0x240] sm:$0xff] }
 0xe72   : > { %4160 = vmatprep.subr.mxu1 %v4310_v20 }
 0xe73   : > { %4161 = vmatpush3.msra.mxu1 %v2705_v22  ;;  %v3200_v22 = vld [vmem:[%s5413_s3 + $0x1c0] sm:$0xff] }
 0xe74   : > { %4162 = vmatprep.subr.mxu1 %v4310_v20 }
 0xe75   : > { %4163 = vmatpush3.msra.mxu1 %v2704_v24  ;;  %v3215_v24 = vld [vmem:[%s5413_s3 + $0x238] sm:$0xff] }
 0xf16   : > { %v2678_v55 = vpop.f32.mrf.mxu1 }
 0xf17   : > { %v2679_v46 = vadd.f32 %v2678_v55, %v2075_v39 }
 0xf18   : > { %v4120_v56 = vpop.f32.mrf.mxu1 }
 0xf19   : > { %v2684_v41 = vsel %vm920_vm6, %v2679_v46, 0.0 }
 0xf1a   : > { %2685 = vadd.xlane.f32.xlu0 %v2684_v41 }
 0xfa3   : > { %v2686_v49 = vpop.xlane.xlu0 %2685 }
 0xfa4   : > { %v2687_v57 = vmul.f32 0.03125, %v2686_v49 }
 0xfa6   : > { %v2688_v51 = vsub.f32 %v2679_v46, %v2687_v57  ;;  %v2907_v57 = vld [vmem:[%s5412_s2 + $0x100] sm:$0xff] }
 0xfa7   : > { %2968 = vmatprep.subr.mxu0 %v2907_v57  ;;  %v3244_v57 = vld [vmem:[%s5413_s3 + $0x320] sm:$0xff] }
 0xfa8   : > { %v2689_v58 = vmul.f32 %v2688_v51, %v2688_v51 }
 0xfaa   : > { %v2690_v48 = vsel %vm920_vm6, %v2689_v58, 0.0  ;;  %v2902_v58 = vld [vmem:[%s5412_s2 + $0xb8] sm:$0xff] }
 0xfab   : > { %2691 = vadd.xlane.f32.xlu1 %v2690_v48  ;;  %v2901_v48 = vld [vmem:[%s5412_s2 + $0xb0] sm:$0xff] }
 0xfbc   : > { %3476 = vperm.xlu1 %4232, %v4857_v52  }
0x1034   : > { %v2692_v2 = vpop.xlane.xlu1 %2691 }
0x1035   : > { %v2693_v60 = vmul.f32 0.03125, %v2692_v2 }
0x1037   : > { %v2694_v3 = vadd.f32 1e-05, %v2693_v60 }
0x1039   : > { %4284 = vrsqrt.f32 %v2694_v3 }
0x1046   : > { %v4285_v4 = vpop.eup %4284 }
0x1047   : > { %v2696_v6 = vmul.f32 %v4285_v4, %v2688_v51  ;;  %v2906_v51 = vld [vmem:[%s5412_s2 + $0xf8] sm:$0xff] }
0x1049   : > { %v2697_v8 = vmul.f32 %v2696_v6, %v2682_v5  ;;  %v2874_v5 = vld [vmem:[%s5414_s4 + $0x52] ss:$0 sm:$0xff] }
0x104b   : > { %v4990_v9 = vadd.f32 %v2697_v8, %v2683_v7  ;;  %v2875_v7 = vld [vmem:[%s5414_s4 + $0x53] ss:$0 sm:$0xff] }
0x104d   : > { %4130 = vmatmul.mubr.msk.f32.vlgmr.msra.gmra.mxu0 %vm920_vm6, %v4990_v9 }
0x104e   : > { %3008 = vmatprep.mubr.f32.mxu0 %v4310_v20  ;;  %2969 = vmatpush1.msra.mxu0 %v2906_v51  ;;  %v3192_v51 = vld [vmem:[%s5413_s3 + $0x180] sm:$0xff] }
0x104f   : > { %2970 = vmatprep.subr.mxu0 %v2902_v58  ;;  %v3228_v58 = vld [vmem:[%s5413_s3 + $0x2a0] sm:$0xff] }
0x1050   : > { %2971 = vmatpush1.msra.mxu0 %v2901_v48  ;;  %v3207_v48 = vld [vmem:[%s5413_s3 + $0x1f8] sm:$0xff] }
0x110d   : > { %v2790_v28 = vpop.f32.mrf.mxu0 }
0x110e   : > { %v2791_v29 = vadd.f32 %v2790_v28, %v2703_v31  ;;  %v3199_v31 = vld [vmem:[%s5413_s3 + $0x1b8] sm:$0xff]  ;;  %v3214_v28 = vld [vmem:[%s5413_s3 + $0x230] sm:$0xff] }
0x110f   : > { %v4131_v30 = vpop.f32.mrf.mxu0 }
0x1110   : > { %v2795_v34 = vmul.f32 0.044715, %v2791_v29  ;;  %v2794_v42 = vmul.f32 0.5, %v2791_v29  ;;  %v3213_v30 = vld [vmem:[%s5413_s3 + $0x228] sm:$0xff] }
0x1112   : > { %v2796_v35 = vmul.f32 %v2795_v34, %v2791_v29  ;;  %v3249_v34 = vld [vmem:[%s5413_s3 + $0x348] sm:$0xff] }
0x1113   : > { %3839 = vmatprep.subr.mxu1 %v3249_v34 }
0x1114   : > { %v2797_v36 = vmul.f32 %v2796_v35, %v2791_v29  ;;  %v3197_v35 = vld [vmem:[%s5413_s3 + $0x1a8] sm:$0xff] }
0x1116   : > { %v2798_v32 = vadd.f32 %v2797_v36, %v2791_v29  ;;  %v3198_v29 = vld [vmem:[%s5413_s3 + $0x1b0] sm:$0xff]  ;;  %v3233_v36 = vld [vmem:[%s5413_s3 + $0x2c8] sm:$0xff] }
0x1118   : > { %v2799_v38 = vmul.f32 0.7978846, %v2798_v32  ;;  %v3212_v32 = vld [vmem:[%s5413_s3 + $0x220] sm:$0xff] }
0x111a   : > { %4286 = vtanh.f32 %v2799_v38  ;;  %v3248_v38 = vld [vmem:[%s5413_s3 + $0x340] sm:$0xff] }
0x1127   : > { %v4287_v40 = vpop.eup %4286 }
0x1128   : > { %v2801_v17 = vadd.f32 1.0, %v4287_v40  ;;  %v3196_v40 = vld [vmem:[%s5413_s3 + $0x1a0] sm:$0xff] }
0x112a   : > { %v2802_v21 = vmul.f32 %v2801_v17, %v2794_v42  ;;  %v3232_v42 = vld [vmem:[%s5413_s3 + $0x2c0] sm:$0xff]  ;;  %v3211_v17 = vld [vmem:[%s5413_s3 + $0x218] sm:$0xff] }
0x112c   : > { %4165 = vmatmul.mubr.f32.vlgmr.msra.gmra.mxu1 %v2802_v21  ;;  %v3247_v21 = vld [vmem:[%s5413_s3 + $0x338] sm:$0xff] }
0x112d   : > { %3840 = vmatpush3.msra.mxu1 %v3233_v36 }
0x112e   : > { %3841 = vmatprep.subr.mxu1 %v3248_v38 }
0x112f   : > { %3842 = vmatpush3.msra.mxu1 %v3232_v42 }
0x1130   : > { %3843 = vmatprep.subr.mxu1 %v3247_v21 }
0x11ec   : > { %v2869_v50 = vpop.f32.mrf.mxu1 }
0x11ed   : > { %v2870_v27 = vadd.f32 %v2869_v50, %v2720_v43  ;;  %v3195_v43 = vld [vmem:[%s5413_s3 + $0x198] sm:$0xff] }
0x11ee   : > { %v4166_v53 = vpop.f32.mrf.mxu1  ;;  %v3231_v50 = vld [vmem:[%s5413_s3 + $0x2b8] sm:$0xff] }
0x11ef   : > { %v2873_v54 = vadd.f32 %v2870_v27, %v4990_v9  ;;  %3844 = vmatpush3.msra.mxu1 %v3231_v50  ;;  %v3210_v27 = vld [vmem:[%s5413_s3 + $0x210] sm:$0xff] }
0x11f0   : > { %v3246_v53 = vld [vmem:[%s5413_s3 + $0x330] sm:$0xff] }
0x11f1   : > { %v2876_v39 = vsel %vm920_vm6, %v2873_v54, 0.0  ;;  %3845 = vmatprep.subr.mxu1 %v3246_v53 }
0x11f2   : > { %2877 = vadd.xlane.f32.xlu0 %v2876_v39  ;;  %v3230_v39 = vld [vmem:[%s5413_s3 + $0x2b0] sm:$0xff] }
0x11f3   : > { %3846 = vmatpush3.msra.mxu1 %v3230_v39 }
0x127b   : > { %v2878_v55 = vpop.xlane.xlu0 %2877 }
0x127c   : > { %v2879_v46 = vmul.f32 0.03125, %v2878_v55  ;;  %v3209_v55 = vld [vmem:[%s5413_s3 + $0x208] sm:$0xff] }
0x127e   : > { %v2880_v56 = vsub.f32 %v2873_v54, %v2879_v46  ;;  %v3194_v54 = vld [vmem:[%s5413_s3 + $0x190] sm:$0xff]  ;;  %v3245_v46 = vld [vmem:[%s5413_s3 + $0x328] sm:$0xff] }
0x127f   : > { %3847 = vmatprep.subr.mxu1 %v3245_v46 }
0x1280   : > { %v2881_v41 = vmul.f32 %v2880_v56, %v2880_v56 }
0x1282   : > { %v2882_v49 = vsel %vm920_vm6, %v2881_v41, 0.0  ;;  %v3229_v41 = vld [vmem:[%s5413_s3 + $0x2a8] sm:$0xff] }
0x1283   : > { %2883 = vadd.xlane.f32.xlu0 %v2882_v49  ;;  %3848 = vmatpush3.msra.mxu1 %v3229_v41  ;;  %v3208_v49 = vld [vmem:[%s5413_s3 + $0x200] sm:$0xff] }
0x1284   : > { %3849 = vmatprep.subr.mxu1 %v3244_v57 }
0x1285   : > { %3850 = vmatpush3.msra.mxu1 %v3228_v58 }
0x1299   : > { %3486 = vperm.xlu0 %4233, %v4857_v52   ;;  %v2897_v52 = vld [vmem:[%s5412_s2 + $0x70] sm:$0xff] }
0x129a   : > { %2972 = vmatprep.subr.mxu0 %v2897_v52  ;;  %v3243_v52 = vld [vmem:[%s5413_s3 + $0x318] sm:$0xff] }
0x129b   : > { %2973 = vmatpush1.msra.mxu0 %v2896_v59  ;;  %3851 = vmatprep.subr.mxu1 %v3243_v52  ;;  %v3191_v59 = vld [vmem:[%s5413_s3 + $0x178] sm:$0xff] }
0x129c   : > { %2974 = vmatprep.subr.mxu0 %v2892_v62  ;;  %v3227_v62 = vld [vmem:[%s5413_s3 + $0x298] sm:$0xff] }
0x129d   : > { %2975 = vmatpush1.msra.mxu0 %v2891_v63  ;;  %3852 = vmatpush3.msra.mxu1 %v3227_v62  ;;  %v3206_v63 = vld [vmem:[%s5413_s3 + $0x1f0] sm:$0xff] }
0x129e   : > { %3039 = vmatprep.subr.mxu0 %v2909_v0  ;;  %v3242_v0 = vld [vmem:[%s5413_s3 + $0x310] sm:$0xff] }
0x129f   : > { %3853 = vmatprep.subr.mxu1 %v3242_v0 }
0x130c   : > { %v2884_v2 = vpop.xlane.xlu0 %2883 }
0x130d   : > { %v2885_v60 = vmul.f32 0.03125, %v2884_v2  ;;  %v3190_v2 = vld [vmem:[%s5413_s3 + $0x170] sm:$0xff] }
0x130f   : > { %v2886_v3 = vadd.f32 1e-05, %v2885_v60  ;;  %v3226_v60 = vld [vmem:[%s5413_s3 + $0x290] sm:$0xff] }
0x1310   : > { %3854 = vmatpush3.msra.mxu1 %v3226_v60  ;;  %v3398_v60 = vld [vmem:[%s5413_s3 + $0x388] sm:$0xff] }
0x1311   : > { %4288 = vrsqrt.f32 %v2886_v3  ;;  %v3205_v3 = vld [vmem:[%s5413_s3 + $0x1e8] sm:$0xff] }
0x131e   : > { %v4289_v4 = vpop.eup %4288 }
0x131f   : > { %v2888_v6 = vmul.f32 %v4289_v4, %v2880_v56  ;;  %v3193_v56 = vld [vmem:[%s5413_s3 + $0x188] sm:$0xff] }
0x1320   : > { %v3241_v4 = vld [vmem:[%s5413_s3 + $0x308] sm:$0xff] }
0x1321   : > { %v2889_v8 = vmul.f32 %v2888_v6, %v2874_v5  ;;  %3855 = vmatprep.subr.mxu1 %v3241_v4  ;;  %v3189_v5 = vld [vmem:[%s5413_s3 + $0x168] sm:$0xff]  ;;  %v3397_v4 = vld [vmem:[%s5413_s3 + $0x380] sm:$0xff] }
0x1322   : > { %v3225_v6 = vld [vmem:[%s5413_s3 + $0x288] sm:$0xff] }
0x1323   : > { %v5101_v9 = vadd.f32 %v2889_v8, %v2875_v7  ;;  %3856 = vmatpush3.msra.mxu1 %v3225_v6  ;;  %v3204_v7 = vld [vmem:[%s5413_s3 + $0x1e0] sm:$0xff]  ;;  %v3396_v6 = vld [vmem:[%s5413_s3 + $0x378] sm:$0xff] }
0x1324   : > { %v3240_v8 = vld [vmem:[%s5413_s3 + $0x300] sm:$0xff] }
0x1325   : > { %3643 = vmatmul.mubr.msk.f32.vlgmr.msra.gmra.mxu0 %vm920_vm6, %v5101_v9  ;;  %3857 = vmatprep.subr.mxu1 %v3240_v8 }
0x1326   : > { %3040 = vmatpush1.msra.mxu0 %v2908_v11  ;;  %3079 = vmatprep.mubr.f32.mxu0 %v4310_v20  ;;  %v3188_v11 = vld [vmem:[%s5413_s3 + $0x160] sm:$0xff] }
0x1327   : > { %3041 = vmatprep.subr.mxu0 %v2904_v10  ;;  %v3224_v10 = vld [vmem:[%s5413_s3 + $0x280] sm:$0xff] }
0x1328   : > { %3042 = vmatpush1.msra.mxu0 %v2903_v25  ;;  %3858 = vmatpush3.msra.mxu1 %v3224_v10  ;;  %v3203_v25 = vld [vmem:[%s5413_s3 + $0x1d8] sm:$0xff]  ;;  %v3395_v10 = vld [vmem:[%s5413_s3 + $0x370] sm:$0xff] }
0x1329   : > { %3043 = vmatprep.subr.mxu0 %v2899_v1  ;;  %v3239_v1 = vld [vmem:[%s5413_s3 + $0x2f8] sm:$0xff] }
0x132a   : > { %3044 = vmatpush1.msra.mxu0 %v2898_v26  ;;  %3859 = vmatprep.subr.mxu1 %v3239_v1  ;;  %v3187_v26 = vld [vmem:[%s5413_s3 + $0x158] sm:$0xff]  ;;  %v3394_v1 = vld [vmem:[%s5413_s3 + $0x368] sm:$0xff] }
0x132b   : > { %3045 = vmatprep.subr.mxu0 %v2894_v14  ;;  %v3223_v14 = vld [vmem:[%s5413_s3 + $0x278] sm:$0xff] }
0x132c   : > { %3046 = vmatpush1.msra.mxu0 %v2893_v33  ;;  %3860 = vmatpush3.msra.mxu1 %v3223_v14  ;;  %v3202_v33 = vld [vmem:[%s5413_s3 + $0x1d0] sm:$0xff]  ;;  %v3393_v14 = vld [vmem:[%s5413_s3 + $0x360] sm:$0xff] }
0x132d   : > { %3644 = vmatmul.mubr.msk.f32.vlgmr.msra.gmra.mxu0 %vm920_vm6, %v5101_v9  ;;  %4167 = vmatprep.subr.mxu0 %v4310_v20 }
0x132e   : > { %4168 = vmatpush3.msra.mxu0 %v2910_v15  ;;  %4175 = vmatprep.mubr.msk.f32.mxu0 %vm4311_vm2, %v4310_v20  ;;  %v3238_v15 = vld [vmem:[%s5413_s3 + $0x2f0] sm:$0xff] }
0x132f   : > { %4169 = vmatprep.subr.mxu0 %v4310_v20  ;;  %3861 = vmatprep.subr.mxu1 %v3238_v15  ;;  %v3392_v15 = vld [vmem:[%s5413_s3 + $0x358] sm:$0xff] }
0x1330   : > { %4170 = vmatpush3.msra.mxu0 %v2905_v16  ;;  %v3186_v16 = vld [vmem:[%s5413_s3 + $0x150] sm:$0xff] }
0x1331   : > { %4171 = vmatprep.subr.mxu0 %v4310_v20 }
0x1332   : > { %4172 = vmatpush3.msra.mxu0 %v2900_v23  ;;  %v3222_v23 = vld [vmem:[%s5413_s3 + $0x270] sm:$0xff] }
0x1333   : > { %4173 = vmatprep.subr.mxu0 %v4310_v20  ;;  %3862 = vmatpush3.msra.mxu1 %v3222_v23  ;;  %v3391_v23 = vld [vmem:[%s5413_s3 + $0x350] sm:$0xff] }
0x1334   : > { %4174 = vmatpush3.msra.mxu0 %v2895_v18  ;;  %v3237_v18 = vld [vmem:[%s5413_s3 + $0x2e8] sm:$0xff] }
0x1335   : > { %4176 = vmatmul.mubr.msk.f32.vlgmr.msra.gmra.mxu0 %vm920_vm6, %v5101_v9  ;;  %3804 = vmatprep.subr.mxu0 %v3217_v13  ;;  %v3221_v13 = vld [vmem:[%s5413_s3 + $0x268] sm:$0xff] }
0x1336   : > { %3805 = vmatpush3.msra.mxu0 %v3201_v19  ;;  %3863 = vmatprep.subr.mxu1 %v3237_v18  ;;  %v3236_v19 = vld [vmem:[%s5413_s3 + $0x2e0] sm:$0xff] }
0x1337   : > { %3806 = vmatprep.subr.mxu0 %v3216_v12  ;;  %3864 = vmatpush3.msra.mxu1 %v3221_v13  ;;  %v3220_v12 = vld [vmem:[%s5413_s3 + $0x260] sm:$0xff] }
0x1338   : > { %3807 = vmatpush3.msra.mxu0 %v3200_v22  ;;  %3865 = vmatprep.subr.mxu1 %v3236_v19  ;;  %v3235_v22 = vld [vmem:[%s5413_s3 + $0x2d8] sm:$0xff]  ;;  %v3487_v19 = vpop.permute.xlu0 %3486 }
0x1339   : > { %3808 = vmatprep.subr.mxu0 %v3215_v24  ;;  %3866 = vmatpush3.msra.mxu1 %v3220_v12  ;;  %v3219_v24 = vld [vmem:[%s5413_s3 + $0x258] sm:$0xff] }
0x133a   : > { %3809 = vmatpush3.msra.mxu0 %v3199_v31  ;;  %3867 = vmatprep.subr.mxu1 %v3235_v22  ;;  %v3234_v31 = vld [vmem:[%s5413_s3 + $0x2d0] sm:$0xff]  ;;  %v3473_v22 = vld [vmem:[%s5413_s3 + $0x3a8] sm:$0x3] }
0x133b   : > { %3810 = vmatprep.subr.mxu0 %v3214_v28  ;;  %3868 = vmatpush3.msra.mxu1 %v3219_v24  ;;  %v3218_v28 = vld [vmem:[%s5413_s3 + $0x250] sm:$0xff]  ;;  %v3477_v24 = vpop.permute.xlu1 %3476 }
0x133c   : > { %3811 = vmatpush3.msra.mxu0 %v3198_v29  ;;  %3869 = vmatprep.subr.mxu1 %v3234_v31  ;;  %v3641_v29 = vld [vmem:[%s5414_s4 + $0x54] ss:$8 sm:$0xf]  ;;  %v3488_v31 = vrot.slane %v3487_v19, 7 }
0x133d   : > { %3812 = vmatprep.subr.mxu0 %v3213_v30  ;;  %3870 = vmatpush3.msra.mxu1 %v3218_v28  ;;  %v3642_v30 = vld [vmem:[%s5414_s4 + $0x54] ss:$8 sm:$0x10] }
0x133e   : > { %3813 = vmatpush3.msra.mxu0 %v3197_v35  ;;  %v2914_v34 = vor.u32 %v3642_v30, %v3641_v29  ;;  %v3250_v29 = vld [vmem:[%s5414_s4 + $0x55] ss:$0 sm:$0xff] }
0x133f   : > { %3814 = vmatprep.subr.mxu0 %v3212_v32 }
0x1340   : > { %3815 = vmatpush3.msra.mxu0 %v3196_v40  ;;  %v2919_v35 = vrot.slane %v2914_v34, %v4610_v37  ;;  %v2923_v36 = vrot.slane %v2914_v34, %v4625_v61  ;;  %v2927_v50 = vrot.slane %v2914_v34, %v1007_v45  ;;  %v2931_v53 = vrot.slane %v2914_v34, %v1012_v47 }
0x1341   : > { %3816 = vmatprep.subr.mxu0 %v3211_v17 }
0x1342   : > { %3817 = vmatpush3.msra.mxu0 %v3195_v43 }
0x1343   : > { %3818 = vmatprep.subr.mxu0 %v3210_v27 }
0x1344   : > { %3819 = vmatpush3.msra.mxu0 %v3194_v54 }
0x1345   : > { %3820 = vmatprep.subr.mxu0 %v3209_v55  ;;  %v2934_v55 = vsub.s32 4, %v4607_v44 }
0x1346   : > { %3821 = vmatpush3.msra.mxu0 %v3193_v56 }
0x1347   : > { %3822 = vmatprep.subr.mxu0 %v3208_v49 }
0x1348   : > { %3823 = vmatpush3.msra.mxu0 %v3192_v51  ;;  %v2935_v51 = vrot.slane %v2914_v34, %v2934_v55 }
0x1349   : > { %3824 = vmatprep.subr.mxu0 %v3207_v48 }
0x134a   : > { %3825 = vmatpush3.msra.mxu0 %v3191_v59 }
0x134b   : > { %3826 = vmatprep.subr.mxu0 %v3206_v63 }
0x134c   : > { %3827 = vmatpush3.msra.mxu0 %v3190_v2 }
0x134d   : > { %3828 = vmatprep.subr.mxu0 %v3205_v3 }
0x134e   : > { %3829 = vmatpush3.msra.mxu0 %v3189_v5 }
0x134f   : > { %3830 = vmatprep.subr.mxu0 %v3204_v7 }
0x1350   : > { %3831 = vmatpush3.msra.mxu0 %v3188_v11 }
0x1351   : > { %3832 = vmatprep.subr.mxu0 %v3203_v25 }
0x1352   : > { %3833 = vmatpush3.msra.mxu0 %v3187_v26 }
0x1353   : > { %3834 = vmatprep.subr.mxu0 %v3202_v33 }
0x1354   : > { %3835 = vmatpush3.msra.mxu0 %v3186_v16 }
0x1355   : > { %4178 = vmatprep.subr.mxu0 %v4310_v20 }
0x13e5   : > { %v3010_v32 = vpop.f32.mrf.mxu0 }
0x13e6   : > { %v3011_v38 = vadd.f32 %v3010_v32, %v2919_v35  ;;  %v3490_v35 = vmul.f32 %v3488_v31, %v3473_v22 }
0x13e7   : > { %v3012_v40 = vpop.f32.mrf.mxu0 }
0x13e8   : > { %v3161_v42 = vmin.f32 %v3011_v38, 0.0  ;;  %v3013_v17 = vadd.f32 %v3012_v40, %v2923_v36  ;;  %vm3156_vm0 = vcmp.gt.f32.partialorder %v3011_v38, 0.0 }
0x13ea   : > { %v3166_v21 = vmul.f32 1.442695, %v3161_v42  ;;  %v3162_v43 = vmin.f32 %v3013_v17, 0.0  ;;  %vm3157_vm15 = vcmp.gt.f32.partialorder %v3013_v17, 0.0  ;;  %v3494_v42 = vrot.slane %v3490_v35, %v4625_v61 }
0x13ec   : > { %4290 = vpow2.f32 %v3166_v21  ;;  %v3168_v27 = vmul.f32 1.442695, %v3162_v43 }
0x13ed   : > { %v3081_v54 = vpop.f32.mrf.mxu0 }
0x13ee   : > { %4292 = vpow2.f32 %v3168_v27  ;;  %v3082_v39 = vadd.f32 %v3081_v54, %v2927_v50  ;;  %v3399_v50 = vld [vmem:[%s5414_s4 + $0x56] ss:$0 sm:$0xff] }
0x13ef   : > { %v3083_v46 = vpop.f32.mrf.mxu0 }
0x13f0   : > { %v3163_v56 = vmin.f32 %v3082_v39, 0.0  ;;  %v3084_v41 = vadd.f32 %v3083_v46, %v2931_v53  ;;  %vm3158_vm4 = vcmp.gt.f32.partialorder %v3082_v39, 0.0 }
0x13f2   : > { %v3170_v49 = vmul.f32 1.442695, %v3163_v56  ;;  %v3164_v57 = vmin.f32 %v3084_v41, 0.0  ;;  %vm3159_vm3 = vcmp.gt.f32.partialorder %v3084_v41, 0.0 }
0x13f4   : > { %4294 = vpow2.f32 %v3170_v49  ;;  %v3172_v58 = vmul.f32 1.442695, %v3164_v57 }
0x13f5   : > { %v3152_v48 = vpop.f32.mrf.mxu0 }
0x13f6   : > { %4296 = vpow2.f32 %v3172_v58  ;;  %v3153_v45 = vadd.f32 %v3152_v48, %v2935_v51 }
0x13f7   : > { %v4177_v52 = vpop.f32.mrf.mxu0 }
0x13f8   : > { %v3165_v59 = vmin.f32 %v3153_v45, 0.0 }
0x13f9   : > { %v4291_v62 = vpop.eup %4290 }
0x13fa   : > { %v3174_v47 = vmul.f32 1.442695, %v3165_v59  ;;  %v3646_v0 = vadd.f32 -1.0, %v4291_v62 }
0x13fb   : > { %v4293_v63 = vpop.eup %4292 }
0x13fc   : > { %4298 = vpow2.f32 %v3174_v47  ;;  %v3647_v2 = vadd.f32 -1.0, %v4293_v63  ;;  %v3181_v3 = vsel %vm3156_vm0, %v3011_v38, %v3646_v0 }
0x13fe   : > { %v3182_v44 = vsel %vm3157_vm15, %v3013_v17, %v3647_v2 }
0x13ff   : > { %3315 = vmatprep.mubr.f32.mxu0 %v3182_v44 }
0x1400   : > { %3316 = vmatmul.mubr.f32.vlgmr.msra.gmra.mxu0 %v3181_v3 }
0x1401   : > { %v4295_v5 = vpop.eup %4294  ;;  %4179 = vmatpush3.msra.mxu0 %v3398_v60  ;;  %4194 = vmatprep.mubr.msk.f32.mxu0 %vm4311_vm2, %v4310_v20  ;;  %vm3160_vm2 = vcmp.gt.f32.partialorder %v3153_v45, 0.0 }
0x1402   : > { %4180 = vmatprep.subr.mxu0 %v4310_v20  ;;  %v3648_v8 = vadd.f32 -1.0, %v4295_v5 }
0x1403   : > { %v4297_v7 = vpop.eup %4296  ;;  %4181 = vmatpush3.msra.mxu0 %v3397_v4 }
0x1404   : > { %4182 = vmatprep.subr.mxu0 %v4310_v20  ;;  %v3649_v11 = vadd.f32 -1.0, %v4297_v7  ;;  %v3183_v26 = vsel %vm3158_vm4, %v3082_v39, %v3648_v8 }
0x1405   : > { %4183 = vmatpush3.msra.mxu0 %v3396_v6 }
0x1406   : > { %4184 = vmatprep.subr.mxu0 %v4310_v20  ;;  %v3184_v25 = vsel %vm3159_vm3, %v3084_v41, %v3649_v11 }
0x1407   : > { %3385 = vmatprep.mubr.f32.mxu1 %v3184_v25  ;;  %4185 = vmatpush3.msra.mxu0 %v3395_v10 }
0x1408   : > { %3386 = vmatmul.mubr.f32.vlgmr.msra.gmra.mxu1 %v3183_v26  ;;  %4186 = vmatprep.subr.mxu0 %v4310_v20 }
0x1409   : > { %v4299_v33 = vpop.eup %4298  ;;  %4187 = vmatpush3.msra.mxu0 %v3394_v1 }
0x140a   : > { %4188 = vmatprep.subr.mxu0 %v4310_v20  ;;  %v3650_v16 = vadd.f32 -1.0, %v4299_v33 }
0x140b   : > { %4189 = vmatpush3.msra.mxu0 %v3393_v14 }
0x140c   : > { %4190 = vmatprep.subr.mxu0 %v4310_v20  ;;  %v3185_v18 = vsel %vm3160_vm2, %v3153_v45, %v3650_v16 }
0x140d   : > { %4191 = vmatpush3.msra.mxu0 %v3392_v15 }
0x140e   : > { %4192 = vmatprep.subr.mxu0 %v4310_v20  ;;  %v3479_v20 = vmul.f32 %v3477_v24, %v3473_v22 }
0x140f   : > { %4193 = vmatpush3.msra.mxu0 %v3391_v23 }
0x1410   : > { %4195 = vmatmul.mubr.msk.f32.vlgmr.msra.gmra.mxu0 %vm460_vm1, %v3185_v18  ;;  %v3483_v38 = vrot.slane %v3479_v20, %v4610_v37  ;;  %vm3505_vm1 = vcmask 588800  }
0x14c0   : > { %v3836_v13 = vpop.f32.mrf.mxu0 }
0x14c2   : > { %v3837_v12 = vpop.f32.mrf.mxu0 }
0x14c3   : > { %v3838_v28 = vadd.f32 %v3837_v12, %v3836_v13 }
0x14c5   : > { %v3318_v36 = vadd.f32 %v3838_v28, %v3250_v29 }
0x14c8   : > { %v3871_v30 = vpop.f32.mrf.mxu1 }
0x14ca   : > { %v3872_v34 = vpop.f32.mrf.mxu1 }
0x14cb   : > { %v3873_v32 = vadd.f32 %v3872_v34, %v3871_v30 }
0x14cd   : > { %v3388_v40 = vadd.f32 %v3873_v32, %v3318_v36 }
0x14cf   : > { %v3484_v17 = vadd.f32 %v3483_v38, %v3388_v40 }
0x14d0   : > { %v3469_v21 = vpop.f32.mrf.mxu0 }
0x14d1   : > { %v3495_v43 = vadd.f32 %v3494_v42, %v3484_v17  ;;  %v3470_v53 = vadd.f32 %v3469_v21, %v3399_v50 }
0x14d2   : > { %v4196_v27 = vpop.f32.mrf.mxu0 }
0x14d3   : > { %3497 = vrot.lane.b32.xlu1 %v3495_v43, %s4314_s25 }
0x14d7   : > { %3501 = vrot.lane.b32.xlu1 %v3470_v53, %s4315_s26 }
0x1545   : > { %v3498_v54 = vpop.permute.xlu1 %3497 }
0x1546   : > { %v3504_v37 = vsel %vm920_vm6, %v5101_v9, %v3498_v54 }
0x1549   : > { %v3502_v61 = vpop.permute.xlu1 %3501 }
0x154a   : > { %v3506_v39 = vsel %vm3505_vm1, %v3504_v37, %v3502_v61 }
0x154b   : > { %v3508_v55 = vsel %vm3507_vm5, %v3506_v39, 0.0 }
0x154c   : > { %3509 = vst [vmem:[%s197_s30] sm:$0xff] %v3508_v55 }
0x154d PF: > { %s16_s20 = sadd.s32 1, %s4306_s20  }
0x154e   : > { %p13_p4 = scmp.ge.s32.totalorder %s16_s20, 4  }
0x1550   :  { %15 = sbr.rel (!%p13_p4) target bundleno = 2 (0x2), region = 67 }

</bundles_post_ra>
